<compile_context>
chip_gen: v6e
topology: v6e:2x2x1
jax: 0.10.0
libtpu: 0.0.40
codegen_flags: <defaults>
</compile_context>

<pallas_src>
import numpy as np
import jax
import jax.numpy as jnp
from jax.experimental import pallas as pl
from jax.experimental.pallas import tpu as pltpu


# ---------------------------------------------------------------------------
# Fused forward-pass kernel.
#
# Packed lane layouts inside the kernel (per batch tile of TB samples):
#   conv1 out : rows = (b, oh)  [TB*24], lanes = ow*10 + co   [240]
#   h1 pooled : rows = (b, oh1) [TB,12], lanes = 20*ow1 + ci  [230]  (ci < 10 real)
#   conv2 out : rows = (b, oh2) [TB*8],  lanes = ow2*20 + co  [160]
#   h2 pooled : rows = (b, oh3) [TB,4],  lanes = 40*ow3 + co  [140]  (co < 20 real)
# The "garbage" lane slots left by in-lane 2x2 pooling hit zero rows of the next
# layer's pre-packed weight matrix, so no lane compaction / relayout is needed.
# ---------------------------------------------------------------------------
def _make_net_kernel(precision):
    def kernel(x_ref, m1_ref, b1_ref, m2_ref, b2_ref,
               wf1_ref, bf1_ref, wf2_ref, bf2_ref, o_ref):
        tb = x_ref.shape[0]
        f32 = jnp.float32
        cdt = m1_ref.dtype                       # MXU input dtype (bf16 or f32)

        def mxu(a, b):
            return jnp.dot(a, b, preferred_element_type=f32, precision=precision)

        # ---- conv1 (1->10, 5x5, valid) + bias : 5 banded MXU matmuls ----
        acc1 = jnp.zeros((tb * 24, 240), f32)
        for ki in range(5):
            lhs = x_ref[:, ki:ki + 24, :].astype(cdt).reshape(tb * 24, 28)
            acc1 = acc1 + mxu(lhs, m1_ref[ki])
        acc1 = acc1 + b1_ref[...]                              # (1, 240) bcast

        # ---- fused 2x2 max-pool + ReLU (lane pairs, then row pairs) ----
        w1m = jnp.maximum(acc1[:, 0:230], acc1[:, 10:240])     # max over ow pairs
        w1m = w1m.reshape(tb, 12, 2, 230)
        h1 = jnp.maximum(jnp.maximum(w1m[:, :, 0, :], w1m[:, :, 1, :]), 0.0)
        h1 = h1.astype(cdt)                                    # (TB, 12, 230)

        # ---- conv2 (10->20, 5x5, valid) + bias : 5 banded MXU matmuls ----
        acc2 = jnp.zeros((tb * 8, 160), f32)
        for ki in range(5):
            lhs = h1[:, ki:ki + 8, :].reshape(tb * 8, 230)
            acc2 = acc2 + mxu(lhs, m2_ref[ki])
        acc2 = acc2 + b2_ref[...]                              # (1, 160) bcast
        # (nn.Dropout2d: identity in eval mode.)

        # ---- fused 2x2 max-pool + ReLU ----
        w2m = jnp.maximum(acc2[:, 0:140], acc2[:, 20:160])
        w2m = w2m.reshape(tb, 4, 2, 140)
        h2 = jnp.maximum(jnp.maximum(w2m[:, :, 0, :], w2m[:, :, 1, :]), 0.0)
        h2 = h2.astype(cdt)                                    # (TB, 4, 140)

        # ---- fc1 (320->50) + ReLU : 4 MXU matmuls (one per pooled row) ----
        z1 = jnp.zeros((tb, 50), f32)
        for h in range(4):
            z1 = z1 + mxu(h2[:, h, :], wf1_ref[h])
        z1 = jnp.maximum(z1 + bf1_ref[...], 0.0)
        # (F.dropout: identity in eval mode.)

        # ---- fc2 (50->10) + log_softmax ----
        logits = mxu(z1.astype(cdt), wf2_ref[...]) + bf2_ref[...]
        m = jnp.max(logits, axis=-1, keepdims=True)
        s = logits - m
        lse = jnp.log(jnp.sum(jnp.exp(s), axis=-1, keepdims=True))
        o_ref[:, 0, :] = (s - lse).astype(o_ref.dtype)

    return kernel


# ---------------------------------------------------------------------------
# One-time weight repacking (pure XLA on tiny tensors, done outside the kernel)
# ---------------------------------------------------------------------------
def _band_mask(len_in, len_out, k):
    """B[kj, i, o] = 1.0 iff i == o + kj  (valid-conv tap placement)."""
    kj = np.arange(k)[:, None, None]
    i = np.arange(len_in)[None, :, None]
    o = np.arange(len_out)[None, None, :]
    return jnp.asarray((i == o + kj).astype(np.float32))


def prepare_kernel_params(params, mxu_dtype=jnp.bfloat16):
    """Repack torch-layout parameters into lane-packed banded weight matrices."""
    f32 = jnp.float32

    # conv1 -> M1[ki] : (28, 240), output lane = ow*10 + co
    w1 = params["conv1_w"].astype(f32)[:, 0]                 # (10, 5, 5)  [co, ki, kj]
    p1 = _band_mask(28, 24, 5)                               # (5, 28, 24) [kj, wi, ow]
    m1 = jnp.einsum("jwo,ckj->kwoc", p1, w1).reshape(5, 28, 240)

    # conv2 -> M2[ki] : (230, 160); in lane = 20*ow1 + ci (ci<10), out lane = 20*ow2 + co
    w2 = params["conv2_w"].astype(f32)                       # (20, 10, 5, 5) [co, ci, ki, kj]
    p2 = _band_mask(12, 8, 5)                                # (5, 12, 8)
    t2 = jnp.einsum("jab,dckj->kacbd", p2, w2)               # (5, 12, 10, 8, 20)
    m2 = jnp.zeros((5, 12, 20, 8, 20), f32).at[:, :, :10, :, :].set(t2)
    m2 = m2.reshape(5, 240, 160)[:, :230, :]

    # fc1 -> Wf1[oh3] : (140, 50); input lane = 40*ow3 + co (co<20)
    wf1 = params["fc1_w"].astype(f32).reshape(50, 20, 4, 4)  # [k, c, h, w] (torch flatten)
    wf1 = jnp.transpose(wf1, (2, 3, 1, 0))                   # (4, 4, 20, 50) [h, w, c, k]
    wf1 = jnp.zeros((4, 4, 40, 50), f32).at[:, :, :20, :].set(wf1)
    wf1 = wf1.reshape(4, 160, 50)[:, :140, :]

    wf2 = params["fc2_w"].astype(f32).T                      # (50, 10)

    return {
        "m1": m1.astype(mxu_dtype),
        "b1t": jnp.tile(params["conv1_b"].astype(f32), 24)[None, :],   # (1, 240)
        "m2": m2.astype(mxu_dtype),
        "b2t": jnp.tile(params["conv2_b"].astype(f32), 8)[None, :],    # (1, 160)
        "wf1": wf1.astype(mxu_dtype),
        "bf1": params["fc1_b"].astype(f32)[None, :],                   # (1, 50)
        "wf2": wf2.astype(mxu_dtype),
        "bf2": params["fc2_b"].astype(f32)[None, :],                   # (1, 10)
    }


def _pick_batch_tile(n):
    for tb in (8, 4, 2):
        if n % tb == 0:
            return tb
    return 1


def _resident(shape):
    # Weight blocks: full array, same block every grid step (loaded once).
    if len(shape) == 2:
        return pl.BlockSpec(shape, lambda i: (0, 0))
    return pl.BlockSpec(shape, lambda i: (0, 0, 0))


def net_forward(x, params, mxu_dtype=jnp.bfloat16):
    n = x.shape[0]
    assert x.shape[1:] == (1, 28, 28), "Net expects NCHW (N,1,28,28) inputs"
    kp = prepare_kernel_params(params, mxu_dtype)
    x3 = x.reshape(n, 28, 28)                                # Cin == 1 -> drop channel dim

    tb = _pick_batch_tile(n)
    precision = (jax.lax.Precision.HIGHEST
                 if np.dtype(mxu_dtype) == np.dtype(np.float32) else None)

    out = pl.pallas_call(
        _make_net_kernel(precision),
        out_shape=jax.ShapeDtypeStruct((n, 1, 10), jnp.float32),
        grid_spec=pltpu.PrefetchScalarGridSpec(
            num_scalar_prefetch=0,
            grid=(n // tb,),
            in_specs=[
                pl.BlockSpec((tb, 28, 28), lambda i: (i, 0, 0)),
                _resident((5, 28, 240)),
                _resident((1, 240)),
                _resident((5, 230, 160)),
                _resident((1, 160)),
                _resident((4, 140, 50)),
                _resident((1, 50)),
                _resident((50, 10)),
                _resident((1, 10)),
            ],
            out_specs=pl.BlockSpec((tb, 1, 10), lambda i: (i, 0, 0)),
        ),
        compiler_params=pltpu.CompilerParams(
            dimension_semantics=("parallel",),
        ),
    )(x3, kp["m1"], kp["b1t"], kp["m2"], kp["b2t"],
      kp["wf1"], kp["bf1"], kp["wf2"], kp["bf2"])
    return out.reshape(n, 10)


# ---------------------------------------------------------------------------
# Pure-XLA reference (matches the PyTorch module in eval mode) + init
# ---------------------------------------------------------------------------
def reference_forward(x, params):
    hi = jax.lax.Precision.HIGHEST
    dn = ("NCHW", "OIHW", "NCHW")
    y = jax.lax.conv_general_dilated(x, params["conv1_w"], (1, 1), "VALID",
                                     dimension_numbers=dn, precision=hi)
    y = y + params["conv1_b"][None, :, None, None]
    y = jax.lax.reduce_window(y, -jnp.inf, jax.lax.max,
                              (1, 1, 2, 2), (1, 1, 2, 2), "VALID")
    y = jnp.maximum(y, 0.0)
    y = jax.lax.conv_general_dilated(y, params["conv2_w"], (1, 1), "VALID",
                                     dimension_numbers=dn, precision=hi)
    y = y + params["conv2_b"][None, :, None, None]
    y = jax.lax.reduce_window(y, -jnp.inf, jax.lax.max,
                              (1, 1, 2, 2), (1, 1, 2, 2), "VALID")
    y = jnp.maximum(y, 0.0)
    y = y.reshape(y.shape[0], 320)
    y = jnp.maximum(jnp.dot(y, params["fc1_w"].T, precision=hi) + params["fc1_b"], 0.0)
    z = jnp.dot(y, params["fc2_w"].T, precision=hi) + params["fc2_b"]
    return jax.nn.log_softmax(z, axis=1)


def init_params(key):
    ks = jax.random.split(key, 8)

    def uni(k, shape, fan_in):
        bound = 1.0 / jnp.sqrt(fan_in)
        return jax.random.uniform(k, shape, jnp.float32, -bound, bound)

    return {
        "conv1_w": uni(ks[0], (10, 1, 5, 5), 1 * 5 * 5),
        "conv1_b": uni(ks[1], (10,), 1 * 5 * 5),
        "conv2_w": uni(ks[2], (20, 10, 5, 5), 10 * 5 * 5),
        "conv2_b": uni(ks[3], (20,), 10 * 5 * 5),
        "fc1_w": uni(ks[4], (50, 320), 320),   # torch Linear weight layout (out, in)
        "fc1_b": uni(ks[5], (50,), 320),
        "fc2_w": uni(ks[6], (10, 50), 50),
        "fc2_b": uni(ks[7], (10,), 50),
    }


if __name__ == "__main__":
    key = jax.random.PRNGKey(0)
    pkey, xkey = jax.random.split(key)
    params = init_params(pkey)

    # Input must be (N, 1, 28, 28) so fc1's 320-dim input lines up
    # (28 -conv5-> 24 -pool-> 12 -conv5-> 8 -pool-> 4 ; 20*4*4 = 320).
    x = jax.random.normal(xkey, (2, 1, 28, 28), dtype=jnp.float32)

    fwd = jax.jit(net_forward)                                      # bf16-MXU production path
    fwd_f32 = jax.jit(lambda a, p: net_forward(a, p, mxu_dtype=jnp.float32))
    ref = jax.jit(reference_forward)

    out = jax.block_until_ready(fwd(x, params))
    out_f32 = jax.block_until_ready(fwd_f32(x, params))
    expected = jax.block_until_ready(ref(x, params))

    assert out.shape == (2, 10)
    # log_softmax rows should sum (in prob space) to ~1
    assert bool(jnp.all(jnp.abs(jnp.sum(jnp.exp(out), axis=1) - 1.0) < 1e-4))
    # f32-MXU kernel vs XLA reference: checks the banded-weight index math
    assert float(jnp.max(jnp.abs(out_f32 - expected))) < 1e-2
    # bf16-MXU (production) path: loose tolerance for reduced-precision matmuls
    assert float(jnp.max(jnp.abs(out - expected))) < 5e-2
    print("KERNEL_OK")
</pallas_src>

<mosaic_0001>
module attributes {stable_mosaic.version = 11 : i64} {
  func.func @kernel(%arg0: i32, %arg1: memref<2x28x28xf32, #tpu.memory_space<vmem>>, %arg2: memref<5x28x240xbf16, #tpu.memory_space<vmem>>, %arg3: memref<1x240xf32, #tpu.memory_space<vmem>>, %arg4: memref<5x230x160xbf16, #tpu.memory_space<vmem>>, %arg5: memref<1x160xf32, #tpu.memory_space<vmem>>, %arg6: memref<4x140x50xbf16, #tpu.memory_space<vmem>>, %arg7: memref<1x50xf32, #tpu.memory_space<vmem>>, %arg8: memref<50x10xbf16, #tpu.memory_space<vmem>>, %arg9: memref<1x10xf32, #tpu.memory_space<vmem>>, %arg10: memref<2x1x10xf32, #tpu.memory_space<vmem>>) attributes {dimension_semantics = [#tpu.dimension_semantics<parallel>], iteration_bounds = array<i64: 1>, scalar_prefetch = 0 : i64, scratch_operands = 0 : i64, tpu.core_type = #tpu.core_type<tc>, window_params = [{transform_indices = @transform_0, window_bounds = array<i64: 2, 28, 28>}, {pipeline_mode = #tpu.pipeline_mode<synchronous>, transform_indices = @transform_1, window_bounds = array<i64: 5, 28, 240>}, {pipeline_mode = #tpu.pipeline_mode<synchronous>, transform_indices = @transform_2, window_bounds = array<i64: 1, 240>}, {pipeline_mode = #tpu.pipeline_mode<synchronous>, transform_indices = @transform_3, window_bounds = array<i64: 5, 230, 160>}, {pipeline_mode = #tpu.pipeline_mode<synchronous>, transform_indices = @transform_4, window_bounds = array<i64: 1, 160>}, {pipeline_mode = #tpu.pipeline_mode<synchronous>, transform_indices = @transform_5, window_bounds = array<i64: 4, 140, 50>}, {pipeline_mode = #tpu.pipeline_mode<synchronous>, transform_indices = @transform_6, window_bounds = array<i64: 1, 50>}, {pipeline_mode = #tpu.pipeline_mode<synchronous>, transform_indices = @transform_7, window_bounds = array<i64: 50, 10>}, {pipeline_mode = #tpu.pipeline_mode<synchronous>, transform_indices = @transform_8, window_bounds = array<i64: 1, 10>}, {transform_indices = @transform_9, window_bounds = array<i64: 2, 1, 10>}]} {
    %cst = arith.constant 0.000000e+00 : f32
    %0 = vector.broadcast %cst : f32 to vector<48x240xf32>
    %c0 = arith.constant 0 : index
    %c0_0 = arith.constant 0 : index
    %c0_1 = arith.constant 0 : index
    %1 = vector.load %arg1[%c0, %c0_0, %c0_1] : memref<2x28x28xf32, #tpu.memory_space<vmem>>, vector<2x24x28xf32>
    %2 = arith.truncf %1 : vector<2x24x28xf32> to vector<2x24x28xbf16>
    %3 = vector.shape_cast %2 : vector<2x24x28xbf16> to vector<48x28xbf16>
    %c0_2 = arith.constant 0 : index
    %c0_3 = arith.constant 0 : index
    %c0_4 = arith.constant 0 : index
    %4 = vector.load %arg2[%c0_2, %c0_3, %c0_4] : memref<5x28x240xbf16, #tpu.memory_space<vmem>>, vector<1x28x240xbf16>
    %5 = vector.shape_cast %4 : vector<1x28x240xbf16> to vector<28x240xbf16>
    %cst_5 = arith.constant dense<0.000000e+00> : vector<48x240xf32>
    %6 = tpu.matmul %3, %5, %cst_5 {dimension_numbers = #tpu.dot_dimension_numbers<[1], [0], [0], [1], [0, 0, 1, 1], [], []>} : vector<48x28xbf16>, vector<28x240xbf16>, vector<48x240xf32> -> vector<48x240xf32>
    %7 = arith.addf %0, %6 : vector<48x240xf32>
    %c0_6 = arith.constant 0 : index
    %c1 = arith.constant 1 : index
    %c0_7 = arith.constant 0 : index
    %8 = vector.load %arg1[%c0_6, %c1, %c0_7] : memref<2x28x28xf32, #tpu.memory_space<vmem>>, vector<2x24x28xf32>
    %9 = arith.truncf %8 : vector<2x24x28xf32> to vector<2x24x28xbf16>
    %10 = vector.shape_cast %9 : vector<2x24x28xbf16> to vector<48x28xbf16>
    %c1_8 = arith.constant 1 : index
    %c0_9 = arith.constant 0 : index
    %c0_10 = arith.constant 0 : index
    %11 = vector.load %arg2[%c1_8, %c0_9, %c0_10] : memref<5x28x240xbf16, #tpu.memory_space<vmem>>, vector<1x28x240xbf16>
    %12 = vector.shape_cast %11 : vector<1x28x240xbf16> to vector<28x240xbf16>
    %cst_11 = arith.constant dense<0.000000e+00> : vector<48x240xf32>
    %13 = tpu.matmul %10, %12, %cst_11 {dimension_numbers = #tpu.dot_dimension_numbers<[1], [0], [0], [1], [0, 0, 1, 1], [], []>} : vector<48x28xbf16>, vector<28x240xbf16>, vector<48x240xf32> -> vector<48x240xf32>
    %14 = arith.addf %7, %13 : vector<48x240xf32>
    %c0_12 = arith.constant 0 : index
    %c2 = arith.constant 2 : index
    %c0_13 = arith.constant 0 : index
    %15 = vector.load %arg1[%c0_12, %c2, %c0_13] : memref<2x28x28xf32, #tpu.memory_space<vmem>>, vector<2x24x28xf32>
    %16 = arith.truncf %15 : vector<2x24x28xf32> to vector<2x24x28xbf16>
    %17 = vector.shape_cast %16 : vector<2x24x28xbf16> to vector<48x28xbf16>
    %c2_14 = arith.constant 2 : index
    %c0_15 = arith.constant 0 : index
    %c0_16 = arith.constant 0 : index
    %18 = vector.load %arg2[%c2_14, %c0_15, %c0_16] : memref<5x28x240xbf16, #tpu.memory_space<vmem>>, vector<1x28x240xbf16>
    %19 = vector.shape_cast %18 : vector<1x28x240xbf16> to vector<28x240xbf16>
    %cst_17 = arith.constant dense<0.000000e+00> : vector<48x240xf32>
    %20 = tpu.matmul %17, %19, %cst_17 {dimension_numbers = #tpu.dot_dimension_numbers<[1], [0], [0], [1], [0, 0, 1, 1], [], []>} : vector<48x28xbf16>, vector<28x240xbf16>, vector<48x240xf32> -> vector<48x240xf32>
    %21 = arith.addf %14, %20 : vector<48x240xf32>
    %c0_18 = arith.constant 0 : index
    %c3 = arith.constant 3 : index
    %c0_19 = arith.constant 0 : index
    %22 = vector.load %arg1[%c0_18, %c3, %c0_19] : memref<2x28x28xf32, #tpu.memory_space<vmem>>, vector<2x24x28xf32>
    %23 = arith.truncf %22 : vector<2x24x28xf32> to vector<2x24x28xbf16>
    %24 = vector.shape_cast %23 : vector<2x24x28xbf16> to vector<48x28xbf16>
    %c3_20 = arith.constant 3 : index
    %c0_21 = arith.constant 0 : index
    %c0_22 = arith.constant 0 : index
    %25 = vector.load %arg2[%c3_20, %c0_21, %c0_22] : memref<5x28x240xbf16, #tpu.memory_space<vmem>>, vector<1x28x240xbf16>
    %26 = vector.shape_cast %25 : vector<1x28x240xbf16> to vector<28x240xbf16>
    %cst_23 = arith.constant dense<0.000000e+00> : vector<48x240xf32>
    %27 = tpu.matmul %24, %26, %cst_23 {dimension_numbers = #tpu.dot_dimension_numbers<[1], [0], [0], [1], [0, 0, 1, 1], [], []>} : vector<48x28xbf16>, vector<28x240xbf16>, vector<48x240xf32> -> vector<48x240xf32>
    %28 = arith.addf %21, %27 : vector<48x240xf32>
    %c0_24 = arith.constant 0 : index
    %c4 = arith.constant 4 : index
    %c0_25 = arith.constant 0 : index
    %29 = vector.load %arg1[%c0_24, %c4, %c0_25] : memref<2x28x28xf32, #tpu.memory_space<vmem>>, vector<2x24x28xf32>
    %30 = arith.truncf %29 : vector<2x24x28xf32> to vector<2x24x28xbf16>
    %31 = vector.shape_cast %30 : vector<2x24x28xbf16> to vector<48x28xbf16>
    %c4_26 = arith.constant 4 : index
    %c0_27 = arith.constant 0 : index
    %c0_28 = arith.constant 0 : index
    %32 = vector.load %arg2[%c4_26, %c0_27, %c0_28] : memref<5x28x240xbf16, #tpu.memory_space<vmem>>, vector<1x28x240xbf16>
    %33 = vector.shape_cast %32 : vector<1x28x240xbf16> to vector<28x240xbf16>
    %cst_29 = arith.constant dense<0.000000e+00> : vector<48x240xf32>
    %34 = tpu.matmul %31, %33, %cst_29 {dimension_numbers = #tpu.dot_dimension_numbers<[1], [0], [0], [1], [0, 0, 1, 1], [], []>} : vector<48x28xbf16>, vector<28x240xbf16>, vector<48x240xf32> -> vector<48x240xf32>
    %35 = arith.addf %28, %34 : vector<48x240xf32>
    %c0_30 = arith.constant 0 : index
    %c0_31 = arith.constant 0 : index
    %36 = vector.load %arg3[%c0_30, %c0_31] : memref<1x240xf32, #tpu.memory_space<vmem>>, vector<1x240xf32>
    %37 = vector.broadcast %36 : vector<1x240xf32> to vector<48x240xf32>
    %38 = arith.addf %35, %37 : vector<48x240xf32>
    %39 = vector.extract_strided_slice %38 {offsets = [0, 0], sizes = [48, 230], strides = [1, 1]} : vector<48x240xf32> to vector<48x230xf32>
    %40 = vector.extract_strided_slice %38 {offsets = [0, 10], sizes = [48, 230], strides = [1, 1]} : vector<48x240xf32> to vector<48x230xf32>
    %41 = arith.maximumf %39, %40 : vector<48x230xf32>
    %42 = vector.shape_cast %41 : vector<48x230xf32> to vector<2x12x2x230xf32>
    %43 = vector.extract_strided_slice %42 {offsets = [0, 0, 0, 0], sizes = [2, 12, 1, 230], strides = [1, 1, 1, 1]} : vector<2x12x2x230xf32> to vector<2x12x1x230xf32>
    %44 = vector.shape_cast %43 : vector<2x12x1x230xf32> to vector<2x12x230xf32>
    %45 = vector.extract_strided_slice %42 {offsets = [0, 0, 1, 0], sizes = [2, 12, 1, 230], strides = [1, 1, 1, 1]} : vector<2x12x2x230xf32> to vector<2x12x1x230xf32>
    %46 = vector.shape_cast %45 : vector<2x12x1x230xf32> to vector<2x12x230xf32>
    %47 = arith.maximumf %44, %46 : vector<2x12x230xf32>
    %cst_32 = arith.constant 0.000000e+00 : f32
    %48 = vector.broadcast %cst_32 : f32 to vector<2x12x230xf32>
    %49 = arith.maximumf %47, %48 : vector<2x12x230xf32>
    %50 = arith.truncf %49 : vector<2x12x230xf32> to vector<2x12x230xbf16>
    %cst_33 = arith.constant 0.000000e+00 : f32
    %51 = vector.broadcast %cst_33 : f32 to vector<16x160xf32>
    %52 = vector.extract_strided_slice %50 {offsets = [0, 0, 0], sizes = [2, 8, 230], strides = [1, 1, 1]} : vector<2x12x230xbf16> to vector<2x8x230xbf16>
    %53 = vector.shape_cast %52 : vector<2x8x230xbf16> to vector<16x230xbf16>
    %c0_34 = arith.constant 0 : index
    %c0_35 = arith.constant 0 : index
    %c0_36 = arith.constant 0 : index
    %54 = vector.load %arg4[%c0_34, %c0_35, %c0_36] : memref<5x230x160xbf16, #tpu.memory_space<vmem>>, vector<1x230x160xbf16>
    %55 = vector.shape_cast %54 : vector<1x230x160xbf16> to vector<230x160xbf16>
    %cst_37 = arith.constant dense<0.000000e+00> : vector<16x160xf32>
    %56 = tpu.matmul %53, %55, %cst_37 {dimension_numbers = #tpu.dot_dimension_numbers<[1], [0], [0], [1], [0, 0, 1, 1], [], []>} : vector<16x230xbf16>, vector<230x160xbf16>, vector<16x160xf32> -> vector<16x160xf32>
    %57 = arith.addf %51, %56 : vector<16x160xf32>
    %58 = vector.extract_strided_slice %50 {offsets = [0, 1, 0], sizes = [2, 8, 230], strides = [1, 1, 1]} : vector<2x12x230xbf16> to vector<2x8x230xbf16>
    %59 = vector.shape_cast %58 : vector<2x8x230xbf16> to vector<16x230xbf16>
    %c1_38 = arith.constant 1 : index
    %c0_39 = arith.constant 0 : index
    %c0_40 = arith.constant 0 : index
    %60 = vector.load %arg4[%c1_38, %c0_39, %c0_40] : memref<5x230x160xbf16, #tpu.memory_space<vmem>>, vector<1x230x160xbf16>
    %61 = vector.shape_cast %60 : vector<1x230x160xbf16> to vector<230x160xbf16>
    %cst_41 = arith.constant dense<0.000000e+00> : vector<16x160xf32>
    %62 = tpu.matmul %59, %61, %cst_41 {dimension_numbers = #tpu.dot_dimension_numbers<[1], [0], [0], [1], [0, 0, 1, 1], [], []>} : vector<16x230xbf16>, vector<230x160xbf16>, vector<16x160xf32> -> vector<16x160xf32>
    %63 = arith.addf %57, %62 : vector<16x160xf32>
    %64 = vector.extract_strided_slice %50 {offsets = [0, 2, 0], sizes = [2, 8, 230], strides = [1, 1, 1]} : vector<2x12x230xbf16> to vector<2x8x230xbf16>
    %65 = vector.shape_cast %64 : vector<2x8x230xbf16> to vector<16x230xbf16>
    %c2_42 = arith.constant 2 : index
    %c0_43 = arith.constant 0 : index
    %c0_44 = arith.constant 0 : index
    %66 = vector.load %arg4[%c2_42, %c0_43, %c0_44] : memref<5x230x160xbf16, #tpu.memory_space<vmem>>, vector<1x230x160xbf16>
    %67 = vector.shape_cast %66 : vector<1x230x160xbf16> to vector<230x160xbf16>
    %cst_45 = arith.constant dense<0.000000e+00> : vector<16x160xf32>
    %68 = tpu.matmul %65, %67, %cst_45 {dimension_numbers = #tpu.dot_dimension_numbers<[1], [0], [0], [1], [0, 0, 1, 1], [], []>} : vector<16x230xbf16>, vector<230x160xbf16>, vector<16x160xf32> -> vector<16x160xf32>
    %69 = arith.addf %63, %68 : vector<16x160xf32>
    %70 = vector.extract_strided_slice %50 {offsets = [0, 3, 0], sizes = [2, 8, 230], strides = [1, 1, 1]} : vector<2x12x230xbf16> to vector<2x8x230xbf16>
    %71 = vector.shape_cast %70 : vector<2x8x230xbf16> to vector<16x230xbf16>
    %c3_46 = arith.constant 3 : index
    %c0_47 = arith.constant 0 : index
    %c0_48 = arith.constant 0 : index
    %72 = vector.load %arg4[%c3_46, %c0_47, %c0_48] : memref<5x230x160xbf16, #tpu.memory_space<vmem>>, vector<1x230x160xbf16>
    %73 = vector.shape_cast %72 : vector<1x230x160xbf16> to vector<230x160xbf16>
    %cst_49 = arith.constant dense<0.000000e+00> : vector<16x160xf32>
    %74 = tpu.matmul %71, %73, %cst_49 {dimension_numbers = #tpu.dot_dimension_numbers<[1], [0], [0], [1], [0, 0, 1, 1], [], []>} : vector<16x230xbf16>, vector<230x160xbf16>, vector<16x160xf32> -> vector<16x160xf32>
    %75 = arith.addf %69, %74 : vector<16x160xf32>
    %76 = vector.extract_strided_slice %50 {offsets = [0, 4, 0], sizes = [2, 8, 230], strides = [1, 1, 1]} : vector<2x12x230xbf16> to vector<2x8x230xbf16>
    %77 = vector.shape_cast %76 : vector<2x8x230xbf16> to vector<16x230xbf16>
    %c4_50 = arith.constant 4 : index
    %c0_51 = arith.constant 0 : index
    %c0_52 = arith.constant 0 : index
    %78 = vector.load %arg4[%c4_50, %c0_51, %c0_52] : memref<5x230x160xbf16, #tpu.memory_space<vmem>>, vector<1x230x160xbf16>
    %79 = vector.shape_cast %78 : vector<1x230x160xbf16> to vector<230x160xbf16>
    %cst_53 = arith.constant dense<0.000000e+00> : vector<16x160xf32>
    %80 = tpu.matmul %77, %79, %cst_53 {dimension_numbers = #tpu.dot_dimension_numbers<[1], [0], [0], [1], [0, 0, 1, 1], [], []>} : vector<16x230xbf16>, vector<230x160xbf16>, vector<16x160xf32> -> vector<16x160xf32>
    %81 = arith.addf %75, %80 : vector<16x160xf32>
    %c0_54 = arith.constant 0 : index
    %c0_55 = arith.constant 0 : index
    %82 = vector.load %arg5[%c0_54, %c0_55] : memref<1x160xf32, #tpu.memory_space<vmem>>, vector<1x160xf32>
    %83 = vector.broadcast %82 : vector<1x160xf32> to vector<16x160xf32>
    %84 = arith.addf %81, %83 : vector<16x160xf32>
    %85 = vector.extract_strided_slice %84 {offsets = [0, 0], sizes = [16, 140], strides = [1, 1]} : vector<16x160xf32> to vector<16x140xf32>
    %86 = vector.extract_strided_slice %84 {offsets = [0, 20], sizes = [16, 140], strides = [1, 1]} : vector<16x160xf32> to vector<16x140xf32>
    %87 = arith.maximumf %85, %86 : vector<16x140xf32>
    %88 = vector.shape_cast %87 : vector<16x140xf32> to vector<2x4x2x140xf32>
    %89 = vector.extract_strided_slice %88 {offsets = [0, 0, 0, 0], sizes = [2, 4, 1, 140], strides = [1, 1, 1, 1]} : vector<2x4x2x140xf32> to vector<2x4x1x140xf32>
    %90 = vector.shape_cast %89 : vector<2x4x1x140xf32> to vector<2x4x140xf32>
    %91 = vector.extract_strided_slice %88 {offsets = [0, 0, 1, 0], sizes = [2, 4, 1, 140], strides = [1, 1, 1, 1]} : vector<2x4x2x140xf32> to vector<2x4x1x140xf32>
    %92 = vector.shape_cast %91 : vector<2x4x1x140xf32> to vector<2x4x140xf32>
    %93 = arith.maximumf %90, %92 : vector<2x4x140xf32>
    %cst_56 = arith.constant 0.000000e+00 : f32
    %94 = vector.broadcast %cst_56 : f32 to vector<2x4x140xf32>
    %95 = arith.maximumf %93, %94 : vector<2x4x140xf32>
    %96 = arith.truncf %95 : vector<2x4x140xf32> to vector<2x4x140xbf16>
    %cst_57 = arith.constant 0.000000e+00 : f32
    %97 = vector.broadcast %cst_57 : f32 to vector<2x50xf32>
    %98 = vector.extract_strided_slice %96 {offsets = [0, 0, 0], sizes = [2, 1, 140], strides = [1, 1, 1]} : vector<2x4x140xbf16> to vector<2x1x140xbf16>
    %99 = vector.shape_cast %98 : vector<2x1x140xbf16> to vector<2x140xbf16>
    %c0_58 = arith.constant 0 : index
    %c0_59 = arith.constant 0 : index
    %c0_60 = arith.constant 0 : index
    %100 = vector.load %arg6[%c0_58, %c0_59, %c0_60] : memref<4x140x50xbf16, #tpu.memory_space<vmem>>, vector<1x140x50xbf16>
    %101 = vector.shape_cast %100 : vector<1x140x50xbf16> to vector<140x50xbf16>
    %cst_61 = arith.constant dense<0.000000e+00> : vector<2x50xf32>
    %102 = tpu.matmul %99, %101, %cst_61 {dimension_numbers = #tpu.dot_dimension_numbers<[1], [0], [0], [1], [0, 0, 1, 1], [], []>} : vector<2x140xbf16>, vector<140x50xbf16>, vector<2x50xf32> -> vector<2x50xf32>
    %103 = arith.addf %97, %102 : vector<2x50xf32>
    %104 = vector.extract_strided_slice %96 {offsets = [0, 1, 0], sizes = [2, 1, 140], strides = [1, 1, 1]} : vector<2x4x140xbf16> to vector<2x1x140xbf16>
    %105 = vector.shape_cast %104 : vector<2x1x140xbf16> to vector<2x140xbf16>
    %c1_62 = arith.constant 1 : index
    %c0_63 = arith.constant 0 : index
    %c0_64 = arith.constant 0 : index
    %106 = vector.load %arg6[%c1_62, %c0_63, %c0_64] : memref<4x140x50xbf16, #tpu.memory_space<vmem>>, vector<1x140x50xbf16>
    %107 = vector.shape_cast %106 : vector<1x140x50xbf16> to vector<140x50xbf16>
    %cst_65 = arith.constant dense<0.000000e+00> : vector<2x50xf32>
    %108 = tpu.matmul %105, %107, %cst_65 {dimension_numbers = #tpu.dot_dimension_numbers<[1], [0], [0], [1], [0, 0, 1, 1], [], []>} : vector<2x140xbf16>, vector<140x50xbf16>, vector<2x50xf32> -> vector<2x50xf32>
    %109 = arith.addf %103, %108 : vector<2x50xf32>
    %110 = vector.extract_strided_slice %96 {offsets = [0, 2, 0], sizes = [2, 1, 140], strides = [1, 1, 1]} : vector<2x4x140xbf16> to vector<2x1x140xbf16>
    %111 = vector.shape_cast %110 : vector<2x1x140xbf16> to vector<2x140xbf16>
    %c2_66 = arith.constant 2 : index
    %c0_67 = arith.constant 0 : index
    %c0_68 = arith.constant 0 : index
    %112 = vector.load %arg6[%c2_66, %c0_67, %c0_68] : memref<4x140x50xbf16, #tpu.memory_space<vmem>>, vector<1x140x50xbf16>
    %113 = vector.shape_cast %112 : vector<1x140x50xbf16> to vector<140x50xbf16>
    %cst_69 = arith.constant dense<0.000000e+00> : vector<2x50xf32>
    %114 = tpu.matmul %111, %113, %cst_69 {dimension_numbers = #tpu.dot_dimension_numbers<[1], [0], [0], [1], [0, 0, 1, 1], [], []>} : vector<2x140xbf16>, vector<140x50xbf16>, vector<2x50xf32> -> vector<2x50xf32>
    %115 = arith.addf %109, %114 : vector<2x50xf32>
    %116 = vector.extract_strided_slice %96 {offsets = [0, 3, 0], sizes = [2, 1, 140], strides = [1, 1, 1]} : vector<2x4x140xbf16> to vector<2x1x140xbf16>
    %117 = vector.shape_cast %116 : vector<2x1x140xbf16> to vector<2x140xbf16>
    %c3_70 = arith.constant 3 : index
    %c0_71 = arith.constant 0 : index
    %c0_72 = arith.constant 0 : index
    %118 = vector.load %arg6[%c3_70, %c0_71, %c0_72] : memref<4x140x50xbf16, #tpu.memory_space<vmem>>, vector<1x140x50xbf16>
    %119 = vector.shape_cast %118 : vector<1x140x50xbf16> to vector<140x50xbf16>
    %cst_73 = arith.constant dense<0.000000e+00> : vector<2x50xf32>
    %120 = tpu.matmul %117, %119, %cst_73 {dimension_numbers = #tpu.dot_dimension_numbers<[1], [0], [0], [1], [0, 0, 1, 1], [], []>} : vector<2x140xbf16>, vector<140x50xbf16>, vector<2x50xf32> -> vector<2x50xf32>
    %121 = arith.addf %115, %120 : vector<2x50xf32>
    %c0_74 = arith.constant 0 : index
    %c0_75 = arith.constant 0 : index
    %122 = vector.load %arg7[%c0_74, %c0_75] : memref<1x50xf32, #tpu.memory_space<vmem>>, vector<1x50xf32>
    %123 = vector.broadcast %122 : vector<1x50xf32> to vector<2x50xf32>
    %124 = arith.addf %121, %123 : vector<2x50xf32>
    %cst_76 = arith.constant 0.000000e+00 : f32
    %125 = vector.broadcast %cst_76 : f32 to vector<2x50xf32>
    %126 = arith.maximumf %124, %125 : vector<2x50xf32>
    %127 = arith.truncf %126 : vector<2x50xf32> to vector<2x50xbf16>
    %c0_77 = arith.constant 0 : index
    %c0_78 = arith.constant 0 : index
    %128 = vector.load %arg8[%c0_77, %c0_78] : memref<50x10xbf16, #tpu.memory_space<vmem>>, vector<50x10xbf16>
    %cst_79 = arith.constant dense<0.000000e+00> : vector<2x10xf32>
    %129 = tpu.matmul %127, %128, %cst_79 {dimension_numbers = #tpu.dot_dimension_numbers<[1], [0], [0], [1], [0, 0, 1, 1], [], []>} : vector<2x50xbf16>, vector<50x10xbf16>, vector<2x10xf32> -> vector<2x10xf32>
    %c0_80 = arith.constant 0 : index
    %c0_81 = arith.constant 0 : index
    %130 = vector.load %arg9[%c0_80, %c0_81] : memref<1x10xf32, #tpu.memory_space<vmem>>, vector<1x10xf32>
    %131 = vector.broadcast %130 : vector<1x10xf32> to vector<2x10xf32>
    %132 = arith.addf %129, %131 : vector<2x10xf32>
    %cst_82 = arith.constant dense<0xFF800000> : vector<2xf32>
    %133 = vector.multi_reduction <maximumf>, %132, %cst_82 [1] : vector<2x10xf32> to vector<2xf32>
    %134 = vector.shape_cast %133 : vector<2xf32> to vector<2x1xf32>
    %135 = vector.broadcast %134 : vector<2x1xf32> to vector<2x10xf32>
    %136 = arith.subf %132, %135 : vector<2x10xf32>
    %137 = math.exp %136 : vector<2x10xf32>
    %cst_83 = arith.constant dense<0.000000e+00> : vector<2xf32>
    %138 = vector.multi_reduction <add>, %137, %cst_83 [1] : vector<2x10xf32> to vector<2xf32>
    %139 = vector.shape_cast %138 : vector<2xf32> to vector<2x1xf32>
    %140 = math.log %139 : vector<2x1xf32>
    %141 = vector.broadcast %140 : vector<2x1xf32> to vector<2x10xf32>
    %142 = arith.subf %136, %141 : vector<2x10xf32>
    %c0_84 = arith.constant 0 : index
    %c0_85 = arith.constant 0 : index
    %c0_86 = arith.constant 0 : index
    %143 = vector.load %arg10[%c0_84, %c0_85, %c0_86] : memref<2x1x10xf32, #tpu.memory_space<vmem>>, vector<2x1x10xf32>
    %144 = vector.shape_cast %143 : vector<2x1x10xf32> to vector<2x10xf32>
    %145 = vector.shape_cast %142 : vector<2x10xf32> to vector<2x1x10xf32>
    tpu.vector_store %arg10[%c0_84, %c0_85, %c0_86], %145 {strides = array<i32>} : memref<2x1x10xf32, #tpu.memory_space<vmem>>, vector<2x1x10xf32>,
    return
  }
  func.func @transform_0(%arg0: i32) -> (i32, i32, i32) {
    %c0_i32 = arith.constant 0 : i32
    %c0_i32_0 = arith.constant 0 : i32
    %c0_i32_1 = arith.constant 0 : i32
    return %arg0, %c0_i32, %c0_i32_0 : i32, i32, i32
  }
  func.func @transform_1(%arg0: i32) -> (i32, i32, i32) {
    %c0_i32 = arith.constant 0 : i32
    %c0_i32_0 = arith.constant 0 : i32
    %c0_i32_1 = arith.constant 0 : i32
    %c0_i32_2 = arith.constant 0 : i32
    return %c0_i32, %c0_i32_0, %c0_i32_1 : i32, i32, i32
  }
  func.func @transform_2(%arg0: i32) -> (i32, i32) {
    %c0_i32 = arith.constant 0 : i32
    %c0_i32_0 = arith.constant 0 : i32
    %c0_i32_1 = arith.constant 0 : i32
    return %c0_i32, %c0_i32_0 : i32, i32
  }
  func.func @transform_3(%arg0: i32) -> (i32, i32, i32) {
    %c0_i32 = arith.constant 0 : i32
    %c0_i32_0 = arith.constant 0 : i32
    %c0_i32_1 = arith.constant 0 : i32
    %c0_i32_2 = arith.constant 0 : i32
    return %c0_i32, %c0_i32_0, %c0_i32_1 : i32, i32, i32
  }
  func.func @transform_4(%arg0: i32) -> (i32, i32) {
    %c0_i32 = arith.constant 0 : i32
    %c0_i32_0 = arith.constant 0 : i32
    %c0_i32_1 = arith.constant 0 : i32
    return %c0_i32, %c0_i32_0 : i32, i32
  }
  func.func @transform_5(%arg0: i32) -> (i32, i32, i32) {
    %c0_i32 = arith.constant 0 : i32
    %c0_i32_0 = arith.constant 0 : i32
    %c0_i32_1 = arith.constant 0 : i32
    %c0_i32_2 = arith.constant 0 : i32
    return %c0_i32, %c0_i32_0, %c0_i32_1 : i32, i32, i32
  }
  func.func @transform_6(%arg0: i32) -> (i32, i32) {
    %c0_i32 = arith.constant 0 : i32
    %c0_i32_0 = arith.constant 0 : i32
    %c0_i32_1 = arith.constant 0 : i32
    return %c0_i32, %c0_i32_0 : i32, i32
  }
  func.func @transform_7(%arg0: i32) -> (i32, i32) {
    %c0_i32 = arith.constant 0 : i32
    %c0_i32_0 = arith.constant 0 : i32
    %c0_i32_1 = arith.constant 0 : i32
    return %c0_i32, %c0_i32_0 : i32, i32
  }
  func.func @transform_8(%arg0: i32) -> (i32, i32) {
    %c0_i32 = arith.constant 0 : i32
    %c0_i32_0 = arith.constant 0 : i32
    %c0_i32_1 = arith.constant 0 : i32
    return %c0_i32, %c0_i32_0 : i32, i32
  }
  func.func @transform_9(%arg0: i32) -> (i32, i32, i32) {
    %c0_i32 = arith.constant 0 : i32
    %c0_i32_0 = arith.constant 0 : i32
    %c0_i32_1 = arith.constant 0 : i32
    return %arg0, %c0_i32, %c0_i32_0 : i32, i32, i32
  }
}

</mosaic_0001>

<bundles_post_ra>
// kernel: tile.13
= control target key start
LH: loop header
LB: loop body
LE: loop exit
PB: predicated region body
PF: predicated region fallthrough
CT: control target
= control target key end

     0   :  { %s34_s0 = inlined_call_operand.vmem [shape: f32[10], index: 0, kind: input, shape index: {}]   ;;  %s35_s1 = inlined_call_operand.vmem [shape: f32[24,10], index: 1, kind: output, shape index: {}]  }
   0x1   :  { %v4_v0 = vld [vmem:[%s34_s0] ss:$0 sm:$0xff] }
   0x2   :  { %5 = vst [vmem:[%s35_s1] sm:$0xff] %v4_v0  ;;  %10 = vst [vmem:[%s35_s1 + $0x8] sm:$0xff] %v4_v0 }
   0x3   :  { %11 = vst [vmem:[%s35_s1 + $0x10] sm:$0xff] %v4_v0 }

// kernel: tile.14
= control target key start
LH: loop header
LB: loop body
LE: loop exit
PB: predicated region body
PF: predicated region fallthrough
CT: control target
= control target key end

     0   :  { %vm9_vm0 = vcmask 64512   ;;  %s223_s12 = smov 120   ;;  %s224_s13 = smov 102   ;;  %vm3_vm1 = vcmask 80896   ;;  %vm13_vm2 = vcmask 15360   ;;  %vm16_vm3 = vcmask 1048512   ;;  %s337_s0 = inlined_call_operand.vmem [shape: f32[24,10], index: 0, kind: input, shape index: {}]   ;;  %s338_s1 = inlined_call_operand.vmem [shape: f32[1,240], index: 1, kind: output, shape index: {}]  }
   0x1   :  { %v175_v0 = vld [vmem:[%s337_s0 + $0xc] sm:$0x1]   ;;  %v178_v3 = vld [vmem:[%s337_s0 + $0x17] sm:$0x1]   ;;  %v177_v4 = vld [vmem:[%s337_s0 + $0xb] sm:$0x1]  }
   0x2   :  { %v176_v1 = vld [vmem:[%s337_s0 + $0xc] sm:$0x1]   ;;  %26 = vrot.lane.b32.xlu1 %v178_v3, %s224_s13  ;;  %v179_v5 = vld [vmem:[%s337_s0 + $0xa] sm:$0x1]   ;;  %s225_s18 = smov 110   ;;  %s226_s19 = smov 100  }
   0x3   :  { %v10_v2 = vsel %vm9_vm0, %v176_v1, %v175_v0  ;;  %v180_v6 = vld [vmem:[%s337_s0 + $0x16] sm:$0x1]   ;;  %v181_v7 = vld [vmem:[%s337_s0 + $0x9] sm:$0x1]   ;;  %s227_s24 = smov 92   ;;  %s228_s25 = smov 90  }
   0x4   :  { %11 = vrot.lane.b32.xlu0 %v10_v2, %s223_s12  ;;  %v182_v8 = vld [vmem:[%s337_s0 + $0x15] sm:$0x1]   ;;  %v183_v9 = vld [vmem:[%s337_s0 + $0x8] sm:$0x1]   ;;  %v2_v10 = vld [vmem:[%s337_s0] sm:$0x1]  }
   0x5   :  { %4 = vst.msk [vmem:[#allocation0] sm:$0x1] %vm3_vm1, %v2_v10   ;;  %s229_s3 = smov 82   ;;  %s230_s4 = smov 80   ;;  %v184_v11 = vld [vmem:[%s337_s0 + $0x14] sm:$0x1]  }
   0x6   :  { %33 = vrot.lane.b32.xlu1 %v179_v5, %s226_s19  ;;  %v185_v12 = vld [vmem:[%s337_s0 + $0x7] sm:$0x1]   ;;  %s231_s9 = smov 72   ;;  %s232_s10 = smov 70   ;;  %v186_v13 = vld [vmem:[%s337_s0 + $0x13] sm:$0x1]  }
   0x7   :  { %v187_v14 = vld [vmem:[%s337_s0 + $0x6] sm:$0x1]   ;;  %s233_s15 = smov 62   ;;  %s234_s16 = smov 60   ;;  %v188_v15 = vld [vmem:[%s337_s0 + $0x12] sm:$0x1]  }
   0x8   :  { %20 = vrot.lane.b32.xlu0 %v177_v4, %s225_s18  ;;  %v189_v16 = vld [vmem:[%s337_s0 + $0x5] sm:$0x1]   ;;  %s235_s21 = smov 52   ;;  %s236_s22 = smov 50   ;;  %v190_v17 = vld [vmem:[%s337_s0 + $0x11] sm:$0x1]  }
   0x9   :  { %v191_v18 = vld [vmem:[%s337_s0 + $0x4] sm:$0x1]   ;;  %s237_s27 = smov 42   ;;  %s238_s28 = smov 40   ;;  %v192_v19 = vld [vmem:[%s337_s0 + $0x10] sm:$0x1]  }
   0xa   :  { %46 = vrot.lane.b32.xlu1 %v181_v7, %s228_s25  ;;  %v193_v20 = vld [vmem:[%s337_s0 + $0x3] sm:$0x1]   ;;  %s240_s5 = smov 30   ;;  %v194_v21 = vld [vmem:[%s337_s0 + $0xf] sm:$0x1]   ;;  %s242_s11 = smov 20  }
   0xb   :  { %v195_v22 = vld [vmem:[%s337_s0 + $0x2] sm:$0x1]   ;;  %v196_v23 = vld [vmem:[%s337_s0 + $0xe] sm:$0x1]   ;;  %v197_v24 = vld [vmem:[%s337_s0 + $0x1] sm:$0x1]  }
   0xc   :  { %39 = vrot.lane.b32.xlu0 %v180_v6, %s227_s24  ;;  %s244_s17 = smov 10   ;;  %v198_v25 = vld [vmem:[%s337_s0 + $0xd] sm:$0x1]   ;;  %s245_s0 = smov 2   ;;  %vm28_vm4 = vcmask 917296   ;;  %vm22_vm5 = vcmask 982896  }
   0xd   :  { %vm35_vm6 = vcmask 900896   ;;  %vm41_vm7 = vcmask 835296   ;;  %vm48_vm8 = vcmask 818896   ;;  %vm54_vm9 = vcmask 753296  }
   0xe   :  { %59 = vrot.lane.b32.xlu1 %v183_v9, %s230_s4  ;;  %s239_s4 = smov 32   ;;  %vm61_vm10 = vcmask 736896   ;;  %vm67_vm11 = vcmask 671296   ;;  %vm74_vm12 = vcmask 654896   ;;  %vm80_vm13 = vcmask 589296  }
   0xf   :  { %vm87_vm14 = vcmask 572896   ;;  %vm93_vm15 = vcmask 507296   ;;  %vm100_vm0 = vcmask 490896   ;;  %vm106_vm1 = vcmask 425296  }
  0x10   :  { %52 = vrot.lane.b32.xlu0 %v182_v8, %s229_s3 }
  0x12   :  { %72 = vrot.lane.b32.xlu1 %v185_v12, %s232_s10  ;;  %s241_s10 = smov 22  }
  0x14   :  { %65 = vrot.lane.b32.xlu0 %v184_v11, %s231_s9 }
  0x16   :  { %85 = vrot.lane.b32.xlu1 %v187_v14, %s234_s16  ;;  %s243_s16 = smov 12  }
  0x18   :  { %78 = vrot.lane.b32.xlu0 %v186_v13, %s233_s15 }
  0x1a   :  { %98 = vrot.lane.b32.xlu1 %v189_v16, %s236_s22 }
  0x1c   :  { %91 = vrot.lane.b32.xlu0 %v188_v15, %s235_s21 }
  0x1e   :  { %111 = vrot.lane.b32.xlu1 %v191_v18, %s238_s28 }
  0x20   :  { %104 = vrot.lane.b32.xlu0 %v190_v17, %s237_s27 }
  0x22   :  { %124 = vrot.lane.b32.xlu1 %v193_v20, %s240_s5 }
  0x24   :  { %117 = vrot.lane.b32.xlu0 %v192_v19, %s239_s4 }
  0x26   :  { %137 = vrot.lane.b32.xlu1 %v195_v22, %s242_s11 }
  0x28   :  { %130 = vrot.lane.b32.xlu0 %v194_v21, %s241_s10 }
  0x2a   :  { %150 = vrot.lane.b32.xlu1 %v197_v24, %s244_s17 }
  0x2c   :  { %143 = vrot.lane.b32.xlu0 %v196_v23, %s243_s16 }
  0x30   :  { %156 = vrot.lane.b32.xlu0 %v198_v25, %s245_s0 }
  0x74   :  { %v27_v27 = vpop.permute.xlu1 %26  }
  0x76   :  { %v12_v26 = vpop.permute.xlu0 %11  }
  0x77   :  { %15 = vst.msk [vmem:[#allocation0 + $0x8] sm:$0x1] %vm13_vm2, %v12_v26   ;;  %vm113_vm2 = vcmask 408896  }
  0x78   :  { %17 = vst.msk [vmem:[#allocation0] sm:$0x1] %vm16_vm3, %v12_v26   ;;  %v34_v29 = vpop.permute.xlu1 %33   ;;  %vm119_vm3 = vcmask 343296  }
  0x79   :  { %30 = vst.msk [vmem:[#allocation0 + $0x8] sm:$0x1] %vm28_vm4, %v27_v27   ;;  %vm126_vm4 = vcmask 326896  }
  0x7a   :  { %v21_v28 = vpop.permute.xlu0 %20  }
  0x7b   :  { %23 = vst.msk [vmem:[#allocation0] sm:$0x1] %vm22_vm5, %v21_v28   ;;  %vm132_vm5 = vcmask 261296  }
  0x7c   :  { %36 = vst.msk [vmem:[#allocation0] sm:$0x1] %vm35_vm6, %v34_v29   ;;  %v47_v31 = vpop.permute.xlu1 %46   ;;  %vm139_vm6 = vcmask 244896  }
  0x7d   :  { %49 = vst.msk [vmem:[#allocation0] sm:$0x1] %vm48_vm8, %v47_v31   ;;  %vm152_vm8 = vcmask 162896  }
  0x7e   :  { %v40_v30 = vpop.permute.xlu0 %39  }
  0x7f   :  { %43 = vst.msk [vmem:[#allocation0 + $0x8] sm:$0x1] %vm41_vm7, %v40_v30   ;;  %vm145_vm7 = vcmask 179296  }
  0x80   :  { %v60_v33 = vpop.permute.xlu1 %59  }
  0x81   :  { %62 = vst.msk [vmem:[#allocation0] sm:$0x1] %vm61_vm10, %v60_v33  }
  0x82   :  { %v53_v32 = vpop.permute.xlu0 %52  }
  0x83   :  { %56 = vst.msk [vmem:[#allocation0 + $0x8] sm:$0x1] %vm54_vm9, %v53_v32   ;;  %vm158_vm9 = vcmask 97296  }
  0x84   :  { %v73_v35 = vpop.permute.xlu1 %72  }
  0x85   :  { %75 = vst.msk [vmem:[#allocation0] sm:$0x1] %vm74_vm12, %v73_v35  }
  0x86   :  { %v66_v34 = vpop.permute.xlu0 %65  }
  0x87   :  { %69 = vst.msk [vmem:[#allocation0 + $0x8] sm:$0x1] %vm67_vm11, %v66_v34  }
  0x88   :  { %v86_v37 = vpop.permute.xlu1 %85  }
  0x89   :  { %88 = vst.msk [vmem:[#allocation0] sm:$0x1] %vm87_vm14, %v86_v37  }
  0x8a   :  { %v79_v36 = vpop.permute.xlu0 %78  }
  0x8b   :  { %82 = vst.msk [vmem:[#allocation0 + $0x8] sm:$0x1] %vm80_vm13, %v79_v36  }
  0x8c   :  { %v99_v39 = vpop.permute.xlu1 %98  }
  0x8d   :  { %101 = vst.msk [vmem:[#allocation0] sm:$0x1] %vm100_vm0, %v99_v39  }
  0x8e   :  { %v92_v38 = vpop.permute.xlu0 %91  }
  0x8f   :  { %95 = vst.msk [vmem:[#allocation0 + $0x8] sm:$0x1] %vm93_vm15, %v92_v38  }
  0x90   :  { %v112_v41 = vpop.permute.xlu1 %111  }
  0x91   :  { %114 = vst.msk [vmem:[#allocation0] sm:$0x1] %vm113_vm2, %v112_v41  }
  0x92   :  { %v105_v40 = vpop.permute.xlu0 %104  }
  0x93   :  { %108 = vst.msk [vmem:[#allocation0 + $0x8] sm:$0x1] %vm106_vm1, %v105_v40  }
  0x94   :  { %v125_v43 = vpop.permute.xlu1 %124  }
  0x95   :  { %127 = vst.msk [vmem:[#allocation0] sm:$0x1] %vm126_vm4, %v125_v43  }
  0x96   :  { %v118_v42 = vpop.permute.xlu0 %117  }
  0x97   :  { %121 = vst.msk [vmem:[#allocation0 + $0x8] sm:$0x1] %vm119_vm3, %v118_v42  }
  0x98   :  { %v138_v45 = vpop.permute.xlu1 %137  }
  0x99   :  { %140 = vst.msk [vmem:[#allocation0] sm:$0x1] %vm139_vm6, %v138_v45  }
  0x9a   :  { %v131_v44 = vpop.permute.xlu0 %130  }
  0x9b   :  { %134 = vst.msk [vmem:[#allocation0 + $0x8] sm:$0x1] %vm132_vm5, %v131_v44  }
  0x9c   :  { %v151_v47 = vpop.permute.xlu1 %150  }
  0x9d   :  { %153 = vst.msk [vmem:[#allocation0] sm:$0x1] %vm152_vm8, %v151_v47  }
  0x9e   :  { %v144_v46 = vpop.permute.xlu0 %143  }
  0x9f   :  { %147 = vst.msk [vmem:[#allocation0 + $0x8] sm:$0x1] %vm145_vm7, %v144_v46  }
  0xa2   :  { %v157_v48 = vpop.permute.xlu0 %156  }
  0xa3   :  { %160 = vst.msk [vmem:[#allocation0 + $0x8] sm:$0x1] %vm158_vm9, %v157_v48  }
  0xa4   :  { %v165_v49 = vld [vmem:[#allocation0] sm:$0x1] }
  0xa5   :  { %168 = vst [vmem:[%s338_s1] sm:$0x1] %v165_v49 }
  0xaa   :  { %v170_v50 = vld [vmem:[#allocation0 + $0x8] sm:$0x1] }
  0xab   :  { %199 = vst [vmem:[%s338_s1 + $0x1] sm:$0x1] %v170_v50 }

// kernel: tile.18
= control target key start
LH: loop header
LB: loop body
LE: loop exit
PB: predicated region body
PF: predicated region fallthrough
CT: control target
= control target key end

     0   :  { %s22_s0 = inlined_call_operand.vmem [shape: f32[20], index: 0, kind: input, shape index: {}]   ;;  %s23_s1 = inlined_call_operand.vmem [shape: f32[8,20], index: 1, kind: output, shape index: {}]  }
   0x1   :  { %v4_v0 = vld [vmem:[%s22_s0] ss:$0 sm:$0xff] }
   0x2   :  { %5 = vst [vmem:[%s23_s1] sm:$0xff] %v4_v0 }

// kernel: tile.19
= control target key start
LH: loop header
LB: loop body
LE: loop exit
PB: predicated region body
PF: predicated region fallthrough
CT: control target
= control target key end

     0   :  { %vm9_vm0 = vcmask 64512   ;;  %s85_s12 = smov 120   ;;  %s86_s13 = smov 80   ;;  %vm3_vm1 = vcmask 162816   ;;  %vm13_vm2 = vcmask 97280   ;;  %vm16_vm3 = vcmask 1048512   ;;  %s135_s0 = inlined_call_operand.vmem [shape: f32[8,20], index: 0, kind: input, shape index: {}]   ;;  %s136_s1 = inlined_call_operand.vmem [shape: f32[1,160], index: 1, kind: output, shape index: {}]  }
   0x1   :  { %v69_v0 = vld [vmem:[%s135_s0 + $0x6] sm:$0x1]   ;;  %v72_v3 = vld [vmem:[%s135_s0 + $0x4] sm:$0x1]   ;;  %v71_v4 = vld [vmem:[%s135_s0 + $0x5] sm:$0x1]  }
   0x2   :  { %v70_v1 = vld [vmem:[%s135_s0 + $0x6] sm:$0x1]   ;;  %26 = vrot.lane.b32.xlu1 %v72_v3, %s86_s13  ;;  %v73_v5 = vld [vmem:[%s135_s0 + $0x3] sm:$0x1]   ;;  %v2_v6 = vld [vmem:[%s135_s0] sm:$0x1]  }
   0x3   :  { %v10_v2 = vsel %vm9_vm0, %v70_v1, %v69_v0  ;;  %4 = vst.msk [vmem:[#allocation0] sm:$0x1] %vm3_vm1, %v2_v6   ;;  %s87_s20 = smov 100   ;;  %s88_s21 = smov 60   ;;  %v74_v7 = vld [vmem:[%s135_s0 + $0x2] sm:$0x1]  }
   0x4   :  { %11 = vrot.lane.b32.xlu0 %v10_v2, %s85_s12  ;;  %v75_v8 = vld [vmem:[%s135_s0 + $0x1] sm:$0x1]   ;;  %s89_s26 = smov 40   ;;  %s90_s27 = smov 20   ;;  %v76_v9 = vld [vmem:[%s135_s0 + $0x7] sm:$0x1]  }
   0x5   :  { %s91_s0 = smov 12   ;;  %vm22_vm4 = vcmask 982816   ;;  %vm28_vm5 = vcmask 818816   ;;  %vm34_vm6 = vcmask 654816   ;;  %vm40_vm7 = vcmask 490816  }
   0x6   :  { %32 = vrot.lane.b32.xlu1 %v73_v5, %s88_s21  ;;  %vm46_vm8 = vcmask 326816   ;;  %vm52_vm9 = vcmask 261216  }
   0x8   :  { %20 = vrot.lane.b32.xlu0 %v71_v4, %s87_s20 }
   0xa   :  { %44 = vrot.lane.b32.xlu1 %v75_v8, %s90_s27 }
   0xc   :  { %38 = vrot.lane.b32.xlu0 %v74_v7, %s89_s26 }
  0x10   :  { %50 = vrot.lane.b32.xlu0 %v76_v9, %s91_s0 }
  0x74   :  { %v27_v11 = vpop.permute.xlu1 %26  }
  0x76   :  { %v12_v10 = vpop.permute.xlu0 %11  }
  0x77   :  { %15 = vst.msk [vmem:[#allocation0 + $0x8] sm:$0x1] %vm13_vm2, %v12_v10  }
  0x78   :  { %17 = vst.msk [vmem:[#allocation0] sm:$0x1] %vm16_vm3, %v12_v10   ;;  %v33_v13 = vpop.permute.xlu1 %32  }
  0x7a   :  { %v21_v12 = vpop.permute.xlu0 %20  }
  0x7b   :  { %23 = vst.msk [vmem:[#allocation0] sm:$0x1] %vm22_vm4, %v21_v12  }
  0x7c   :  { %29 = vst.msk [vmem:[#allocation0] sm:$0x1] %vm28_vm5, %v27_v11   ;;  %v45_v15 = vpop.permute.xlu1 %44  }
  0x7d   :  { %35 = vst.msk [vmem:[#allocation0] sm:$0x1] %vm34_vm6, %v33_v13  }
  0x7e   :  { %v39_v14 = vpop.permute.xlu0 %38  }
  0x7f   :  { %41 = vst.msk [vmem:[#allocation0] sm:$0x1] %vm40_vm7, %v39_v14  }
  0x80   :  { %47 = vst.msk [vmem:[#allocation0] sm:$0x1] %vm46_vm8, %v45_v15  }
  0x82   :  { %v51_v16 = vpop.permute.xlu0 %50  }
  0x83   :  { %54 = vst.msk [vmem:[#allocation0 + $0x8] sm:$0x1] %vm52_vm9, %v51_v16  }
  0x87   :  { %v59_v17 = vld [vmem:[#allocation0] sm:$0x1] }
  0x88   :  { %62 = vst [vmem:[%s136_s1] sm:$0x1] %v59_v17 }
  0x8a   :  { %v64_v18 = vld [vmem:[#allocation0 + $0x8] sm:$0x1] }
  0x8b   :  { %77 = vst [vmem:[%s136_s1 + $0x1] sm:$0x1] %v64_v18 }

// kernel: net_forward.1
= control target key start
LH: loop header
LB: loop body
LE: loop exit
PB: predicated region body
PF: predicated region fallthrough
CT: control target
= control target key end

     0   :  { %vm114_vm0 = vcmask 1045504   ;;  %v6365_v6 = vmov 0   ;;  %vm104_vm1 = vcmask 228352   ;;  %s6354_s0 = inlined_call_operand.vmem [shape: f32[2,28,28], index: 0, kind: input, shape index: {}]   ;;  %s6355_s1 = inlined_call_operand.vmem [shape: bf16[5,28,240], index: 1, kind: input, shape index: {}]   ;;  %s6356_s2 = inlined_call_operand.vmem [shape: f32[1,240], index: 2, kind: input, shape index: {}]   ;;  %s6357_s3 = inlined_call_operand.vmem [shape: bf16[5,230,160], index: 3, kind: input, shape index: {}]   ;;  %s6358_s4 = inlined_call_operand.vmem [shape: f32[1,160], index: 4, kind: input, shape index: {}]   ;;  %s6359_s5 = inlined_call_operand.vmem [shape: bf16[4,140,50], index: 5, kind: input, shape index: {}]   ;;  %s6360_s6 = inlined_call_operand.vmem [shape: f32[1,50], index: 6, kind: input, shape index: {}]   ;;  %s6361_s7 = inlined_call_operand.vmem [shape: bf16[50,10], index: 7, kind: input, shape index: {}]   ;;  %s6362_s8 = inlined_call_operand.vmem [shape: f32[1,10], index: 8, kind: input, shape index: {}]   ;;  %s6363_s9 = inlined_call_operand.hbm [shape: f32[2,1,10], index: 9, kind: output, shape index: {}]  }
   0x1   :  { %v4325_v0 = vld [vmem:[%s6355_s1 + $0x34] ss:$8 sps:$4 sm:$0x3f]   ;;  %v4327_v1 = vld [vmem:[%s6355_s1 + $0x30] ss:$8 sps:$4 sm:$0x3f]   ;;  %153 = vmatprep.mubr.bf16.mxu0 %v6365_v6  ;;  %173 = vmatprep.mubr.bf16.mxu1 %v6365_v6 }
   0x2   :  { %3828 = vmatprep.subr.msk.bf16.mxu0 %vm114_vm0, %v4325_v0  ;;  %4311 = vmatprep.subr.msk.bf16.mxu1 %vm114_vm0, %v4325_v0  ;;  %v4328_v2 = vld [vmem:[%s6355_s1 + $0x24] ss:$8 sps:$4 sm:$0xff]   ;;  %v4330_v3 = vld [vmem:[%s6355_s1 + $0x20] ss:$8 sps:$4 sm:$0xff]   ;;  %v116_v5 = vsel %vm114_vm0, %v4327_v1, 0  ;;  %v63_v10 = vld [vmem:[%s6354_s0 + $0x31] sm:$0xff] }
   0x3   :  { %v58_v4 = vld [vmem:[%s6354_s0 + $0x1] sm:$0xff]  ;;  %v59_v7 = vld [vmem:[%s6354_s0 + $0x9] sm:$0xff]  ;;  %134 = vmatpush1.bf16.msra.mxu0 %v116_v5  ;;  %4313 = vmatpush1.bf16.msra.mxu1 %v116_v5  ;;  %v67_v12 = vpack.c.bf16 %v63_v10, %v63_v10  ;;  %v4331_v13 = vld [vmem:[%s6355_s1 + $0x14] ss:$8 sps:$4 sm:$0x3f]  }
   0x4   :  { %v61_v8 = vld [vmem:[%s6354_s0 + $0x21] sm:$0xff]  ;;  %v62_v9 = vld [vmem:[%s6354_s0 + $0x29] sm:$0xff]  ;;  %135 = vmatprep.subr.bf16.mxu0 %v4328_v2  ;;  %4312 = vmatprep.subr.bf16.mxu1 %v4328_v2  ;;  %v4333_v15 = vld [vmem:[%s6355_s1 + $0x54] ss:$8 sps:$4 sm:$0x3f]   ;;  %v64_v17 = vpack.c.bf16 %v59_v7, %v58_v4 }
   0x5   :  { %v66_v11 = vpack.c.bf16 %v62_v9, %v61_v8  ;;  %v4335_v16 = vld [vmem:[%s6355_s1 + $0x10] ss:$8 sps:$4 sm:$0x3f]   ;;  %v77_v18 = vunpack.c.l.b16 %v67_v12  ;;  %v4339_v23 = vld [vmem:[%s6355_s1 + $0x4] ss:$8 sps:$4 sm:$0xff]  }
   0x6   :  { %v4336_v19 = vld [vmem:[%s6355_s1 + $0x50] ss:$8 sps:$4 sm:$0x3f]   ;;  %v215_v21 = vsel %vm114_vm0, %v4335_v16, 0  ;;  %v4337_v24 = vld [vmem:[%s6355_s1] ss:$8 sps:$4 sm:$0xff]  }
   0x7   :  { %v76_v14 = vunpack.c.h.b16 %v66_v11  ;;  %136 = vmatpush1.bf16.msra.mxu0 %v4330_v3  ;;  %4314 = vmatpush1.bf16.msra.mxu1 %v4330_v3  ;;  %v339_v22 = vsel %vm114_vm0, %v4336_v19, 0  ;;  %v4342_v25 = vld [vmem:[%s6355_s1 + $0x44] ss:$8 sps:$4 sm:$0xff]   ;;  %v60_v26 = vld [vmem:[%s6354_s0 + $0x11] sm:$0xff]  ;;  %v4340_v29 = vld [vmem:[%s6355_s1 + $0x40] ss:$8 sps:$4 sm:$0xff]  }
   0x8   :  { %3837 = vmatprep.subr.msk.bf16.mxu1 %vm114_vm0, %v4331_v13  ;;  %3850 = vmatprep.subr.msk.bf16.mxu0 %vm114_vm0, %v4333_v15  ;;  %v34_v27 = vld [vmem:[%s6354_s0] sm:$0xff]  ;;  %v35_v28 = vld [vmem:[%s6354_s0 + $0x8] sm:$0xff]  ;;  %v4343_v30 = vld [vmem:[%s6355_s1 + $0x74] ss:$8 sps:$4 sm:$0x3f]   ;;  %v4289_v32 = vpack.c.bf16 %v61_v8, %v60_v26 }
   0x9   :  { %v85_v20 = vpack.c.b16 %v77_v18, %v76_v14  ;;  %v4345_v31 = vld [vmem:[%s6355_s1 + $0x70] ss:$8 sps:$4 sm:$0x3f]   ;;  %v40_v33 = vpack.c.bf16 %v35_v28, %v34_v27  ;;  %v4346_v34 = vld [vmem:[%s6355_s1 + $0x94] ss:$8 sps:$4 sm:$0x3f]  }
   0xa   :  { %3829 = vmatmul.mubr.msk.bf16.vlgmr.msra.gmra.mxu0 %vm104_vm1, %v64_v17  ;;  %v475_v35 = vsel %vm114_vm0, %v4345_v31, 0  ;;  %v4351_v36 = vld [vmem:[%s6355_s1 + $0x64] ss:$8 sps:$4 sm:$0xff]   ;;  %v36_v37 = vld [vmem:[%s6354_s0 + $0x10] sm:$0xff]  ;;  %v4349_v44 = vld [vmem:[%s6355_s1 + $0x60] ss:$8 sps:$4 sm:$0xff]  }
   0xb   :  { %3831 = vmatmul.mubr.msk.bf16.vlgmr.msra.gmra.mxu1 %vm104_vm1, %v85_v20  ;;  %357 = vmatpush1.bf16.msra.mxu0 %v339_v22  ;;  %v37_v38 = vld [vmem:[%s6354_s0 + $0x20] sm:$0xff]  ;;  %v38_v39 = vld [vmem:[%s6354_s0 + $0x28] sm:$0xff]  ;;  %v39_v42 = vld [vmem:[%s6354_s0 + $0x30] sm:$0xff] }
   0xc   :  { %233 = vmatpush1.bf16.msra.mxu1 %v215_v21  ;;  %163 = vmatprep.mubr.bf16.mxu0 %v6365_v6  ;;  %v283_v40 = vld [vmem:[%s6354_s0 + $0x2] sm:$0xff]  ;;  %v284_v41 = vld [vmem:[%s6354_s0 + $0xa] sm:$0xff]  ;;  %v42_v45 = vpack.c.bf16 %v38_v39, %v37_v38  ;;  %v4290_v46 = vpack.c.bf16 %v37_v38, %v36_v37  ;;  %v43_v48 = vpack.c.bf16 %v39_v42, %v39_v42  ;;  %v285_v51 = vld [vmem:[%s6354_s0 + $0x12] sm:$0xff] }
   0xd   :  { %234 = vmatprep.subr.bf16.mxu1 %v4339_v23  ;;  %252 = vmatprep.mubr.bf16.mxu1 %v6365_v6  ;;  %v4348_v43 = vld [vmem:[%s6355_s1 + $0x90] ss:$8 sps:$4 sm:$0x3f]   ;;  %v289_v47 = vpack.c.bf16 %v284_v41, %v283_v40  ;;  %v4354_v49 = vld [vmem:[%s6355_s1 + $0x84] ss:$8 sps:$4 sm:$0xff]  }
   0xe   :  { %358 = vmatprep.subr.bf16.mxu0 %v4342_v25  ;;  %v611_v50 = vsel %vm114_vm0, %v4348_v43, 0  ;;  %v286_v52 = vld [vmem:[%s6354_s0 + $0x22] sm:$0xff]  ;;  %v287_v53 = vld [vmem:[%s6354_s0 + $0x2a] sm:$0xff]  ;;  %v288_v55 = vld [vmem:[%s6354_s0 + $0x32] sm:$0xff]  ;;  %v52_v56 = vunpack.c.h.b16 %v42_v45  ;;  %v53_v57 = vunpack.c.l.b16 %v43_v48 }
   0xf   :  { %359 = vmatpush1.bf16.msra.mxu0 %v4340_v29  ;;  %v4352_v54 = vld [vmem:[%s6355_s1 + $0x80] ss:$8 sps:$4 sm:$0xff]   ;;  %v291_v59 = vpack.c.bf16 %v287_v53, %v286_v52  ;;  %v4291_v60 = vpack.c.bf16 %v286_v52, %v285_v51  ;;  %v292_v61 = vpack.c.bf16 %v288_v55, %v288_v55  ;;  %v421_v4 = vld [vmem:[%s6354_s0 + $0x13] sm:$0xff] }
  0x10   :  { %235 = vmatpush1.bf16.msra.mxu1 %v4337_v24  ;;  %3876 = vmatprep.subr.msk.bf16.mxu0 %vm114_vm0, %v4346_v34  ;;  %v186_v58 = vpack.c.b16 %v53_v57, %v52_v56  ;;  %v419_v62 = vld [vmem:[%s6354_s0 + $0x3] sm:$0xff]  ;;  %v420_v63 = vld [vmem:[%s6354_s0 + $0xb] sm:$0xff]  ;;  %v424_v10 = vld [vmem:[%s6354_s0 + $0x33] sm:$0xff] }
  0x11   :  { %3863 = vmatprep.subr.msk.bf16.mxu1 %vm114_vm0, %v4343_v30  ;;  %v301_v0 = vunpack.c.h.b16 %v291_v59  ;;  %v302_v1 = vunpack.c.l.b16 %v292_v61  ;;  %v425_v3 = vpack.c.bf16 %v420_v63, %v419_v62  ;;  %v422_v5 = vld [vmem:[%s6354_s0 + $0x23] sm:$0xff]  ;;  %v423_v7 = vld [vmem:[%s6354_s0 + $0x2b] sm:$0xff]  ;;  %v428_v14 = vpack.c.bf16 %v424_v10, %v424_v10  ;;  %v557_v15 = vld [vmem:[%s6354_s0 + $0x14] sm:$0xff] }
  0x12   :  { %3830 = vmatmul.mubr.msk.bf16.gmra.mxu0 %vm104_vm1, %v4289_v32  ;;  %v555_v8 = vld [vmem:[%s6354_s0 + $0x4] sm:$0xff]  ;;  %v556_v9 = vld [vmem:[%s6354_s0 + $0xc] sm:$0xff]  ;;  %v427_v11 = vpack.c.bf16 %v423_v7, %v422_v5  ;;  %v4292_v12 = vpack.c.bf16 %v422_v5, %v421_v4  ;;  %v560_v18 = vld [vmem:[%s6354_s0 + $0x34] sm:$0xff] }
  0x13   :  { %3838 = vmatmul.mubr.msk.bf16.vlgmr.msra.gmra.mxu1 %vm104_vm1, %v40_v33  ;;  %376 = vmatprep.mubr.bf16.mxu0 %v6365_v6  ;;  %v310_v2 = vpack.c.b16 %v302_v1, %v301_v0  ;;  %v561_v13 = vpack.c.bf16 %v556_v9, %v555_v8  ;;  %v558_v16 = vld [vmem:[%s6354_s0 + $0x24] sm:$0xff]  ;;  %v559_v17 = vld [vmem:[%s6354_s0 + $0x2c] sm:$0xff]  ;;  %v438_v20 = vunpack.c.l.b16 %v428_v14  ;;  %v564_v24 = vpack.c.bf16 %v560_v18, %v560_v18 }
  0x14   :  { %262 = vmatprep.mubr.bf16.mxu1 %v6365_v6  ;;  %493 = vmatpush1.bf16.msra.mxu1 %v475_v35  ;;  %v437_v19 = vunpack.c.h.b16 %v427_v11  ;;  %v563_v22 = vpack.c.bf16 %v559_v17, %v558_v16  ;;  %v4293_v23 = vpack.c.bf16 %v558_v16, %v557_v15 }
  0x15   :  { %494 = vmatprep.subr.bf16.mxu1 %v4351_v36  ;;  %v574_v26 = vunpack.c.l.b16 %v564_v24 }
  0x16   :  { %v446_v21 = vpack.c.b16 %v438_v20, %v437_v19  ;;  %v573_v25 = vunpack.c.h.b16 %v563_v22 }
  0x18   :  { %495 = vmatpush1.bf16.msra.mxu1 %v4349_v44  ;;  %v582_v27 = vpack.c.b16 %v574_v26, %v573_v25 }
  0x1a   :  { %3851 = vmatmul.mubr.msk.bf16.vlgmr.msra.gmra.mxu0 %vm104_vm1, %v289_v47 }
  0x1b   :  { %3839 = vmatmul.mubr.msk.bf16.gmra.mxu1 %vm104_vm1, %v4290_v46  ;;  %629 = vmatpush1.bf16.msra.mxu0 %v611_v50 }
  0x1c   :  { %272 = vmatprep.mubr.bf16.mxu1 %v6365_v6  ;;  %386 = vmatprep.mubr.bf16.mxu0 %v6365_v6 }
  0x1d   :  { %630 = vmatprep.subr.bf16.mxu0 %v4354_v49 }
  0x1f   :  { %631 = vmatpush1.bf16.msra.mxu0 %v4352_v54 }
  0x22   :  { %3852 = vmatmul.mubr.msk.bf16.gmra.mxu0 %vm104_vm1, %v4291_v60 }
  0x23   :  { %3840 = vmatmul.mubr.msk.bf16.gmra.mxu1 %vm104_vm1, %v186_v58  ;;  %396 = vmatprep.mubr.bf16.mxu0 %v6365_v6 }
  0x24   :  { %512 = vmatprep.mubr.bf16.mxu1 %v6365_v6 }
  0x2a   :  { %3853 = vmatmul.mubr.msk.bf16.gmra.mxu0 %vm104_vm1, %v310_v2 }
  0x2b   :  { %3864 = vmatmul.mubr.msk.bf16.vlgmr.msra.gmra.mxu1 %vm104_vm1, %v425_v3  ;;  %648 = vmatprep.mubr.bf16.mxu0 %v6365_v6 }
  0x2c   :  { %522 = vmatprep.mubr.bf16.mxu1 %v6365_v6 }
  0x32   :  { %3877 = vmatmul.mubr.msk.bf16.vlgmr.msra.gmra.mxu0 %vm104_vm1, %v561_v13 }
  0x33   :  { %3865 = vmatmul.mubr.msk.bf16.gmra.mxu1 %vm104_vm1, %v4292_v12  ;;  %658 = vmatprep.mubr.bf16.mxu0 %v6365_v6 }
  0x34   :  { %532 = vmatprep.mubr.bf16.mxu1 %v6365_v6 }
  0x3a   :  { %3878 = vmatmul.mubr.msk.bf16.gmra.mxu0 %vm104_vm1, %v4293_v23 }
  0x3b   :  { %3866 = vmatmul.mubr.msk.bf16.gmra.mxu1 %vm104_vm1, %v446_v21  ;;  %668 = vmatprep.mubr.bf16.mxu0 %v6365_v6 }
  0x42   :  { %3879 = vmatmul.mubr.msk.bf16.gmra.mxu0 %vm104_vm1, %v582_v27 }
  0x43   :  { %14 = vsyncpa [#allocation3], 0  ;;  %v4355_v28 = vld [vmem:[%s6357_s3 + $0x70] ss:$8 sps:$4 sm:$0xff]   ;;  %v4357_v29 = vld [vmem:[%s6357_s3 + $0x74] ss:$8 sps:$4 sm:$0xff]   ;;  %v693_v2 = vlaneseq }
  0x44   :  { %v4358_v30 = vld [vmem:[%s6357_s3 + $0x158] ss:$8 sps:$4 sm:$0xff]   ;;  %v4360_v31 = vld [vmem:[%s6357_s3 + $0x15c] ss:$8 sps:$4 sm:$0xff]   ;;  %1967 = vmatprep.subr.bf16.mxu0 %v4357_v29  ;;  %v4366_v33 = vld [vmem:[%s6357_s3 + $0x14c] ss:$8 sps:$4 sm:$0xff]  }
  0x45   :  { %v4363_v32 = vld [vmem:[%s6357_s3 + $0x64] ss:$8 sps:$4 sm:$0xff]   ;;  %1968 = vmatpush1.bf16.msra.mxu0 %v4355_v28  ;;  %1703 = vmatprep.subr.bf16.mxu1 %v4360_v31  ;;  %v4361_v34 = vld [vmem:[%s6357_s3 + $0x60] ss:$8 sps:$4 sm:$0xff]   ;;  %v4369_v36 = vld [vmem:[%s6357_s3 + $0x54] ss:$8 sps:$4 sm:$0xff]  }
  0x46   :  { %1969 = vmatprep.subr.bf16.mxu0 %v4363_v32  ;;  %1704 = vmatpush1.bf16.msra.mxu1 %v4358_v30  ;;  %v4364_v35 = vld [vmem:[%s6357_s3 + $0x148] ss:$8 sps:$4 sm:$0xff]   ;;  %v4372_v8 = vld [vmem:[%s6357_s3 + $0x13c] ss:$8 sps:$4 sm:$0xff]   ;;  %v4972_v10 = vshrl.u32 %v693_v2, 7  ;;  %vm1696_vm2 = vcmask 1042432  }
  0x47   :  { %1705 = vmatprep.subr.bf16.mxu1 %v4366_v33  ;;  %v4367_v37 = vld [vmem:[%s6357_s3 + $0x50] ss:$8 sps:$4 sm:$0xff]   ;;  %v4375_v9 = vld [vmem:[%s6357_s3 + $0x44] ss:$8 sps:$4 sm:$0xff]   ;;  %v4373_v12 = vld [vmem:[%s6357_s3 + $0x40] ss:$8 sps:$4 sm:$0xff]  }
  0x48   :  { %6377 = vst [vmem:[#allocation5_spill] sm:$0xff] %v4972_v10  ;;  %v4370_v11 = vld [vmem:[%s6357_s3 + $0x138] ss:$8 sps:$4 sm:$0xff]   ;;  %v4985_v18 = vsub.s32 0, %v4972_v10  ;;  %v4378_v22 = vld [vmem:[%s6357_s3 + $0x12c] ss:$8 sps:$4 sm:$0xff]  }
  0x49   :  { %1970 = vmatpush1.bf16.msra.mxu0 %v4361_v34  ;;  %v691_v21 = vld [vmem:[%s6356_s2] sm:$0x3]  ;;  %v4381_v23 = vld [vmem:[%s6357_s3 + $0x34] ss:$8 sps:$4 sm:$0xff]   ;;  %v4376_v26 = vld [vmem:[%s6357_s3 + $0x128] ss:$8 sps:$4 sm:$0xff]  }
  0x4a   :  { %1971 = vmatprep.subr.bf16.mxu0 %v4369_v36  ;;  %1706 = vmatpush1.bf16.msra.mxu1 %v4364_v35  ;;  %6378 = vst [vmem:[#allocation6_spill] sm:$0xff] %v4985_v18  ;;  %v4379_v27 = vld [vmem:[%s6357_s3 + $0x30] ss:$8 sps:$4 sm:$0xff]   ;;  %v6364_v30 = vsub.s32 1, %v4972_v10  ;;  %v5008_v33 = vrot.slane %v691_v21, %v4985_v18  ;;  %s4642_s2 = smov 118   ;;  %vm751_vm3 = vcmask 965632  }
  0x4b   :  { %1707 = vmatprep.subr.bf16.mxu1 %v4372_v8  ;;  %vm1482_vm4 = vcmask 1041409   ;;  %vm1485_vm5 = vcmask 1042434   ;;  %vm1488_vm6 = vcmask 1043459   ;;  %vm1491_vm7 = vcmask 1044484  }
  0x4c   :  { %vm1494_vm8 = vcmask 1045509   ;;  %vm1497_vm9 = vcmask 1046534   ;;  %vm1500_vm10 = vcmask 1047559   ;;  %vm1692_vm11 = vcmask 834560  }
  0x4d   :  { %1972 = vmatpush1.bf16.msra.mxu0 %v4367_v37  ;;  %vm2932_vm12 = vcmask 883712   ;;  %vm3240_vm13 = vcmask 97280   ;;  %vm3718_vm14 = vcmask 1040384   ;;  %vm4646_vm15 = vmmov 0  }
  0x4e   :  { %1973 = vmatprep.subr.bf16.mxu0 %v4375_v9  ;;  %1708 = vmatpush1.bf16.msra.mxu1 %v4370_v11  ;;  %vm3762_vm1 = vcmask 74752  }
  0x4f   :  { %1709 = vmatprep.subr.bf16.mxu1 %v4378_v22 }
  0x51   :  { %1974 = vmatpush1.bf16.msra.mxu0 %v4373_v12 }
  0x52   :  { %1975 = vmatprep.subr.bf16.mxu0 %v4381_v23  ;;  %1710 = vmatpush1.bf16.msra.mxu1 %v4376_v26  ;;  %v4382_v26 = vld [vmem:[%s6357_s3 + $0x118] ss:$8 sps:$4 sm:$0xff]  }
  0x55   :  { %1976 = vmatpush1.bf16.msra.mxu0 %v4379_v27  ;;  %v4385_v27 = vld [vmem:[%s6357_s3 + $0x20] ss:$8 sps:$4 sm:$0xff]  }
  0xca   :  { %v155_v38 = vpop.f32.mrf.mxu0 }
  0xcb   :  { %v4922_v39 = vpop.f32.mrf.mxu1 }
  0xcc   :  { %v157_v40 = vpop.f32.mrf.mxu0 }
  0xcd   :  { %v4924_v41 = vpop.f32.mrf.mxu1 }
  0xce   :  { %v4926_v42 = vpop.f32.mrf.mxu0 }
  0xcf   :  { %v4928_v43 = vpop.f32.mrf.mxu1 }
  0xd0   :  { %v4930_v44 = vpop.f32.mrf.mxu0 }
  0xd1   :  { %v4932_v45 = vpop.f32.mrf.mxu1 }
  0xd2   :  { %v4934_v46 = vpop.f32.mrf.mxu0 }
  0xd3   :  { %v254_v47 = vpop.f32.mrf.mxu1 }
  0xd4   :  { %v4936_v48 = vpop.f32.mrf.mxu0  ;;  %v255_v17 = vadd.f32 %v254_v47, %v155_v38 }
  0xd5   :  { %v256_v49 = vpop.f32.mrf.mxu1 }
  0xd6   :  { %v4938_v50 = vpop.f32.mrf.mxu0  ;;  %v257_v24 = vadd.f32 %v256_v49, %v157_v40 }
  0xd7   :  { %v258_v51 = vpop.f32.mrf.mxu1 }
  0xd8   :  { %v4940_v52 = vpop.f32.mrf.mxu0  ;;  %v259_v36 = vadd.f32 %v258_v51, %v4926_v42 }
  0xd9   :  { %v260_v53 = vpop.f32.mrf.mxu1 }
  0xda   :  { %v378_v55 = vpop.f32.mrf.mxu0  ;;  %v261_v37 = vadd.f32 %v260_v53, %v4930_v44 }
  0xdb   :  { %v4942_v54 = vpop.f32.mrf.mxu1  ;;  %v407_v25 = vadd.f32 %v378_v55, %v255_v17  ;;  %v5018_v55 = vrot.slane %v691_v21, %v6364_v30 }
  0xdc   :  { %v380_v57 = vpop.f32.mrf.mxu0 }
  0xdd   :  { %v4944_v56 = vpop.f32.mrf.mxu1  ;;  %v408_v31 = vadd.f32 %v380_v57, %v257_v24 }
  0xde   :  { %v382_v59 = vpop.f32.mrf.mxu0 }
  0xdf   :  { %v4946_v58 = vpop.f32.mrf.mxu1  ;;  %v409_v57 = vadd.f32 %v382_v59, %v259_v36 }
  0xe0   :  { %v384_v61 = vpop.f32.mrf.mxu0 }
  0xe1   :  { %v4948_v60 = vpop.f32.mrf.mxu1  ;;  %v410_v2 = vadd.f32 %v384_v61, %v261_v37 }
  0xe2   :  { %v4952_v63 = vpop.f32.mrf.mxu0  ;;  %v271_v21 = vadd.f32 %v4948_v60, %v4940_v52 }
  0xe3   :  { %v4950_v62 = vpop.f32.mrf.mxu1 }
  0xe4   :  { %v4956_v1 = vpop.f32.mrf.mxu0  ;;  %v275_v52 = vadd.f32 %v4950_v62, %v4922_v39  ;;  %v265_v39 = vadd.f32 %v4942_v54, %v4934_v46  ;;  %v4393_v46 = vld [vmem:[%s6357_s3 + $0x14] ss:$8 sps:$4 sm:$0xff]  }
  0xe5   :  { %v4954_v0 = vpop.f32.mrf.mxu1 }
  0xe6   :  { %v4960_v4 = vpop.f32.mrf.mxu0  ;;  %v277_v62 = vadd.f32 %v4954_v0, %v4924_v41  ;;  %v4390_v41 = vld [vmem:[%s6357_s3 + $0x10c] ss:$8 sps:$4 sm:$0xff]  }
  0xe7   :  { %v4958_v3 = vpop.f32.mrf.mxu1 }
  0xe8   :  { %v4964_v7 = vpop.f32.mrf.mxu0 }
  0xe9   :  { %v4962_v5 = vpop.f32.mrf.mxu1  ;;  %v414_v60 = vadd.f32 %v4964_v7, %v271_v21 }
  0xea   :  { %v4980_v13 = vpop.f32.mrf.mxu0 }
  0xeb   :  { %v514_v14 = vpop.f32.mrf.mxu1 }
  0xec   :  { %v4982_v15 = vpop.f32.mrf.mxu0  ;;  %v543_v32 = vadd.f32 %v514_v14, %v407_v25  ;;  %v269_v14 = vadd.f32 %v4946_v58, %v4938_v50  ;;  %v4384_v50 = vld [vmem:[%s6357_s3 + $0x11c] ss:$8 sps:$4 sm:$0xff]  }
  0xed   :  { %v516_v16 = vpop.f32.mrf.mxu1  ;;  %v4387_v58 = vld [vmem:[%s6357_s3 + $0x24] ss:$8 sps:$4 sm:$0xff]   ;;  %1711 = vmatprep.subr.bf16.mxu1 %v4384_v50  ;;  %v416_v54 = vadd.f32 %v4982_v15, %v277_v62 }
  0xee   :  { %v4987_v19 = vpop.f32.mrf.mxu0  ;;  %v544_v38 = vadd.f32 %v516_v16, %v408_v31  ;;  %1977 = vmatprep.subr.bf16.mxu0 %v4387_v58  ;;  %1712 = vmatpush1.bf16.msra.mxu1 %v4382_v26  ;;  %v4399_v50 = vld [vmem:[%s6357_s3 + $0x4] ss:$8 sps:$4 sm:$0xff]   ;;  %v4394_v58 = vld [vmem:[%s6357_s3 + $0xf8] ss:$8 sps:$4 sm:$0xff]  }
  0xef   :  { %v518_v20 = vpop.f32.mrf.mxu1  ;;  %1978 = vmatpush1.bf16.msra.mxu0 %v4385_v27  ;;  %1713 = vmatprep.subr.bf16.mxu1 %v4390_v41  ;;  %v3932_v62 = vld [vmem:[%s6357_s3 + $0x1c8] sm:$0x77]  ;;  %v4410_v41 = vld [vmem:[%s6357_s3 + $0x1b8] ss:$8 sps:$4 sm:$0xff]  }
  0xf0   :  { %v5004_v28 = vpop.f32.mrf.mxu0  ;;  %v545_v42 = vadd.f32 %v518_v20, %v409_v57  ;;  %v413_v20 = vadd.f32 %v4960_v4, %v269_v14  ;;  %v279_v57 = vadd.f32 %v4958_v3, %v4928_v43  ;;  %1979 = vmatprep.subr.bf16.mxu0 %v4393_v46  ;;  %v4413_v46 = vld [vmem:[%s6357_s3 + $0xc0] ss:$8 sps:$4 sm:$0xff]  }
  0xf1   :  { %v520_v29 = vpop.f32.mrf.mxu1 }
  0xf2   :  { %v650_v35 = vpop.f32.mrf.mxu0  ;;  %v546_v51 = vadd.f32 %v520_v29, %v410_v2  ;;  %v415_v29 = vadd.f32 %v4980_v13, %v275_v52  ;;  %v4397_v52 = vld [vmem:[%s6357_s3] ss:$8 sps:$4 sm:$0xff]  }
  0xf3   :  { %v5010_v34 = vpop.f32.mrf.mxu1  ;;  %v679_v40 = vadd.f32 %v650_v35, %v543_v32  ;;  %v411_v35 = vadd.f32 %v4952_v63, %v265_v39  ;;  %v4388_v63 = vld [vmem:[%s6357_s3 + $0x108] ss:$8 sps:$4 sm:$0xff]  }
  0xf4   :  { %v652_v49 = vpop.f32.mrf.mxu0  ;;  %1714 = vmatpush1.bf16.msra.mxu1 %v4388_v63  ;;  %v4419_v63 = vld [vmem:[%s6357_s3 + $0xb0] ss:$8 sps:$4 sm:$0xff]  }
  0xf5   :  { %v5014_v47 = vpop.f32.mrf.mxu1  ;;  %v680_v8 = vadd.f32 %v652_v49, %v544_v38  ;;  %v5021_v9 = vadd.f32 %v5008_v33, %v679_v40  ;;  %v4391_v40 = vld [vmem:[%s6357_s3 + $0x10] ss:$8 sps:$4 sm:$0xff]   ;;  %v267_v49 = vadd.f32 %v4944_v56, %v4936_v48  ;;  %v547_v2 = vadd.f32 %v5010_v34, %v411_v35 }
  0xf6   :  { %v654_v12 = vpop.f32.mrf.mxu0  ;;  %1980 = vmatpush1.bf16.msra.mxu0 %v4391_v40  ;;  %v4424_v40 = vld [vmem:[%s6357_s3 + $0x19c] ss:$8 sps:$4 sm:$0xff]  }
  0xf7   :  { %v528_v11 = vpop.f32.mrf.mxu1  ;;  %727 = vrot.lane.b32.xlu0 %v5021_v9, %s4642_s2  ;;  %v5028_v59 = vadd.f32 %v5018_v55, %v680_v8  ;;  %v681_v61 = vadd.f32 %v654_v12, %v545_v42  ;;  %v412_v12 = vadd.f32 %v4956_v1, %v267_v49  ;;  %v417_v42 = vadd.f32 %v4987_v19, %v279_v57  ;;  %v4427_v49 = vld [vmem:[%s6357_s3 + $0xa4] ss:$8 sps:$4 sm:$0xff]   ;;  %v4422_v57 = vld [vmem:[%s6357_s3 + $0x198] ss:$8 sps:$4 sm:$0xff]  }
  0xf8   :  { %v656_v53 = vpop.f32.mrf.mxu0  ;;  %v549_v4 = vadd.f32 %v528_v11, %v413_v20  ;;  %1981 = vmatprep.subr.bf16.mxu0 %v4399_v50 }
  0xf9   :  { %v530_v44 = vpop.f32.mrf.mxu1  ;;  %v682_v16 = vadd.f32 %v656_v53, %v546_v51  ;;  %v5048_v25 = vadd.f32 %v5008_v33, %v681_v61  ;;  %v548_v14 = vadd.f32 %v5014_v47, %v412_v12  ;;  %v4431_v12 = vld [vmem:[%s6357_s3 + $0x90] ss:$8 sps:$4 sm:$0xff]  }
  0xfa   :  { %v660_v17 = vpop.f32.mrf.mxu0  ;;  %v550_v31 = vadd.f32 %v530_v44, %v414_v60  ;;  %v281_v44 = vadd.f32 %v4962_v5, %v4932_v45  ;;  %1982 = vmatpush1.bf16.msra.mxu0 %v4397_v52  ;;  %v1386_v60 = vld [vmem:[%s6357_s3 + $0xe0] sm:$0x77] }
  0xfb   :  { %729 = vrot.lane.b32.xlu0 %v5028_v59, %s4642_s2  ;;  %v5036_v22 = vadd.f32 %v5018_v55, %v682_v16  ;;  %v534_v23 = vpop.f32.mrf.mxu1  ;;  %v683_v56 = vadd.f32 %v660_v17, %v547_v2  ;;  %v3994_v26 = vcombine.high %v1386_v60, %v1386_v60  ;;  %v3993_v27 = vcombine.low %v1386_v60, %v1386_v60  ;;  %v4430_v2 = vld [vmem:[%s6357_s3 + $0x18c] ss:$8 sps:$4 sm:$0xff]  }
  0xfc   :  { %v662_v24 = vpop.f32.mrf.mxu0  ;;  %v551_v0 = vadd.f32 %v534_v23, %v415_v29  ;;  %v418_v19 = vadd.f32 %v5004_v28, %v281_v44  ;;  %v4408_v29 = vld [vmem:[%s6357_s3 + $0xd4] ss:$8 sps:$4 sm:$0xff]  }
  0xfd   :  { %733 = vrot.lane.b32.xlu1 %v5036_v22, %s4642_s2  ;;  %v536_v36 = vpop.f32.mrf.mxu1  ;;  %v5106_v16 = vadd.f32 %v5008_v33, %v683_v56  ;;  %v684_v17 = vadd.f32 %v662_v24, %v548_v14  ;;  %v4396_v24 = vld [vmem:[%s6357_s3 + $0xfc] ss:$8 sps:$4 sm:$0xff]   ;;  %3995 = vmatprep.subr.msk.bf16.mxu0 %vm1696_vm2, %v3994_v26  ;;  %v1962_v39 = vsel %vm1696_vm2, %v3993_v27, 0  ;;  %v4437_v56 = vld [vmem:[%s6357_s3 + $0x80] ss:$8 sps:$4 sm:$0xff]  }
  0xfe   :  { %v664_v7 = vpop.f32.mrf.mxu0  ;;  %v552_v8 = vadd.f32 %v536_v36, %v416_v54  ;;  %1715 = vmatprep.subr.bf16.mxu1 %v4396_v24  ;;  %1986 = vmatpush2.bf16.msra.mxu0 %v1962_v39  ;;  %v4412_v36 = vld [vmem:[%s6357_s3 + $0x1bc] ss:$8 sps:$4 sm:$0xff]   ;;  %v4418_v54 = vld [vmem:[%s6357_s3 + $0x1ac] ss:$8 sps:$4 sm:$0xff]  }
  0xff   :  { %v685_v32 = vadd.f32 %v664_v7, %v549_v4  ;;  %731 = vrot.lane.b32.xlu0 %v5048_v25, %s4642_s2  ;;  %v538_v51 = vpop.f32.mrf.mxu1  ;;  %v5116_v20 = vadd.f32 %v5018_v55, %v684_v17  ;;  %1716 = vmatpush1.bf16.msra.mxu1 %v4394_v58  ;;  %v4402_v4 = vld [vmem:[%s6357_s3 + $0xec] ss:$8 sps:$4 sm:$0xff]   ;;  %v3962_v7 = vcombine.high %v3932_v62, %v3932_v62 }
 0x100   :  { %v666_v37 = vpop.f32.mrf.mxu0  ;;  %v553_v1 = vadd.f32 %v538_v51, %v417_v42  ;;  %1717 = vmatprep.subr.bf16.mxu1 %v4402_v4  ;;  %1987 = vmatprep.subr.bf16.mxu0 %v4408_v29  ;;  %v4436_v42 = vld [vmem:[%s6357_s3 + $0x17c] ss:$8 sps:$4 sm:$0xff]   ;;  %v4442_v44 = vld [vmem:[%s6357_s3 + $0x16c] ss:$8 sps:$4 sm:$0xff]  }
 0x101   :  { %v5074_v13 = vadd.f32 %v5008_v33, %v685_v32  ;;  %v686_v38 = vadd.f32 %v666_v37, %v550_v31  ;;  %v540_v61 = vpop.f32.mrf.mxu1  ;;  %v3961_v31 = vcombine.low %v3932_v62, %v3932_v62  ;;  %v4406_v32 = vld [vmem:[%s6357_s3 + $0xd0] ss:$8 sps:$4 sm:$0xff]   ;;  %v4415_v37 = vld [vmem:[%s6357_s3 + $0xc4] ss:$8 sps:$4 sm:$0xff]  }
 0x102   :  { %v670_v15 = vpop.f32.mrf.mxu0  ;;  %v554_v47 = vadd.f32 %v540_v61, %v418_v19  ;;  %1988 = vmatpush2.bf16.msra.mxu0 %v4406_v32  ;;  %v4439_v51 = vld [vmem:[%s6357_s3 + $0x84] ss:$8 sps:$4 sm:$0xff]  }
 0x103   :  { %v687_v11 = vadd.f32 %v670_v15, %v551_v0  ;;  %739 = vrot.lane.b32.xlu1 %v5074_v13, %s4642_s2  ;;  %v5092_v43 = vadd.f32 %v5018_v55, %v686_v38  ;;  %v1698_v35 = vsel %vm1696_vm2, %v3961_v31, 0  ;;  %1989 = vmatprep.subr.bf16.mxu0 %v4415_v37  ;;  %v4421_v0 = vld [vmem:[%s6357_s3 + $0xb4] ss:$8 sps:$4 sm:$0xff]   ;;  %v4416_v38 = vld [vmem:[%s6357_s3 + $0x1a8] ss:$8 sps:$4 sm:$0xff]  }
 0x104   :  { %v672_v48 = vpop.f32.mrf.mxu0  ;;  %v4425_v15 = vld [vmem:[%s6357_s3 + $0xa0] ss:$8 sps:$4 sm:$0xff]   ;;  %v4448_v14 = vld [vmem:[%s6357_s3 + $0x244] ss:$8 sps:$4 sm:$0xff]  }
 0x105   :  { %v5095_v3 = vadd.f32 %v5008_v33, %v687_v11  ;;  %v688_v34 = vadd.f32 %v672_v48, %v552_v8  ;;  %v4433_v8 = vld [vmem:[%s6357_s3 + $0x94] ss:$8 sps:$4 sm:$0xff]   ;;  %v4428_v11 = vld [vmem:[%s6357_s3 + $0x188] ss:$8 sps:$4 sm:$0xff]   ;;  %v4434_v48 = vld [vmem:[%s6357_s3 + $0x178] ss:$8 sps:$4 sm:$0xff]  }
 0x106   :  { %v674_v53 = vpop.f32.mrf.mxu0  ;;  %1990 = vmatpush2.bf16.msra.mxu0 %v4413_v46 }
 0x107   :  { %741 = vrot.lane.b32.xlu1 %v5092_v43, %s4642_s2  ;;  %743 = vrot.lane.b32.xlu0 %v5095_v3, %s4642_s2  ;;  %v5109_v21 = vadd.f32 %v5018_v55, %v688_v34  ;;  %v689_v45 = vadd.f32 %v674_v53, %v553_v1  ;;  %v4440_v34 = vld [vmem:[%s6357_s3 + $0x168] ss:$8 sps:$4 sm:$0xff]   ;;  %v4445_v53 = vld [vmem:[%s6357_s3 + $0x32c] ss:$8 sps:$4 sm:$0xff]   ;;  %v4643_v1 = vmov 1983009808  }
 0x108   :  { %v676_v5 = vpop.f32.mrf.mxu0  ;;  %1991 = vmatprep.subr.bf16.mxu0 %v4421_v0  ;;  %v797_v19 = vunpack.c.l.s4 %v4643_v1 }
 0x109   :  { %v5119_v28 = vadd.f32 %v5008_v33, %v689_v45  ;;  %v690_v23 = vadd.f32 %v676_v5, %v554_v47 }
 0x10a   :  { %1992 = vmatpush2.bf16.msra.mxu0 %v4419_v63  ;;  %v798_v17 = vunpack.c.0.s8 %v797_v19 }
 0x10b   :  { %745 = vrot.lane.b32.xlu1 %v5109_v21, %s4642_s2  ;;  %735 = vrot.lane.b32.xlu0 %v5106_v16, %s4642_s2  ;;  %v5138_v33 = vadd.f32 %v5018_v55, %v690_v23  ;;  %v4400_v55 = vld [vmem:[%s6357_s3 + $0xe8] ss:$8 sps:$4 sm:$0xff]  }
 0x10c   :  { %1718 = vmatpush1.bf16.msra.mxu1 %v4400_v55  ;;  %1993 = vmatprep.subr.bf16.mxu0 %v4427_v49  ;;  %v5239_v23 = vsub.s32 %v798_v17, %v4972_v10 }
 0x10d   :  { %3963 = vmatprep.subr.msk.bf16.mxu1 %vm1696_vm2, %v3962_v7 }
 0x10e   :  { %1994 = vmatpush2.bf16.msra.mxu0 %v4425_v15  ;;  %6379 = vst [vmem:[#allocation7_spill] sm:$0xff] %v5239_v23 }
 0x10f   :  { %737 = vrot.lane.b32.xlu1 %v5116_v20, %s4642_s2  ;;  %747 = vrot.lane.b32.xlu0 %v5119_v28, %s4642_s2 }
 0x110   :  { %1722 = vmatpush2.bf16.msra.mxu1 %v1698_v35  ;;  %1995 = vmatprep.subr.bf16.mxu0 %v4433_v8 }
 0x111   :  { %1723 = vmatprep.subr.bf16.mxu1 %v4412_v36 }
 0x112   :  { %1996 = vmatpush2.bf16.msra.mxu0 %v4431_v12 }
 0x113   :  { %749 = vrot.lane.b32.xlu1 %v5138_v33, %s4642_s2  ;;  %1997 = vmatprep.subr.bf16.mxu0 %v4439_v51 }
 0x114   :  { %1724 = vmatpush2.bf16.msra.mxu1 %v4410_v41  ;;  %v5248_v41 = vsub.s32 2, %v4972_v10 }
 0x115   :  { %1725 = vmatprep.subr.bf16.mxu1 %v4418_v54 }
 0x116   :  { %1998 = vmatpush2.bf16.msra.mxu0 %v4437_v56  ;;  %6380 = vst [vmem:[#allocation8_spill] sm:$0xff] %v5248_v41 }
 0x117   :  { %2559 = vmatprep.subr.bf16.mxu0 %v4445_v53 }
 0x118   :  { %1726 = vmatpush2.bf16.msra.mxu1 %v4416_v38 }
 0x119   :  { %1727 = vmatprep.subr.bf16.mxu1 %v4424_v40 }
 0x11c   :  { %1728 = vmatpush2.bf16.msra.mxu1 %v4422_v57 }
 0x11d   :  { %1729 = vmatprep.subr.bf16.mxu1 %v4430_v2 }
 0x120   :  { %1730 = vmatpush2.bf16.msra.mxu1 %v4428_v11  ;;  %v5259_v11 = vld [vmem:[%s6357_s3 + $0x398] sm:$0x77] }
 0x121   :  { %1731 = vmatprep.subr.bf16.mxu1 %v4436_v42  ;;  %6381 = vst [vmem:[#allocation9_spill] sm:$0xff] %v5259_v11  ;;  %v4115_v1 = vcombine.low %v5259_v11, %v5259_v11 }
 0x124   :  { %1732 = vmatpush2.bf16.msra.mxu1 %v4434_v48 }
 0x125   :  { %1733 = vmatprep.subr.bf16.mxu1 %v4442_v44 }
 0x128   :  { %1734 = vmatpush2.bf16.msra.mxu1 %v4440_v34 }
 0x129   :  { %2261 = vmatprep.subr.bf16.mxu1 %v4448_v14 }
 0x169   :  { %v728_v61 = vpop.permute.xlu0 %727 }
 0x16d   :  { %v730_v45 = vpop.permute.xlu0 %729 }
 0x16e   :  { %v752_v5 = vsel %vm751_vm3, %v728_v61, %v730_v45  ;;  %v771_v47 = vmax.f32 %v5028_v59, %v730_v45  ;;  %v5270_v45 = vld [vmem:[%s6357_s3 + $0x2b0] sm:$0x77] }
 0x16f   :  { %v770_v24 = vmax.f32 %v5021_v9, %v752_v5  ;;  %v734_v52 = vpop.permute.xlu1 %733 }
 0x170   :  { %v773_v39 = vmax.f32 %v5036_v22, %v734_v52 }
 0x171   :  { %v794_v50 = vcombine.low %v770_v24, %v771_v47  ;;  %v795_v58 = vcombine.high %v770_v24, %v771_v47  ;;  %v732_v60 = vpop.permute.xlu0 %731 }
 0x172   :  { %v753_v4 = vsel %vm751_vm3, %v732_v60, %v734_v52 }
 0x173   :  { %v802_v26 = vrot.slane %v794_v50, %v5239_v23  ;;  %v809_v27 = vrot.slane %v795_v58, %v5239_v23  ;;  %v772_v55 = vmax.f32 %v5048_v25, %v753_v4 }
 0x175   :  { %v810_v59 = vcombine.high %v802_v26, %v802_v26  ;;  %v811_v62 = vcombine.high %v809_v27, %v809_v27  ;;  %v3880_v7 = vrot.slane %v802_v26, 9  ;;  %v3882_v29 = vrot.slane %v809_v27, 9  ;;  %v740_v8 = vpop.permute.xlu1 %739 }
 0x176   :  { %v812_v31 = vcombine.low %v772_v55, %v773_v39  ;;  %v813_v9 = vcombine.high %v772_v55, %v773_v39  ;;  %v5279_v39 = vsel %vm1696_vm2, %v4115_v1, 0 }
 0x177   :  { %v3881_v32 = vrot.slane %v810_v59, 9  ;;  %v3883_v35 = vrot.slane %v811_v62, 9  ;;  %v998_v36 = vmax.f32 %v802_v26, %v3880_v7  ;;  %v1000_v37 = vmax.f32 %v809_v27, %v3882_v29  ;;  %6382 = vst [vmem:[#allocation10_spill] sm:$0xff] %v5279_v39 }
 0x178   :  { %v820_v25 = vrot.slane %v812_v31, %v5239_v23  ;;  %v827_v40 = vrot.slane %v813_v9, %v5239_v23 }
 0x179   :  { %v999_v46 = vmax.f32 %v810_v59, %v3881_v32  ;;  %v1001_v54 = vmax.f32 %v811_v62, %v3883_v35  ;;  %v1022_v0 = vmax.f32 %v998_v36, 0.0  ;;  %v1024_v38 = vmax.f32 %v1000_v37, 0.0  ;;  %v742_v4 = vpop.permute.xlu1 %741 }
 0x17a   :  { %v828_v44 = vcombine.high %v820_v25, %v820_v25  ;;  %v829_v14 = vcombine.high %v827_v40, %v827_v40  ;;  %v3884_v50 = vrot.slane %v820_v25, 9  ;;  %v3886_v27 = vrot.slane %v827_v40, 9 }
 0x17b   :  { %v1023_v22 = vmax.f32 %v999_v46, 0.0  ;;  %v1025_v63 = vmax.f32 %v1001_v54, 0.0  ;;  %v1073_v49 = vrot.slane %v1022_v0, %v4985_v18  ;;  %v1077_v57 = vrot.slane %v1022_v0, %v5248_v41 }
 0x17c   :  { %v1089_v15 = vrot.slane %v1024_v38, %v4985_v18  ;;  %v1093_v2 = vrot.slane %v1024_v38, %v5248_v41  ;;  %v3885_v60 = vrot.slane %v828_v44, 9  ;;  %v3887_v55 = vrot.slane %v829_v14, 9 }
 0x17d   :  { %v1081_v12 = vrot.slane %v1023_v22, %v4985_v18  ;;  %v1085_v42 = vrot.slane %v1023_v22, %v5248_v41  ;;  %v1097_v51 = vrot.slane %v1025_v63, %v4985_v18  ;;  %v1101_v48 = vrot.slane %v1025_v63, %v5248_v41 }
 0x17e   :  { %v1314_v56 = vpack.c.bf16 %v1089_v15, %v1089_v15  ;;  %v1315_v34 = vpack.c.bf16 %v1093_v2, %v1093_v2  ;;  %v1310_v19 = vpack.c.bf16 %v1073_v49, %v1073_v49  ;;  %v1311_v5 = vpack.c.bf16 %v1077_v57, %v1077_v57 }
 0x17f   :  { %v1312_v53 = vpack.c.bf16 %v1081_v12, %v1081_v12  ;;  %v1316_v61 = vpack.c.bf16 %v1097_v51, %v1097_v51  ;;  %v1317_v17 = vpack.c.bf16 %v1101_v48, %v1101_v48  ;;  %v1313_v47 = vpack.c.bf16 %v1085_v42, %v1085_v42  ;;  %v746_v42 = vpop.permute.xlu1 %745 }
 0x180   :  { %v5272_v24 = vunpack.c.l.b16 %v1314_v56  ;;  %v5274_v52 = vunpack.c.l.b16 %v1315_v34  ;;  %v1750_v29 = vunpack.c.l.b16 %v1310_v19  ;;  %v1751_v35 = vunpack.c.l.b16 %v1311_v5 }
 0x181   :  { %v1449_v58 = vunpack.c.l.b16 %v1312_v53  ;;  %v5283_v62 = vunpack.c.l.b16 %v1316_v61  ;;  %v5285_v7 = vunpack.c.l.b16 %v1317_v17  ;;  %v1450_v9 = vunpack.c.l.b16 %v1313_v47 }
 0x182   :  { %v1481_v32 = vrot.slane %v5272_v24, 7  ;;  %v1002_v36 = vmax.f32 %v820_v25, %v3884_v50  ;;  %v1502_v37 = vrot.slane %v5274_v52, 7  ;;  %v1756_v54 = vrot.slane %v5272_v24, 6 }
 0x183   :  { %v1754_v46 = vrot.slane %v1449_v58, 7  ;;  %v1003_v0 = vmax.f32 %v828_v44, %v3885_v60  ;;  %v1770_v38 = vrot.slane %v5274_v52, 6  ;;  %v1004_v22 = vmax.f32 %v827_v40, %v3886_v27 }
 0x184   :  { %v1005_v63 = vmax.f32 %v829_v14, %v3887_v55  ;;  %v1026_v49 = vmax.f32 %v1002_v36, 0.0  ;;  %v1484_v57 = vrot.slane %v5283_v62, 6  ;;  %v1483_v25 = vsel %vm1482_vm4, %v1481_v32, %v1449_v58  ;;  %v744_v14 = vpop.permute.xlu0 %743 }
 0x185   :  { %v1027_v12 = vmax.f32 %v1003_v0, 0.0  ;;  %v1028_v51 = vmax.f32 %v1004_v22, 0.0  ;;  %v755_v56 = vsel %vm751_vm3, %v740_v8, %v742_v4  ;;  %v5299_v34 = vsel %vm1482_vm4, %v1502_v37, %v1450_v9 }
 0x186   :  { %v1029_v48 = vmax.f32 %v1005_v63, 0.0  ;;  %v1755_v40 = vsel %vm1482_vm4, %v1754_v46, %v1750_v29  ;;  %v1768_v44 = vrot.slane %v1450_v9, 7  ;;  %v2062_v53 = vrot.slane %v5285_v7, 7 }
 0x187   :  { %v1105_v1 = vrot.slane %v1026_v49, %v4985_v18  ;;  %v1109_v19 = vrot.slane %v1026_v49, %v5248_v41  ;;  %v1113_v61 = vrot.slane %v1027_v12, %v4985_v18  ;;  %v756_v17 = vsel %vm751_vm3, %v744_v14, %v746_v42 }
 0x188   :  { %v1117_v8 = vrot.slane %v1027_v12, %v5248_v41  ;;  %v776_v47 = vmax.f32 %v5074_v13, %v755_v56  ;;  %v777_v50 = vmax.f32 %v5092_v43, %v742_v4  ;;  %v5312_v58 = vsel %vm1485_vm5, %v1484_v57, %v1483_v25  ;;  %v738_v4 = vpop.permute.xlu1 %737  ;;  %v736_v49 = vpop.permute.xlu0 %735 }
 0x189   :  { %v1121_v60 = vrot.slane %v1028_v51, %v4985_v18  ;;  %v1125_v27 = vrot.slane %v1028_v51, %v5248_v41  ;;  %v1129_v55 = vrot.slane %v1029_v48, %v4985_v18  ;;  %v5318_v29 = vsel %vm1485_vm5, %v1756_v54, %v1755_v40 }
 0x18a   :  { %v5321_v9 = vsel %vm1482_vm4, %v1768_v44, %v1751_v35  ;;  %v5325_v13 = vsel %vm1482_vm4, %v2062_v53, %v5274_v52  ;;  %v778_v43 = vmax.f32 %v5095_v3, %v756_v17  ;;  %v1133_v32 = vrot.slane %v1029_v48, %v5248_v41 }
 0x18b   :  { %v1318_v36 = vpack.c.bf16 %v1105_v1, %v1105_v1  ;;  %v1319_v37 = vpack.c.bf16 %v1109_v19, %v1109_v19  ;;  %v1320_v46 = vpack.c.bf16 %v1113_v61, %v1113_v61  ;;  %v1321_v0 = vpack.c.bf16 %v1117_v8, %v1117_v8 }
 0x18c   :  { %v848_v22 = vcombine.low %v776_v47, %v777_v50  ;;  %v849_v63 = vcombine.high %v776_v47, %v777_v50  ;;  %v779_v54 = vmax.f32 %v5109_v21, %v746_v42  ;;  %v1322_v35 = vpack.c.bf16 %v1121_v60, %v1121_v60 }
 0x18d   :  { %v1323_v57 = vpack.c.bf16 %v1125_v27, %v1125_v27  ;;  %v1324_v12 = vpack.c.bf16 %v1129_v55, %v1129_v55  ;;  %v754_v25 = vsel %vm751_vm3, %v736_v49, %v738_v4  ;;  %v1325_v40 = vpack.c.bf16 %v1133_v32, %v1133_v32 }
 0x18e   :  { %v856_v51 = vrot.slane %v848_v22, %v5239_v23  ;;  %v863_v3 = vrot.slane %v849_v63, %v5239_v23  ;;  %v866_v56 = vcombine.low %v778_v43, %v779_v54  ;;  %v867_v48 = vcombine.high %v778_v43, %v779_v54  ;;  %v750_v43 = vpop.permute.xlu1 %749 }
 0x18f   :  { %v5333_v44 = vunpack.c.l.b16 %v1318_v36  ;;  %v5335_v53 = vunpack.c.l.b16 %v1319_v37  ;;  %v5337_v14 = vunpack.c.l.b16 %v1320_v46  ;;  %v774_v8 = vmax.f32 %v5106_v16, %v754_v25  ;;  %v748_v16 = vpop.permute.xlu0 %747 }
 0x190   :  { %v864_v21 = vcombine.high %v856_v51, %v856_v51  ;;  %v865_v42 = vcombine.high %v863_v3, %v863_v3  ;;  %v3892_v1 = vrot.slane %v856_v51, 9  ;;  %v3894_v19 = vrot.slane %v863_v3, 9 }
 0x191   :  { %v874_v61 = vrot.slane %v866_v56, %v5239_v23  ;;  %v881_v17 = vrot.slane %v867_v48, %v5239_v23  ;;  %v775_v47 = vmax.f32 %v5116_v20, %v738_v4  ;;  %v5343_v32 = vunpack.c.l.b16 %v1321_v0 }
 0x192   :  { %v3893_v50 = vrot.slane %v864_v21, 9  ;;  %v3895_v60 = vrot.slane %v865_v42, 9  ;;  %v1010_v27 = vmax.f32 %v856_v51, %v3892_v1  ;;  %v1012_v55 = vmax.f32 %v863_v3, %v3894_v19 }
 0x193   :  { %v5345_v36 = vunpack.c.l.b16 %v1322_v35  ;;  %v5347_v37 = vunpack.c.l.b16 %v1323_v57  ;;  %v5349_v46 = vunpack.c.l.b16 %v1324_v12  ;;  %v5351_v25 = vunpack.c.l.b16 %v1325_v40 }
 0x194   :  { %v1011_v22 = vmax.f32 %v864_v21, %v3893_v50  ;;  %v1013_v63 = vmax.f32 %v865_v42, %v3895_v60  ;;  %v1034_v54 = vmax.f32 %v1010_v27, 0.0  ;;  %v1036_v49 = vmax.f32 %v1012_v55, 0.0 }
 0x195   :  { %v882_v20 = vcombine.high %v874_v61, %v874_v61  ;;  %v757_v4 = vsel %vm751_vm3, %v748_v16, %v750_v43  ;;  %v5355_v51 = vmax.f32 %v5138_v33, %v750_v43  ;;  %v883_v3 = vcombine.high %v881_v17, %v881_v17 }
 0x196   :  { %v1035_v0 = vmax.f32 %v1011_v22, 0.0  ;;  %v1037_v35 = vmax.f32 %v1013_v63, 0.0  ;;  %v830_v57 = vcombine.low %v774_v8, %v775_v47  ;;  %v1169_v12 = vrot.slane %v1034_v54, %v4985_v18 }
 0x197   :  { %v1185_v56 = vrot.slane %v1036_v49, %v4985_v18  ;;  %v1189_v48 = vrot.slane %v1036_v49, %v5248_v41  ;;  %v3896_v21 = vrot.slane %v874_v61, 9  ;;  %v1173_v19 = vrot.slane %v1034_v54, %v5248_v41 }
 0x198   :  { %v1177_v40 = vrot.slane %v1035_v0, %v4985_v18  ;;  %v1181_v42 = vrot.slane %v1035_v0, %v5248_v41  ;;  %v1193_v1 = vrot.slane %v1037_v35, %v4985_v18  ;;  %v1197_v33 = vrot.slane %v1037_v35, %v5248_v41 }
 0x199   :  { %v1338_v50 = vpack.c.bf16 %v1185_v56, %v1185_v56  ;;  %v1339_v60 = vpack.c.bf16 %v1189_v48, %v1189_v48  ;;  %v3897_v27 = vrot.slane %v882_v20, 9  ;;  %v3898_v22 = vrot.slane %v881_v17, 9 }
 0x19a   :  { %v1336_v55 = vpack.c.bf16 %v1177_v40, %v1177_v40  ;;  %v1340_v43 = vpack.c.bf16 %v1193_v1, %v1193_v1  ;;  %v3899_v63 = vrot.slane %v883_v3, 9  ;;  %v1337_v16 = vpack.c.bf16 %v1181_v42, %v1181_v42 }
 0x19b   :  { %v1467_v49 = vunpack.c.l.b16 %v1338_v50  ;;  %v1014_v30 = vmax.f32 %v874_v61, %v3896_v21  ;;  %v831_v6 = vcombine.high %v774_v8, %v775_v47  ;;  %v1334_v59 = vpack.c.bf16 %v1169_v12, %v1169_v12 }
 0x19c   :  { %v1341_v26 = vpack.c.bf16 %v1197_v33, %v1197_v33  ;;  %v1465_v0 = vunpack.c.l.b16 %v1336_v55  ;;  %v5365_v31 = vunpack.c.l.b16 %v1340_v43  ;;  %v1335_v5 = vpack.c.bf16 %v1173_v19, %v1173_v19 }
 0x19d   :  { %v5367_v35 = vunpack.c.l.b16 %v1339_v60  ;;  %v1015_v54 = vmax.f32 %v882_v20, %v3897_v27  ;;  %v5370_v56 = vmax.f32 %v5119_v28, %v757_v4  ;;  %v1016_v48 = vmax.f32 %v881_v17, %v3898_v22 }
 0x19e   :  { %v1017_v40 = vmax.f32 %v883_v3, %v3899_v63  ;;  %v838_v1 = vrot.slane %v830_v57, %v5239_v23  ;;  %v5377_v61 = vsel %vm1485_vm5, %v1770_v38, %v5321_v9  ;;  %v1466_v8 = vunpack.c.l.b16 %v1337_v16 }
 0x19f   :  { %v1516_v47 = vrot.slane %v1467_v49, 7  ;;  %v2076_v12 = vrot.slane %v5365_v31, 7  ;;  %v845_v21 = vrot.slane %v831_v6, %v5239_v23  ;;  %v5381_v20 = vunpack.c.l.b16 %v1341_v26 }
 0x1a0   :  { %v1752_v28 = vunpack.c.l.b16 %v1334_v59  ;;  %v1782_v4 = vrot.slane %v1465_v0, 7  ;;  %v1038_v17 = vmax.f32 %v1014_v30, 0.0  ;;  %v1530_v3 = vrot.slane %v5367_v35, 7 }
 0x1a1   :  { %v1753_v57 = vunpack.c.l.b16 %v1335_v5  ;;  %v5385_v42 = vsel %vm1482_vm4, %v2076_v12, %v1467_v49  ;;  %v1039_v52 = vmax.f32 %v1015_v54, 0.0  ;;  %v1784_v38 = vrot.slane %v1467_v49, 6 }
 0x1a2   :  { %6383 = vst [vmem:[#allocation11_spill] sm:$0xff] %v5385_v42  ;;  %v1040_v33 = vmax.f32 %v1016_v48, 0.0  ;;  %v1041_v19 = vmax.f32 %v1017_v40, 0.0  ;;  %v1517_v50 = vsel %vm1482_vm4, %v1516_v47, %v1465_v0  ;;  %v1518_v6 = vrot.slane %v5365_v31, 6 }
 0x1a3   :  { %v1796_v26 = vrot.slane %v1466_v8, 7  ;;  %v1201_v59 = vrot.slane %v1038_v17, %v4985_v18  ;;  %v1783_v30 = vsel %vm1482_vm4, %v1782_v4, %v1752_v28  ;;  %v2090_v5 = vrot.slane %v5381_v20, 7 }
 0x1a4   :  { %v1205_v60 = vrot.slane %v1038_v17, %v5248_v41  ;;  %v1209_v27 = vrot.slane %v1039_v52, %v4985_v18  ;;  %v1213_v55 = vrot.slane %v1039_v52, %v5248_v41  ;;  %v1217_v43 = vrot.slane %v1040_v33, %v4985_v18 }
 0x1a5   :  { %v1221_v22 = vrot.slane %v1040_v33, %v5248_v41  ;;  %v1225_v63 = vrot.slane %v1041_v19, %v4985_v18  ;;  %v5400_v16 = vsel %vm1482_vm4, %v1530_v3, %v1466_v8  ;;  %v846_v54 = vcombine.high %v838_v1, %v838_v1 }
 0x1a6   :  { %v5405_v48 = vsel %vm1485_vm5, %v1518_v6, %v1517_v50  ;;  %v5408_v40 = vsel %vm1485_vm5, %v1784_v38, %v1783_v30  ;;  %v1229_v47 = vrot.slane %v1041_v19, %v5248_v41  ;;  %v1342_v12 = vpack.c.bf16 %v1201_v59, %v1201_v59 }
 0x1a7   :  { %v5412_v28 = vsel %vm1482_vm4, %v1796_v26, %v1753_v57  ;;  %v5416_v8 = vsel %vm1482_vm4, %v2090_v5, %v5367_v35  ;;  %v1343_v4 = vpack.c.bf16 %v1205_v60, %v1205_v60  ;;  %v1344_v17 = vpack.c.bf16 %v1209_v27, %v1209_v27 }
 0x1a8   :  { %v1345_v3 = vpack.c.bf16 %v1213_v55, %v1213_v55  ;;  %v1346_v52 = vpack.c.bf16 %v1217_v43, %v1217_v43  ;;  %v1347_v33 = vpack.c.bf16 %v1221_v22, %v1221_v22  ;;  %v1348_v50 = vpack.c.bf16 %v1225_v63, %v1225_v63 }
 0x1a9   :  { %v3888_v6 = vrot.slane %v838_v1, 9  ;;  %v3889_v38 = vrot.slane %v846_v54, 9  ;;  %v3890_v30 = vrot.slane %v845_v21, 9  ;;  %v884_v19 = vcombine.low %v5370_v56, %v5355_v51 }
 0x1aa   :  { %v1349_v59 = vpack.c.bf16 %v1229_v47, %v1229_v47  ;;  %v5420_v49 = vunpack.c.l.b16 %v1342_v12  ;;  %v847_v57 = vcombine.high %v845_v21, %v845_v21  ;;  %v885_v26 = vcombine.high %v5370_v56, %v5355_v51 }
 0x1ab   :  { %v1006_v5 = vmax.f32 %v838_v1, %v3888_v6  ;;  %v1007_v60 = vmax.f32 %v846_v54, %v3889_v38  ;;  %v1008_v27 = vmax.f32 %v845_v21, %v3890_v30  ;;  %v892_v55 = vrot.slane %v884_v19, %v5239_v23 }
 0x1ac   :  { %v5425_v43 = vunpack.c.l.b16 %v1343_v4  ;;  %v5427_v22 = vunpack.c.l.b16 %v1344_v17  ;;  %v5429_v63 = vunpack.c.l.b16 %v1345_v3  ;;  %v899_v47 = vrot.slane %v885_v26, %v5239_v23 }
 0x1ad   :  { %v5432_v12 = vunpack.c.l.b16 %v1346_v52  ;;  %v1030_v15 = vmax.f32 %v1006_v5, 0.0  ;;  %v1031_v0 = vmax.f32 %v1007_v60, 0.0  ;;  %v900_v51 = vcombine.high %v892_v55, %v892_v55 }
 0x1ae   :  { %v5434_v56 = vunpack.c.l.b16 %v1347_v33  ;;  %v5436_v1 = vunpack.c.l.b16 %v1348_v50  ;;  %v1032_v21 = vmax.f32 %v1008_v27, 0.0  ;;  %v3900_v54 = vrot.slane %v892_v55, 9 }
 0x1af   :  { %v5438_v4 = vunpack.c.l.b16 %v1349_v59  ;;  %v3891_v17 = vrot.slane %v847_v57, 9  ;;  %v5440_v6 = vcombine.high %v899_v47, %v899_v47  ;;  %v1772_v3 = vrot.slane %v5285_v7, 5 }
 0x1b0   :  { %v1137_v52 = vrot.slane %v1030_v15, %v4985_v18  ;;  %v1141_v38 = vrot.slane %v1030_v15, %v5248_v41  ;;  %v3901_v30 = vrot.slane %v900_v51, 9  ;;  %v3902_v19 = vrot.slane %v899_v47, 9 }
 0x1b1   :  { %v5446_v33 = vrot.slane %v1031_v0, %v4985_v18  ;;  %v1773_v50 = vsel %vm1488_vm6, %v1772_v3, %v5377_v61  ;;  %v1774_v59 = vrot.slane %v5335_v53, 4  ;;  %v1776_v26 = vrot.slane %v5343_v32, 3 }
 0x1b2   :  { %v1149_v5 = vrot.slane %v1031_v0, %v5248_v41  ;;  %v5454_v60 = vrot.slane %v1032_v21, %v4985_v18  ;;  %v1018_v27 = vmax.f32 %v892_v55, %v3900_v54  ;;  %v1019_v15 = vmax.f32 %v900_v51, %v3901_v30 }
 0x1b3   :  { %v5458_v23 = vmax.f32 %v847_v57, %v3891_v17  ;;  %v5461_v10 = vrot.slane %v1032_v21, %v5248_v41  ;;  %v1326_v61 = vpack.c.bf16 %v1137_v52, %v1137_v52  ;;  %v1327_v3 = vpack.c.bf16 %v1141_v38, %v1141_v38 }
 0x1b4   :  { %v1020_v42 = vmax.f32 %v899_v47, %v3902_v19  ;;  %v1042_v11 = vmax.f32 %v1018_v27, 0.0  ;;  %v1043_v55 = vmax.f32 %v1019_v15, 0.0  ;;  %v1775_v51 = vsel %vm1491_vm7, %v1774_v59, %v1773_v50 }
 0x1b5   :  { %v1329_v54 = vpack.c.bf16 %v1149_v5, %v1149_v5  ;;  %v1777_v17 = vsel %vm1494_vm8, %v1776_v26, %v1775_v51  ;;  %v1778_v21 = vrot.slane %v5347_v37, 2  ;;  %v5476_v27 = vunpack.c.l.b16 %v1326_v61 }
 0x1b6   :  { %v1044_v52 = vmax.f32 %v1020_v42, 0.0  ;;  %v1233_v38 = vrot.slane %v1042_v11, %v4985_v18  ;;  %v1237_v47 = vrot.slane %v1042_v11, %v5248_v41  ;;  %v1245_v30 = vrot.slane %v1043_v55, %v5248_v41 }
 0x1b7   :  { %v1779_v50 = vsel %vm1497_vm9, %v1778_v21, %v1777_v17  ;;  %v1780_v59 = vrot.slane %v5351_v25, 1  ;;  %v6384_v42 = vrot.slane %v5367_v35, 6  ;;  %v5484_v51 = vunpack.c.l.b16 %v1327_v3 }
 0x1b8   :  { %v1350_v5 = vpack.c.bf16 %v1233_v38, %v1233_v38  ;;  %v1351_v26 = vpack.c.bf16 %v1237_v47, %v1237_v47  ;;  %v1353_v15 = vpack.c.bf16 %v1245_v30, %v1245_v30  ;;  %v5486_v57 = vunpack.c.l.b16 %v1329_v54 }
 0x1b9   :  { %v1799_v11 = vsel %vm1485_vm5, %v6384_v42, %v5412_v28  ;;  %v5489_v61 = vrot.slane %v1043_v55, %v4985_v18  ;;  %v1800_v17 = vrot.slane %v5381_v20, 5  ;;  %v5493_v21 = vrot.slane %v1044_v52, %v4985_v18 }
 0x1ba   :  { %v5496_v38 = vrot.slane %v1044_v52, %v5248_v41  ;;  %v5498_v47 = vunpack.c.l.b16 %v1350_v5  ;;  %v1781_v35 = vsel %vm1500_vm10, %v1780_v59, %v1779_v50  ;;  %v5501_v28 = vunpack.c.l.b16 %v1351_v26 }
 0x1bb   :  { %v5503_v3 = vunpack.c.l.b16 %v1353_v15  ;;  %v1801_v54 = vsel %vm1488_vm6, %v1800_v17, %v1799_v11  ;;  %v1802_v55 = vrot.slane %v5425_v43, 4  ;;  %v1804_v30 = vrot.slane %v5429_v63, 3 }
 0x1bc   :  { %v1806_v42 = vrot.slane %v5434_v56, 2  ;;  %v1808_v0 = vrot.slane %v5438_v4, 1  ;;  %v6385_v52 = vrot.slane %v5283_v62, 5  ;;  %v1760_v59 = vrot.slane %v5333_v44, 4 }
 0x1bd   :  { %v1803_v50 = vsel %vm1491_vm7, %v1802_v55, %v1801_v54  ;;  %v1762_v26 = vrot.slane %v5337_v14, 3  ;;  %v1764_v15 = vrot.slane %v5345_v36, 2  ;;  %v1766_v17 = vrot.slane %v5349_v46, 1 }
 0x1be   :  { %v1759_v5 = vsel %vm1488_vm6, %v6385_v52, %v5318_v29  ;;  %v1805_v11 = vsel %vm1494_vm8, %v1804_v30, %v1803_v50  ;;  %v6386_v39 = vrot.slane %v5365_v31, 5  ;;  %v1788_v19 = vrot.slane %v5420_v49, 4 }
 0x1bf   :  { %v1807_v29 = vsel %vm1497_vm9, %v1806_v42, %v1805_v11  ;;  %v1761_v54 = vsel %vm1491_vm7, %v1760_v59, %v1759_v5  ;;  %v1790_v55 = vrot.slane %v5427_v22, 3  ;;  %v1792_v52 = vrot.slane %v5432_v12, 2 }
 0x1c0   :  { %v1787_v9 = vsel %vm1488_vm6, %v6386_v39, %v5408_v40  ;;  %v1809_v2 = vsel %vm1500_vm10, %v1808_v0, %v1807_v29  ;;  %v1763_v30 = vsel %vm1494_vm8, %v1762_v26, %v1761_v54  ;;  %v1794_v18 = vrot.slane %v5436_v1, 1 }
 0x1c1   :  { %v1789_v50 = vsel %vm1491_vm7, %v1788_v19, %v1787_v9  ;;  %v1811_v41 = vpack.c.b16 %v1809_v2, %v1781_v35  ;;  %v1765_v39 = vsel %vm1497_vm9, %v1764_v15, %v1763_v30  ;;  %v6387_v42 = vrot.slane %v5285_v7, 6  ;;  %v4443_v2 = vld [vmem:[%s6357_s3 + $0x328] ss:$8 sps:$4 sm:$0xff]  }
 0x1c2   :  { %v1791_v40 = vsel %vm1494_vm8, %v1790_v55, %v1789_v50  ;;  %v1767_v59 = vsel %vm1500_vm10, %v1766_v17, %v1765_v39  ;;  %v1506_v26 = vrot.slane %v5335_v53, 5  ;;  %v1508_v9 = vrot.slane %v5343_v32, 4 }
 0x1c3   :  { %v1505_v5 = vsel %vm1485_vm5, %v6387_v42, %v5299_v34  ;;  %v1793_v0 = vsel %vm1497_vm9, %v1792_v52, %v1791_v40  ;;  %3996 = vmatprep.mubr.msk.bf16.mxu0 %vm1692_vm11, %v1811_v41  ;;  %v1510_v35 = vrot.slane %v5347_v37, 3  ;;  %v1512_v34 = vrot.slane %v5351_v25, 2 }
 0x1c4   :  { %v1795_v19 = vsel %vm1500_vm10, %v1794_v18, %v1793_v0  ;;  %v1514_v15 = vrot.slane %v5484_v51, 1  ;;  %v1507_v17 = vsel %vm1488_vm6, %v1506_v26, %v1505_v5  ;;  %v6388_v29 = vrot.slane %v5381_v20, 6  ;;  %v4451_v18 = vld [vmem:[%s6357_s3 + $0x31c] ss:$8 sps:$4 sm:$0xff]   ;;  %v4449_v0 = vld [vmem:[%s6357_s3 + $0x318] ss:$8 sps:$4 sm:$0xff]  }
 0x1c5   :  { %v1810_v11 = vpack.c.b16 %v1795_v19, %v1767_v59  ;;  %v1534_v54 = vrot.slane %v5425_v43, 5  ;;  %v1509_v55 = vsel %vm1491_vm7, %v1508_v9, %v1507_v17  ;;  %v1536_v52 = vrot.slane %v5429_v63, 4 }
 0x1c6   :  { %v1533_v41 = vsel %vm1485_vm5, %v6388_v29, %v5400_v16  ;;  %v1538_v30 = vrot.slane %v5434_v56, 3  ;;  %v1540_v50 = vrot.slane %v5438_v4, 2  ;;  %v1511_v39 = vsel %vm1494_vm8, %v1510_v35, %v1509_v55 }
 0x1c7   :  { %2000 = vmatmul.mubr.bf16.vlgmr.msra.gmra.mxu0 %v1810_v11  ;;  %v1535_v40 = vsel %vm1488_vm6, %v1534_v54, %v1533_v41  ;;  %v1542_v16 = vrot.slane %v5501_v28, 1  ;;  %v1487_v42 = vrot.slane %v5333_v44, 5  ;;  %v1513_v5 = vsel %vm1497_vm9, %v1512_v34, %v1511_v39  ;;  %v4457_v11 = vld [vmem:[%s6357_s3 + $0x30c] ss:$8 sps:$4 sm:$0xff]  }
 0x1c8   :  { %2560 = vmatpush1.bf16.msra.mxu0 %v4443_v2  ;;  %v1537_v59 = vsel %vm1491_vm7, %v1536_v52, %v1535_v40  ;;  %v1490_v26 = vrot.slane %v5337_v14, 4  ;;  %v1493_v9 = vrot.slane %v5345_v36, 3  ;;  %v1515_v19 = vsel %vm1500_vm10, %v1514_v15, %v1513_v5 }
 0x1c9   :  { %v1539_v35 = vsel %vm1494_vm8, %v1538_v30, %v1537_v59  ;;  %2561 = vmatprep.subr.bf16.mxu0 %v4451_v18  ;;  %v1489_v2 = vsel %vm1488_vm6, %v1487_v42, %v5312_v58  ;;  %v1496_v34 = vrot.slane %v5349_v46, 2  ;;  %v1499_v41 = vrot.slane %v5476_v27, 1 }
 0x1ca   :  { %v1541_v17 = vsel %vm1497_vm9, %v1540_v50, %v1539_v35  ;;  %v1492_v29 = vsel %vm1491_vm7, %v1490_v26, %v1489_v2  ;;  %v6389_v15 = vrot.slane %v5420_v49, 5  ;;  %v1522_v55 = vrot.slane %v5427_v22, 4  ;;  %v4463_v26 = vld [vmem:[%s6357_s3 + $0x2fc] ss:$8 sps:$4 sm:$0xff]  }
 0x1cb   :  { %v1543_v18 = vsel %vm1500_vm10, %v1542_v16, %v1541_v17  ;;  %v1495_v58 = vsel %vm1494_vm8, %v1493_v9, %v1492_v29  ;;  %v1524_v52 = vrot.slane %v5432_v12, 3  ;;  %v1526_v39 = vrot.slane %v5436_v1, 2  ;;  %v4446_v29 = vld [vmem:[%s6357_s3 + $0x240] ss:$8 sps:$4 sm:$0xff]  }
 0x1cc   :  { %v1521_v54 = vsel %vm1488_vm6, %v6389_v15, %v5405_v48  ;;  %v1545_v30 = vpack.c.b16 %v1543_v18, %v1515_v19  ;;  %v1498_v50 = vsel %vm1497_vm9, %v1496_v34, %v1495_v58  ;;  %v1528_v40 = vrot.slane %v5498_v47, 1  ;;  %2562 = vmatpush1.bf16.msra.mxu0 %v4449_v0  ;;  %v4455_v48 = vld [vmem:[%s6357_s3 + $0x308] ss:$8 sps:$4 sm:$0xff]  }
 0x1cd   :  { %v1501_v16 = vsel %vm1500_vm10, %v1499_v41, %v1498_v50  ;;  %v1523_v42 = vsel %vm1491_vm7, %v1522_v55, %v1521_v54  ;;  %v2064_v5 = vrot.slane %v5335_v53, 6  ;;  %v2066_v59 = vrot.slane %v5343_v32, 5  ;;  %2563 = vmatprep.subr.bf16.mxu0 %v4457_v11  ;;  %v4454_v50 = vld [vmem:[%s6357_s3 + $0x234] ss:$8 sps:$4 sm:$0xff]  }
 0x1ce   :  { %3964 = vmatprep.mubr.msk.bf16.mxu1 %vm1692_vm11, %v1545_v30  ;;  %v1525_v0 = vsel %vm1494_vm8, %v1524_v52, %v1523_v42  ;;  %v2068_v9 = vrot.slane %v5347_v37, 4  ;;  %v2070_v19 = vrot.slane %v5351_v25, 3  ;;  %v2072_v35 = vrot.slane %v5484_v51, 2 }
 0x1cf   :  { %v1527_v2 = vsel %vm1497_vm9, %v1526_v39, %v1525_v0  ;;  %v2065_v34 = vsel %vm1485_vm5, %v2064_v5, %v5325_v13  ;;  %v2074_v11 = vrot.slane %v5486_v57, 1  ;;  %v2092_v17 = vrot.slane %v5425_v43, 6  ;;  %v4461_v13 = vld [vmem:[%s6357_s3 + $0x2f8] ss:$8 sps:$4 sm:$0xff]   ;;  %v4469_v39 = vld [vmem:[%s6357_s3 + $0x2ec] ss:$8 sps:$4 sm:$0xff]  }
 0x1d0   :  { %v1529_v41 = vsel %vm1500_vm10, %v1528_v40, %v1527_v2  ;;  %v2067_v15 = vsel %vm1488_vm6, %v2066_v59, %v2065_v34  ;;  %v2094_v54 = vrot.slane %v5429_v63, 5  ;;  %v2096_v18 = vrot.slane %v5434_v56, 4  ;;  %2564 = vmatpush1.bf16.msra.mxu0 %v4455_v48 }
 0x1d1   :  { %v1544_v58 = vpack.c.b16 %v1529_v41, %v1501_v16  ;;  %v2069_v55 = vsel %vm1491_vm7, %v2068_v9, %v2067_v15  ;;  %v2093_v52 = vsel %vm1485_vm5, %v2092_v17, %v5416_v8  ;;  %v2098_v30 = vrot.slane %v5438_v4, 3  ;;  %2565 = vmatprep.subr.bf16.mxu0 %v4463_v26  ;;  %v4467_v17 = vld [vmem:[%s6357_s3 + $0x2e8] ss:$8 sps:$4 sm:$0xff]  }
 0x1d2   :  { %v2071_v40 = vsel %vm1494_vm8, %v2070_v19, %v2069_v55  ;;  %v2095_v48 = vsel %vm1488_vm6, %v2094_v54, %v2093_v52  ;;  %v2100_v16 = vrot.slane %v5501_v28, 2  ;;  %v2102_v42 = vrot.slane %v5503_v3, 1 }
 0x1d3   :  { %1736 = vmatmul.mubr.bf16.vlgmr.msra.gmra.mxu1 %v1544_v58  ;;  %v2073_v8 = vsel %vm1497_vm9, %v2072_v35, %v2071_v40  ;;  %v2097_v5 = vsel %vm1491_vm7, %v2096_v18, %v2095_v48  ;;  %v2360_v59 = vrot.slane %v5335_v53, 7  ;;  %v2362_v26 = vrot.slane %v5343_v32, 6  ;;  %v4452_v35 = vld [vmem:[%s6357_s3 + $0x230] ss:$8 sps:$4 sm:$0xff]   ;;  %v4475_v58 = vld [vmem:[%s6357_s3 + $0x2dc] ss:$8 sps:$4 sm:$0xff]  }
 0x1d4   :  { %v6390_v0 = vpack.c.bf16 %v5461_v10, %v5461_v10  ;;  %v1355_v19 = vpack.c.bf16 %v5496_v38, %v5496_v38  ;;  %2262 = vmatpush1.bf16.msra.mxu1 %v4446_v29  ;;  %v2075_v2 = vsel %vm1500_vm10, %v2074_v11, %v2073_v8  ;;  %v2099_v34 = vsel %vm1494_vm8, %v2098_v30, %v2097_v5  ;;  %v4460_v29 = vld [vmem:[%s6357_s3 + $0x224] ss:$8 sps:$4 sm:$0xff]  }
 0x1d5   :  { %2566 = vmatpush1.bf16.msra.mxu0 %v4461_v13  ;;  %v2101_v10 = vsel %vm1497_vm9, %v2100_v16, %v2099_v34  ;;  %v2361_v41 = vsel %vm1482_vm4, %v2360_v59, %v5285_v7  ;;  %v2364_v38 = vrot.slane %v5347_v37, 5  ;;  %v2368_v11 = vrot.slane %v5484_v51, 3  ;;  %2263 = vmatprep.subr.bf16.mxu1 %v4454_v50 }
 0x1d6   :  { %v5648_v9 = vunpack.c.l.b16 %v6390_v0  ;;  %2567 = vmatprep.subr.bf16.mxu0 %v4469_v39  ;;  %v2103_v15 = vsel %vm1500_vm10, %v2102_v42, %v2101_v10  ;;  %v2363_v54 = vsel %vm1485_vm5, %v2362_v26, %v2361_v41  ;;  %v2366_v18 = vrot.slane %v5351_v25, 4  ;;  %v4473_v42 = vld [vmem:[%s6357_s3 + $0x2d8] ss:$8 sps:$4 sm:$0xff]   ;;  %v4466_v0 = vld [vmem:[%s6357_s3 + $0x214] ss:$8 sps:$4 sm:$0xff]  }
 0x1d7   :  { %v6391_v13 = vrot.slane %v5425_v43, 7  ;;  %v2105_v55 = vpack.c.b16 %v2103_v15, %v2075_v2  ;;  %v2365_v52 = vsel %vm1488_vm6, %v2364_v38, %v2363_v54  ;;  %v2370_v30 = vrot.slane %v5486_v57, 2  ;;  %v4464_v54 = vld [vmem:[%s6357_s3 + $0x210] ss:$8 sps:$4 sm:$0xff]  }
 0x1d8   :  { %v2390_v50 = vrot.slane %v5429_v63, 6  ;;  %v5681_v39 = vunpack.c.l.b16 %v1355_v19  ;;  %v2367_v40 = vsel %vm1491_vm7, %v2366_v18, %v2365_v52  ;;  %v2392_v48 = vrot.slane %v5434_v56, 5  ;;  %2264 = vmatpush1.bf16.msra.mxu1 %v4452_v35  ;;  %v4481_v19 = vld [vmem:[%s6357_s3 + $0x2cc] ss:$8 sps:$4 sm:$0xff]  }
 0x1d9   :  { %v2389_v7 = vsel %vm1482_vm4, %v6391_v13, %v5381_v20  ;;  %v2396_v16 = vrot.slane %v5501_v28, 3  ;;  %v4458_v20 = vld [vmem:[%s6357_s3 + $0x220] ss:$8 sps:$4 sm:$0xff]   ;;  %2568 = vmatpush1.bf16.msra.mxu0 %v4467_v17  ;;  %4057 = vmatprep.mubr.msk.bf16.mxu1 %vm1692_vm11, %v2105_v55  ;;  %v2369_v8 = vsel %vm1494_vm8, %v2368_v11, %v2367_v40  ;;  %v2394_v59 = vrot.slane %v5438_v4, 4 }
 0x1da   :  { %v2391_v5 = vsel %vm1485_vm5, %v2390_v50, %v2389_v7  ;;  %v2398_v26 = vrot.slane %v5503_v3, 2  ;;  %2265 = vmatprep.subr.bf16.mxu1 %v4460_v29  ;;  %v6392_v2 = vrot.slane %v5440_v6, 9  ;;  %v1352_v35 = vpack.c.bf16 %v5489_v61, %v5489_v61  ;;  %2569 = vmatprep.subr.bf16.mxu0 %v4475_v58 }
 0x1db   :  { %v2393_v17 = vsel %vm1488_vm6, %v2392_v48, %v2391_v5  ;;  %v2346_v10 = vrot.slane %v5333_v44, 7  ;;  %v1354_v41 = vpack.c.bf16 %v5493_v21, %v5493_v21  ;;  %v2371_v38 = vsel %vm1497_vm9, %v2370_v30, %v2369_v8  ;;  %v4479_v21 = vld [vmem:[%s6357_s3 + $0x2c8] ss:$8 sps:$4 sm:$0xff]   ;;  %v4472_v30 = vld [vmem:[%s6357_s3 + $0x204] ss:$8 sps:$4 sm:$0xff]  }
 0x1dc   :  { %v5706_v34 = vmax.f32 %v5440_v6, %v6392_v2  ;;  %v2395_v11 = vsel %vm1491_vm7, %v2394_v59, %v2393_v17  ;;  %v2348_v29 = vrot.slane %v5337_v14, 6  ;;  %v2372_v6 = vrot.slane %v5648_v9, 1  ;;  %2266 = vmatpush1.bf16.msra.mxu1 %v4458_v20  ;;  %v4487_v20 = vld [vmem:[%s6357_s3 + $0x2bc] ss:$8 sps:$4 sm:$0xff]   ;;  %v4470_v5 = vld [vmem:[%s6357_s3 + $0x200] ss:$8 sps:$4 sm:$0xff]  }
 0x1dd   :  { %v2397_v15 = vsel %vm1494_vm8, %v2396_v16, %v2395_v11  ;;  %v2400_v61 = vrot.slane %v5681_v39, 1  ;;  %2570 = vmatpush1.bf16.msra.mxu0 %v4473_v42  ;;  %v2347_v18 = vsel %vm1482_vm4, %v2346_v10, %v5283_v62  ;;  %v6393_v13 = vrot.slane %v5283_v62, 7  ;;  %2267 = vmatprep.subr.bf16.mxu1 %v4466_v0  ;;  %v4478_v17 = vld [vmem:[%s6357_s3 + $0x1f4] ss:$8 sps:$4 sm:$0xff]  }
 0x1de   :  { %v2374_v58 = vrot.slane %v5420_v49, 7  ;;  %v1033_v55 = vmax.f32 %v5458_v23, 0.0  ;;  %v2399_v52 = vsel %vm1497_vm9, %v2398_v26, %v2397_v15  ;;  %2571 = vmatprep.subr.bf16.mxu0 %v4481_v19  ;;  %v6394_v50 = vpack.c.bf16 %v5446_v33, %v5446_v33  ;;  %v4485_v26 = vld [vmem:[%s6357_s3 + $0x2b8] ss:$8 sps:$4 sm:$0xff]  }
 0x1df   :  { %v2049_v7 = vsel %vm1482_vm4, %v6393_v13, %v5272_v24  ;;  %v6395_v24 = vpack.c.bf16 %v5454_v60, %v5454_v60  ;;  %v2373_v48 = vsel %vm1500_vm10, %v2372_v6, %v2371_v38  ;;  %v2401_v16 = vsel %vm1500_vm10, %v2400_v61, %v2399_v52  ;;  %v4476_v52 = vld [vmem:[%s6357_s3 + $0x1f0] ss:$8 sps:$4 sm:$0xff]  }
 0x1e0   :  { %v5741_v40 = vunpack.c.l.b16 %v6394_v50  ;;  %v1045_v42 = vmax.f32 %v5706_v34, 0.0  ;;  %v5754_v8 = vunpack.c.l.b16 %v1352_v35  ;;  %v2403_v33 = vpack.c.b16 %v2401_v16, %v2373_v48  ;;  %2268 = vmatpush1.bf16.msra.mxu1 %v4464_v54  ;;  %v4496_v16 = vld [vmem:[%s6357_s3 + $0x38c] ss:$8 sps:$4 sm:$0xff]   ;;  %v4513_v34 = vld [vmem:[%s6357_s3 + $0x358] ss:$8 sps:$4 sm:$0xff]  }
 0x1e1   :  { %v5746_v62 = vunpack.c.l.b16 %v6395_v24  ;;  %v2349_v60 = vsel %vm1485_vm5, %v2348_v29, %v2347_v18  ;;  %v5760_v59 = vunpack.c.l.b16 %v1354_v41  ;;  %2572 = vmatpush1.bf16.msra.mxu0 %v4479_v21  ;;  %v6396_v0 = vcombine.low %v5270_v45, %v5270_v45  ;;  %2269 = vmatprep.subr.bf16.mxu1 %v4472_v30  ;;  %v6397_v24 = vld [vmem:[#allocation9_spill] sm:$0xff] }
 0x1e2   :  { %v2350_v2 = vrot.slane %v5345_v36, 5  ;;  %v2352_v35 = vrot.slane %v5349_v46, 4  ;;  %4118 = vmatprep.mubr.msk.bf16.mxu0 %vm1692_vm11, %v2403_v33  ;;  %v2354_v10 = vrot.slane %v5476_v27, 3  ;;  %v2376_v41 = vrot.slane %v5427_v22, 6  ;;  %2573 = vmatprep.subr.bf16.mxu0 %v4487_v20 }
 0x1e3   :  { %v5769_v19 = vsel %vm1696_vm2, %v6396_v0, 0  ;;  %v2050_v38 = vrot.slane %v5333_v44, 6  ;;  %v2052_v11 = vrot.slane %v5337_v14, 5  ;;  %v2375_v6 = vsel %vm1482_vm4, %v2374_v58, %v5365_v31  ;;  %v6399_v0 = vld [vmem:[#allocation11_spill] sm:$0xff] }
 0x1e4   :  { %v5782_v29 = vsel %vm1488_vm6, %v2350_v2, %v2349_v60  ;;  %v2378_v15 = vrot.slane %v5432_v12, 5  ;;  %v2380_v61 = vrot.slane %v5436_v1, 4  ;;  %v2382_v54 = vrot.slane %v5498_v47, 3  ;;  %2270 = vmatpush1.bf16.msra.mxu1 %v4470_v5 }
 0x1e5   :  { %v2051_v21 = vsel %vm1485_vm5, %v2050_v38, %v2049_v7  ;;  %v2054_v18 = vrot.slane %v5345_v36, 4  ;;  %v2058_v13 = vrot.slane %v5476_v27, 2  ;;  %2574 = vmatpush1.bf16.msra.mxu0 %v4485_v26  ;;  %v2056_v58 = vrot.slane %v5349_v46, 3  ;;  %2271 = vmatprep.subr.bf16.mxu1 %v4478_v17  ;;  %v4484_v7 = vld [vmem:[%s6357_s3 + $0x1e4] ss:$8 sps:$4 sm:$0xff]  }
 0x1e6   :  { %v2053_v31 = vsel %vm1488_vm6, %v2052_v11, %v2051_v21  ;;  %v2078_v30 = vrot.slane %v5420_v49, 6  ;;  %v2080_v50 = vrot.slane %v5427_v22, 5  ;;  %v6398_v48 = vcombine.high %v6397_v24, %v6397_v24 }
 0x1e7   :  { %v2377_v20 = vsel %vm1485_vm5, %v2376_v41, %v2375_v6  ;;  %v2055_v33 = vsel %vm1491_vm7, %v2054_v18, %v2053_v31  ;;  %v2060_v5 = vrot.slane %v5741_v40, 1  ;;  %v2082_v60 = vrot.slane %v5432_v12, 4  ;;  %v6400_v6 = vld [vmem:[#allocation8_spill] sm:$0xff] }
 0x1e8   :  { %4117 = vmatprep.subr.msk.bf16.mxu0 %vm1696_vm2, %v6398_v48  ;;  %v2057_v26 = vsel %vm1494_vm8, %v2056_v58, %v2055_v33  ;;  %v2079_v2 = vsel %vm1485_vm5, %v2078_v30, %v6399_v0  ;;  %v2084_v17 = vrot.slane %v5436_v1, 3  ;;  %v2086_v38 = vrot.slane %v5498_v47, 2  ;;  %2272 = vmatpush1.bf16.msra.mxu1 %v4476_v52  ;;  %v4482_v31 = vld [vmem:[%s6357_s3 + $0x1e0] ss:$8 sps:$4 sm:$0xff]   ;;  %v4490_v48 = vld [vmem:[%s6357_s3 + $0x1d4] ss:$8 sps:$4 sm:$0xff]  }
 0x1e9   :  { %v2059_v11 = vsel %vm1497_vm9, %v2058_v13, %v2057_v26  ;;  %v2081_v21 = vsel %vm1488_vm6, %v2080_v50, %v2079_v2  ;;  %v2088_v41 = vrot.slane %v5754_v8, 1  ;;  %v1165_v18 = vrot.slane %v1033_v55, %v6400_v6  ;;  %v6401_v58 = vld [vmem:[#allocation10_spill] sm:$0xff]  ;;  %2273 = vmatprep.subr.bf16.mxu1 %v4484_v7  ;;  %v4503_v33 = vld [vmem:[%s6357_s3 + $0x37c] ss:$8 sps:$4 sm:$0xff]  }
 0x1ea   :  { %2578 = vmatpush2.bf16.msra.mxu0 %v6401_v58  ;;  %v4494_v30 = vld [vmem:[%s6357_s3 + $0x388] ss:$8 sps:$4 sm:$0xff]   ;;  %v2379_v13 = vsel %vm1488_vm6, %v2378_v15, %v2377_v20  ;;  %v2083_v50 = vsel %vm1491_vm7, %v2082_v60, %v2081_v21  ;;  %v1261_v24 = vrot.slane %v1045_v42, %v6400_v6  ;;  %v2658_v52 = vrot.slane %v5343_v32, 7 }
 0x1eb   :  { %2579 = vmatprep.subr.bf16.mxu0 %v4496_v16  ;;  %v5844_v15 = vsel %vm1500_vm10, %v2060_v5, %v2059_v11  ;;  %v2085_v20 = vsel %vm1494_vm8, %v2084_v17, %v2083_v50  ;;  %v1333_v60 = vpack.c.bf16 %v1165_v18, %v1165_v18  ;;  %v2660_v26 = vrot.slane %v5347_v37, 6  ;;  %v4488_v37 = vld [vmem:[%s6357_s3 + $0x1d0] ss:$8 sps:$4 sm:$0xff]  }
 0x1ec   :  { %v2087_v32 = vsel %vm1497_vm9, %v2086_v38, %v2085_v20  ;;  %v2659_v7 = vsel %vm1482_vm4, %v2658_v52, %v5335_v53  ;;  %v2662_v0 = vrot.slane %v5351_v25, 5  ;;  %v2664_v16 = vrot.slane %v5484_v51, 4  ;;  %2274 = vmatpush1.bf16.msra.mxu1 %v4482_v31  ;;  %v4501_v53 = vld [vmem:[%s6357_s3 + $0x378] ss:$8 sps:$4 sm:$0xff]  }
 0x1ed   :  { %v5854_v2 = vsel %vm1500_vm10, %v2088_v41, %v2087_v32  ;;  %v1357_v21 = vpack.c.bf16 %v1261_v24, %v1261_v24  ;;  %v2661_v5 = vsel %vm1485_vm5, %v2660_v26, %v2659_v7  ;;  %v2666_v17 = vrot.slane %v5486_v57, 3  ;;  %2275 = vmatprep.subr.bf16.mxu1 %v4490_v48  ;;  %v4509_v57 = vld [vmem:[%s6357_s3 + $0x36c] ss:$8 sps:$4 sm:$0xff]  }
 0x1ee   :  { %2580 = vmatpush2.bf16.msra.mxu0 %v4494_v30  ;;  %v2381_v25 = vsel %vm1491_vm7, %v2380_v61, %v2379_v13  ;;  %v2104_v51 = vpack.c.b16 %v5854_v2, %v5844_v15  ;;  %v2641_v38 = vunpack.c.l.b16 %v1333_v60  ;;  %v2663_v11 = vsel %vm1488_vm6, %v2662_v0, %v2661_v5  ;;  %v6403_v26 = vld [vmem:[#allocation6_spill] sm:$0xff] }
 0x1ef   :  { %2581 = vmatprep.subr.bf16.mxu0 %v4503_v33  ;;  %v5874_v41 = vsel %vm1494_vm8, %v2382_v54, %v2381_v25  ;;  %v2384_v18 = vrot.slane %v5754_v8, 2  ;;  %v2665_v61 = vsel %vm1491_vm7, %v2664_v16, %v2663_v11  ;;  %v2686_v31 = vrot.slane %v5429_v63, 7  ;;  %v4507_v63 = vld [vmem:[%s6357_s3 + $0x368] ss:$8 sps:$4 sm:$0xff]   ;;  %v4542_v2 = vld [vmem:[%s6357_s3 + $0x3e4] ss:$8 sps:$4 sm:$0xff]  }
 0x1f0   :  { %v2667_v58 = vsel %vm1494_vm8, %v2666_v17, %v2665_v61  ;;  %v2668_v30 = vrot.slane %v5648_v9, 2  ;;  %v2688_v13 = vrot.slane %v5434_v56, 6  ;;  %v2692_v50 = vrot.slane %v5501_v28, 4  ;;  %2276 = vmatpush1.bf16.msra.mxu1 %v4488_v37  ;;  %v4521_v37 = vld [vmem:[%s6357_s3 + $0x34c] ss:$8 sps:$4 sm:$0xff]  }
 0x1f1   :  { %v2643_v24 = vunpack.c.l.b16 %v1357_v21  ;;  %v2687_v52 = vsel %vm1482_vm4, %v2686_v31, %v5425_v43  ;;  %v2690_v54 = vrot.slane %v5438_v4, 5  ;;  %v2694_v48 = vrot.slane %v5503_v3, 3  ;;  %v4500_v4 = vld [vmem:[%s6357_s3 + $0x2a4] ss:$8 sps:$4 sm:$0xff]   ;;  %v4537_v15 = vld [vmem:[%s6357_s3 + $0x3f0] ss:$8 sps:$4 sm:$0xff]  }
 0x1f2   :  { %2582 = vmatpush2.bf16.msra.mxu0 %v4501_v53  ;;  %v2669_v9 = vsel %vm1497_vm9, %v2668_v30, %v2667_v58  ;;  %v2670_v33 = vrot.slane %v2641_v38, 1  ;;  %v2689_v56 = vsel %vm1485_vm5, %v2688_v13, %v2687_v52  ;;  %v2644_v28 = vrot.slane %v5337_v14, 7  ;;  %v4515_v3 = vld [vmem:[%s6357_s3 + $0x35c] ss:$8 sps:$4 sm:$0xff]   ;;  %v4504_v52 = vld [vmem:[%s6357_s3 + $0x290] ss:$8 sps:$4 sm:$0xff]  }
 0x1f3   :  { %v6402_v43 = vcombine.high %v5270_v45, %v5270_v45  ;;  %2583 = vmatprep.subr.bf16.mxu0 %v4509_v57  ;;  %v2691_v20 = vsel %vm1488_vm6, %v2690_v54, %v2689_v56  ;;  %v2696_v60 = vrot.slane %v5681_v39, 2  ;;  %v1161_v14 = vrot.slane %v1033_v55, %v6403_v26  ;;  %v4519_v54 = vld [vmem:[%s6357_s3 + $0x348] ss:$8 sps:$4 sm:$0xff]  }
 0x1f4   :  { %v2646_v45 = vrot.slane %v5345_v36, 6  ;;  %v2693_v32 = vsel %vm1491_vm7, %v2692_v50, %v2691_v20  ;;  %v1257_v7 = vrot.slane %v1045_v42, %v6403_v26  ;;  %v2645_v0 = vsel %vm1482_vm4, %v2644_v28, %v5333_v44  ;;  %v4498_v36 = vld [vmem:[%s6357_s3 + $0x2a0] ss:$8 sps:$4 sm:$0xff]  }
 0x1f5   :  { %4056 = vmatprep.subr.msk.bf16.mxu1 %vm1696_vm2, %v6402_v43  ;;  %v2648_v16 = vrot.slane %v5349_v46, 5  ;;  %v2695_v21 = vsel %vm1494_vm8, %v2694_v48, %v2693_v32  ;;  %v2698_v39 = vrot.slane %v2643_v24, 1  ;;  %v1332_v5 = vpack.c.bf16 %v1161_v14, %v1161_v14  ;;  %v4510_v43 = vld [vmem:[%s6357_s3 + $0x280] ss:$8 sps:$4 sm:$0xff]   ;;  %v4516_v32 = vld [vmem:[%s6357_s3 + $0x270] ss:$8 sps:$4 sm:$0xff]  }
 0x1f6   :  { %v2647_v23 = vsel %vm1485_vm5, %v2646_v45, %v2645_v0  ;;  %2280 = vmatpush2.bf16.msra.mxu1 %v5769_v19  ;;  %2584 = vmatpush2.bf16.msra.mxu0 %v4507_v63  ;;  %v2697_v44 = vsel %vm1497_vm9, %v2696_v60, %v2695_v21  ;;  %v1356_v55 = vpack.c.bf16 %v1257_v7, %v1257_v7  ;;  %v2650_v17 = vrot.slane %v5476_v27, 4  ;;  %v4506_v19 = vld [vmem:[%s6357_s3 + $0x294] ss:$8 sps:$4 sm:$0xff]   ;;  %v4525_v27 = vld [vmem:[%s6357_s3 + $0x338] ss:$8 sps:$4 sm:$0xff]  }
 0x1f7   :  { %v2649_v42 = vsel %vm1488_vm6, %v2648_v16, %v2647_v23  ;;  %2281 = vmatprep.subr.bf16.mxu1 %v4500_v4  ;;  %2585 = vmatprep.subr.bf16.mxu0 %v4515_v3  ;;  %v5935_v53 = vsel %vm1500_vm10, %v2670_v33, %v2669_v9  ;;  %v5938_v25 = vsel %vm1500_vm10, %v2698_v39, %v2697_v44  ;;  %v2640_v38 = vunpack.c.l.b16 %v1332_v5  ;;  %v4527_v9 = vld [vmem:[%s6357_s3 + $0x33c] ss:$8 sps:$4 sm:$0xff]   ;;  %v4522_v21 = vld [vmem:[%s6357_s3 + $0x260] ss:$8 sps:$4 sm:$0xff]   ;;  %v4528_v5 = vld [vmem:[%s6357_s3 + $0x250] ss:$8 sps:$4 sm:$0xff]  }
 0x1f8   :  { %v2652_v11 = vrot.slane %v5741_v40, 3  ;;  %v2701_v57 = vpack.c.b16 %v5938_v25, %v5935_v53  ;;  %v2651_v61 = vsel %vm1491_vm7, %v2650_v17, %v2649_v42  ;;  %v2654_v31 = vrot.slane %v5746_v62, 2  ;;  %v4530_v39 = vld [vmem:[%s6357_s3 + $0x254] ss:$8 sps:$4 sm:$0xff]   ;;  %v4534_v44 = vld [vmem:[%s6357_s3 + $0x400] ss:$8 sps:$4 sm:$0xff]  }
 0x1f9   :  { %v2672_v58 = vrot.slane %v5427_v22, 7  ;;  %v2642_v30 = vunpack.c.l.b16 %v1356_v55  ;;  %v2674_v50 = vrot.slane %v5432_v12, 6  ;;  %v2676_v24 = vrot.slane %v5436_v1, 5  ;;  %v4512_v1 = vld [vmem:[%s6357_s3 + $0x284] ss:$8 sps:$4 sm:$0xff]  }
 0x1fa   :  { %v2653_v13 = vsel %vm1494_vm8, %v2652_v11, %v2651_v61  ;;  %2282 = vmatpush2.bf16.msra.mxu1 %v4498_v36  ;;  %2586 = vmatpush2.bf16.msra.mxu0 %v4513_v34  ;;  %v2678_v63 = vrot.slane %v5498_v47, 4  ;;  %v2680_v12 = vrot.slane %v5754_v8, 3  ;;  %v2353_v33 = vsel %vm1491_vm7, %v2352_v35, %v5782_v29  ;;  %v4518_v8 = vld [vmem:[%s6357_s3 + $0x274] ss:$8 sps:$4 sm:$0xff]   ;;  %v4531_v36 = vld [vmem:[%s6357_s3 + $0x410] ss:$8 sps:$4 sm:$0xff]  }
 0x1fb   :  { %v2655_v48 = vsel %vm1497_vm9, %v2654_v31, %v2653_v13  ;;  %v2673_v22 = vsel %vm1482_vm4, %v2672_v58, %v5420_v49  ;;  %2283 = vmatprep.subr.bf16.mxu1 %v4506_v19  ;;  %2587 = vmatprep.subr.bf16.mxu0 %v4521_v37  ;;  %v2356_v49 = vrot.slane %v5741_v40, 2  ;;  %v2355_v56 = vsel %vm1494_vm8, %v2354_v10, %v2353_v33  ;;  %v4533_v23 = vld [vmem:[%s6357_s3 + $0x414] ss:$8 sps:$4 sm:$0xff]   ;;  %v4536_v34 = vld [vmem:[%s6357_s3 + $0x404] ss:$8 sps:$4 sm:$0xff]  }
 0x1fc   :  { %v2675_v47 = vsel %vm1485_vm5, %v2674_v50, %v2673_v22  ;;  %v2385_v46 = vsel %vm1497_vm9, %v2384_v18, %v5874_v41  ;;  %v2682_v40 = vrot.slane %v5760_v59, 2  ;;  %v2386_v10 = vrot.slane %v5760_v59, 1  ;;  %v4539_v55 = vld [vmem:[%s6357_s3 + $0x3f4] ss:$8 sps:$4 sm:$0xff]   ;;  %v4543_v17 = vld [vmem:[%s6357_s3 + $0x3d0] ss:$8 sps:$4 sm:$0xff]  }
 0x1fd   :  { %v2677_v28 = vsel %vm1488_vm6, %v2676_v24, %v2675_v47  ;;  %v2656_v29 = vrot.slane %v2640_v38, 1  ;;  %v2684_v3 = vrot.slane %v2642_v30, 1  ;;  %v2357_v41 = vsel %vm1497_vm9, %v2356_v49, %v2355_v56  ;;  %v4545_v42 = vld [vmem:[%s6357_s3 + $0x3d4] ss:$8 sps:$4 sm:$0xff]   ;;  %v4548_v19 = vld [vmem:[%s6357_s3 + $0x3c4] ss:$8 sps:$4 sm:$0xff]  }
 0x1fe   :  { %v2679_v35 = vsel %vm1491_vm7, %v2678_v63, %v2677_v28  ;;  %2284 = vmatpush2.bf16.msra.mxu1 %v4504_v52  ;;  %2588 = vmatpush2.bf16.msra.mxu0 %v4519_v54  ;;  %v2358_v20 = vrot.slane %v5746_v62, 1  ;;  %v2387_v60 = vsel %vm1500_vm10, %v2386_v10, %v2385_v46  ;;  %v4524_v62 = vld [vmem:[%s6357_s3 + $0x264] ss:$8 sps:$4 sm:$0xff]   ;;  %v6404_v16 = vmov 0   ;;  %v4546_v37 = vld [vmem:[%s6357_s3 + $0x3c0] ss:$8 sps:$4 sm:$0xff]  }
 0x1ff   :  { %v2681_v4 = vsel %vm1494_vm8, %v2680_v12, %v2679_v35  ;;  %2285 = vmatprep.subr.bf16.mxu1 %v4512_v1  ;;  %2589 = vmatprep.subr.bf16.mxu0 %v4527_v9  ;;  %v5998_v59 = vsel %vm1500_vm10, %v2656_v29, %v2655_v48  ;;  %v4551_v53 = vld [vmem:[%s6357_s3 + $0x3b4] ss:$8 sps:$4 sm:$0xff]   ;;  %v4549_v25 = vld [vmem:[%s6357_s3 + $0x3b0] ss:$8 sps:$4 sm:$0xff]   ;;  %v4554_v38 = vld [vmem:[%s6357_s3 + $0x3a4] ss:$8 sps:$4 sm:$0xff]  }
 0x200   :  { %v2683_v18 = vsel %vm1497_vm9, %v2682_v40, %v2681_v4  ;;  %v2359_v7 = vsel %vm1500_vm10, %v2358_v20, %v2357_v41  ;;  %v4147_v11 = vld [vmem:[%s6357_s3 + $0x480] sm:$0x77]  ;;  %v4559_v30 = vld [vmem:[%s6357_s3 + $0x474] ss:$8 sps:$4 sm:$0xff]   ;;  %v4557_v13 = vld [vmem:[%s6357_s3 + $0x470] ss:$8 sps:$4 sm:$0xff]  }
 0x201   :  { %v6001_v14 = vsel %vm1500_vm10, %v2684_v3, %v2683_v18  ;;  %v2402_v0 = vpack.c.b16 %v2387_v60, %v2359_v7  ;;  %v4177_v61 = vcombine.high %v4147_v11, %v4147_v11  ;;  %v4176_v31 = vcombine.low %v4147_v11, %v4147_v11  ;;  %v4562_v50 = vld [vmem:[%s6357_s3 + $0x464] ss:$8 sps:$4 sm:$0xff]   ;;  %v4560_v24 = vld [vmem:[%s6357_s3 + $0x460] ss:$8 sps:$4 sm:$0xff]   ;;  %v4565_v52 = vld [vmem:[%s6357_s3 + $0x454] ss:$8 sps:$4 sm:$0xff]  }
 0x202   :  { %v2700_v45 = vpack.c.b16 %v6001_v14, %v5998_v59  ;;  %2286 = vmatpush2.bf16.msra.mxu1 %v4510_v43  ;;  %2590 = vmatpush2.bf16.msra.mxu0 %v4525_v27  ;;  %v4563_v54 = vld [vmem:[%s6357_s3 + $0x450] ss:$8 sps:$4 sm:$0xff]   ;;  %v4568_v48 = vld [vmem:[%s6357_s3 + $0x444] ss:$8 sps:$4 sm:$0xff]   ;;  %v4566_v22 = vld [vmem:[%s6357_s3 + $0x440] ss:$8 sps:$4 sm:$0xff]  }
 0x203   :  { %2287 = vmatprep.subr.bf16.mxu1 %v4518_v8  ;;  %3247 = vmatprep.subr.bf16.mxu0 %v6404_v16  ;;  %v2852_v58 = vsel %vm1696_vm2, %v4176_v31, 0  ;;  %v4571_v63 = vld [vmem:[%s6357_s3 + $0x434] ss:$8 sps:$4 sm:$0xff]   ;;  %v4569_v12 = vld [vmem:[%s6357_s3 + $0x430] ss:$8 sps:$4 sm:$0xff]   ;;  %v4575_v33 = vld [vmem:[%s6359_s5 + $0xc8] sm:$0xff]  }
 0x204   :  { %v4574_v1 = vld [vmem:[%s6357_s3 + $0x424] ss:$8 sps:$4 sm:$0xff]   ;;  %v4572_v9 = vld [vmem:[%s6357_s3 + $0x420] ss:$8 sps:$4 sm:$0xff]   ;;  %v4578_v56 = vld [vmem:[%s6359_s5 + $0x78] sm:$0xff]  }
 0x205   :  { %2592 = vmatmul.mubr.bf16.vlgmr.msra.gmra.mxu0 %v2402_v0  ;;  %v4576_v49 = vld [vmem:[%s6359_s5 + $0x80] sm:$0xff]  }
 0x206   :  { %2288 = vmatpush2.bf16.msra.mxu1 %v4516_v32  ;;  %3248 = vmatpush1.bf16.msra.mxu0 %v4576_v49  ;;  %v4577_v47 = vld [vmem:[%s6359_s5 + $0xc0] sm:$0xff]   ;;  %v4592_v49 = vld [vmem:[%s6359_s5 + $0x88] sm:$0x3f]  }
 0x207   :  { %2289 = vmatprep.subr.bf16.mxu1 %v4524_v62  ;;  %3249 = vmatprep.subr.bf16.mxu0 %v6404_v16 }
 0x20a   :  { %2290 = vmatpush2.bf16.msra.mxu1 %v4522_v21  ;;  %3250 = vmatpush1.bf16.msra.mxu0 %v4578_v56  ;;  %v3245_v56 = vsel %vm114_vm0, %v4592_v49, 0 }
 0x20b   :  { %2291 = vmatprep.subr.bf16.mxu1 %v4530_v39  ;;  %3251 = vmatprep.subr.bf16.mxu0 %v6404_v16  ;;  %v2904_v39 = vld [vmem:[%s6358_s4] sm:$0x3]  ;;  %s4644_s4 = smov 108  }
 0x20e   :  { %2292 = vmatpush2.bf16.msra.mxu1 %v4528_v5 }
 0x20f   :  { %2857 = vmatprep.subr.bf16.mxu1 %v4533_v23 }
 0x211   :  { %2294 = vmatmul.mubr.bf16.vlgmr.msra.gmra.mxu1 %v2104_v51  ;;  %v4540_v51 = vld [vmem:[%s6357_s3 + $0x3e0] ss:$8 sps:$4 sm:$0xff]  }
 0x212   :  { %2858 = vmatpush1.bf16.msra.mxu1 %v4531_v36  ;;  %4179 = vmatprep.mubr.msk.bf16.mxu1 %vm1692_vm11, %v2701_v57  ;;  %v4552_v57 = vld [vmem:[%s6357_s3 + $0x3a0] ss:$8 sps:$4 sm:$0xff]  }
 0x213   :  { %2859 = vmatprep.subr.bf16.mxu1 %v4536_v34 }
 0x216   :  { %2860 = vmatpush1.bf16.msra.mxu1 %v4534_v44 }
 0x217   :  { %2861 = vmatprep.subr.bf16.mxu1 %v4539_v55 }
 0x21a   :  { %2862 = vmatpush1.bf16.msra.mxu1 %v4537_v15  ;;  %v2909_v15 = vrot.slane %v2904_v39, %v6403_v26 }
 0x21b   :  { %2863 = vmatprep.subr.bf16.mxu1 %v4542_v2 }
 0x21e   :  { %2864 = vmatpush1.bf16.msra.mxu1 %v4540_v51 }
 0x21f   :  { %2865 = vmatprep.subr.bf16.mxu1 %v4545_v42  ;;  %v6405_v42 = vld [vmem:[#allocation5_spill] sm:$0xff] }
 0x222   :  { %2866 = vmatpush1.bf16.msra.mxu1 %v4543_v17  ;;  %v6406_v17 = vsub.s32 1, %v6405_v42 }
 0x223   :  { %2867 = vmatprep.subr.bf16.mxu1 %v4548_v19 }
 0x224   :  { %v2913_v19 = vrot.slane %v2904_v39, %v6406_v17 }
 0x226   :  { %2868 = vmatpush1.bf16.msra.mxu1 %v4546_v37 }
 0x227   :  { %2869 = vmatprep.subr.bf16.mxu1 %v4551_v53 }
 0x22a   :  { %2870 = vmatpush1.bf16.msra.mxu1 %v4549_v25 }
 0x22b   :  { %2871 = vmatprep.subr.bf16.mxu1 %v4554_v38 }
 0x22e   :  { %2872 = vmatpush1.bf16.msra.mxu1 %v4552_v57 }
 0x22f   :  { %4178 = vmatprep.subr.msk.bf16.mxu1 %vm1696_vm2, %v4177_v61  ;;  %vm3800_vm2 = vcmask 73728  }
 0x232   :  { %2876 = vmatpush2.bf16.msra.mxu1 %v2852_v58  ;;  %v4579_v58 = vld [vmem:[%s6359_s5 + $0xb8] sm:$0xff]  }
 0x233   :  { %2877 = vmatprep.subr.bf16.mxu1 %v4559_v30  ;;  %v4580_v30 = vld [vmem:[%s6359_s5 + $0x70] sm:$0xff]  }
 0x234   :  { %3252 = vmatpush1.bf16.msra.mxu0 %v4580_v30 }
 0x235   :  { %3253 = vmatprep.subr.bf16.mxu0 %v6404_v16 }
 0x236   :  { %2878 = vmatpush2.bf16.msra.mxu1 %v4557_v13 }
 0x237   :  { %2879 = vmatprep.subr.bf16.mxu1 %v4562_v50  ;;  %v4581_v50 = vld [vmem:[%s6359_s5 + $0xb0] sm:$0xff]  }
 0x23a   :  { %2880 = vmatpush2.bf16.msra.mxu1 %v4560_v24  ;;  %v4582_v24 = vld [vmem:[%s6359_s5 + $0x68] sm:$0xff]  }
 0x23b   :  { %2881 = vmatprep.subr.bf16.mxu1 %v4565_v52  ;;  %3254 = vmatpush1.bf16.msra.mxu0 %v4582_v24  ;;  %v4583_v52 = vld [vmem:[%s6359_s5 + $0xa8] sm:$0xff]  }
 0x23c   :  { %3255 = vmatprep.subr.bf16.mxu0 %v6404_v16 }
 0x23e   :  { %2882 = vmatpush2.bf16.msra.mxu1 %v4563_v54  ;;  %v4584_v54 = vld [vmem:[%s6359_s5 + $0x60] sm:$0xff]  }
 0x23f   :  { %2883 = vmatprep.subr.bf16.mxu1 %v4568_v48  ;;  %3256 = vmatpush1.bf16.msra.mxu0 %v4584_v54  ;;  %v4585_v48 = vld [vmem:[%s6359_s5 + $0xa0] sm:$0xff]  }
 0x240   :  { %3257 = vmatprep.subr.bf16.mxu0 %v6404_v16 }
 0x242   :  { %2884 = vmatpush2.bf16.msra.mxu1 %v4566_v22  ;;  %v4586_v22 = vld [vmem:[%s6359_s5 + $0x58] sm:$0xff]  }
 0x243   :  { %2885 = vmatprep.subr.bf16.mxu1 %v4571_v63  ;;  %3258 = vmatpush1.bf16.msra.mxu0 %v4586_v22  ;;  %v4587_v63 = vld [vmem:[%s6359_s5 + $0x98] sm:$0xff]  }
 0x244   :  { %3259 = vmatprep.subr.bf16.mxu0 %v6404_v16 }
 0x246   :  { %2886 = vmatpush2.bf16.msra.mxu1 %v4569_v12  ;;  %v4588_v12 = vld [vmem:[%s6359_s5 + $0x50] sm:$0xff]  }
 0x247   :  { %2887 = vmatprep.subr.bf16.mxu1 %v4574_v1  ;;  %3260 = vmatpush1.bf16.msra.mxu0 %v4588_v12  ;;  %v4589_v1 = vld [vmem:[%s6359_s5 + $0x90] sm:$0xff]  }
 0x248   :  { %3261 = vmatprep.subr.bf16.mxu0 %v6404_v16 }
 0x24a   :  { %2888 = vmatpush2.bf16.msra.mxu1 %v4572_v9  ;;  %v4590_v9 = vld [vmem:[%s6359_s5 + $0x48] sm:$0xff]  }
 0x24b   :  { %3494 = vmatprep.subr.bf16.mxu1 %v6404_v16  ;;  %3262 = vmatpush1.bf16.msra.mxu0 %v4590_v9 }
 0x24c   :  { %3277 = vmatprep.subr.bf16.mxu0 %v6404_v16 }
 0x24d   :  { %2890 = vmatmul.mubr.bf16.vlgmr.msra.gmra.mxu1 %v2700_v45 }
 0x24e   :  { %3495 = vmatpush1.bf16.msra.mxu1 %v4575_v33  ;;  %v4591_v33 = vld [vmem:[%s6359_s5 + $0xd0] sm:$0x3f]  }
 0x24f   :  { %3496 = vmatprep.subr.bf16.mxu1 %v6404_v16  ;;  %3278 = vmatpush2.bf16.msra.mxu0 %v3245_v56 }
 0x250   :  { %3361 = vmatprep.subr.bf16.mxu0 %v6404_v16 }
 0x252   :  { %3497 = vmatpush1.bf16.msra.mxu1 %v4577_v47  ;;  %v3492_v47 = vsel %vm114_vm0, %v4591_v33, 0 }
 0x253   :  { %3498 = vmatprep.subr.bf16.mxu1 %v6404_v16 }
 0x256   :  { %3499 = vmatpush1.bf16.msra.mxu1 %v4579_v58 }
 0x257   :  { %3500 = vmatprep.subr.bf16.mxu1 %v6404_v16 }
 0x25a   :  { %3501 = vmatpush1.bf16.msra.mxu1 %v4581_v50 }
 0x25b   :  { %3502 = vmatprep.subr.bf16.mxu1 %v6404_v16 }
 0x25e   :  { %3503 = vmatpush1.bf16.msra.mxu1 %v4583_v52 }
 0x25f   :  { %3504 = vmatprep.subr.bf16.mxu1 %v6404_v16 }
 0x262   :  { %3505 = vmatpush1.bf16.msra.mxu1 %v4585_v48 }
 0x263   :  { %3506 = vmatprep.subr.bf16.mxu1 %v6404_v16 }
 0x266   :  { %3507 = vmatpush1.bf16.msra.mxu1 %v4587_v63 }
 0x267   :  { %3508 = vmatprep.subr.bf16.mxu1 %v6404_v16 }
 0x26a   :  { %3509 = vmatpush1.bf16.msra.mxu1 %v4589_v1 }
 0x26b   :  { %3524 = vmatprep.subr.bf16.mxu1 %v6404_v16 }
 0x26e   :  { %3525 = vmatpush2.bf16.msra.mxu1 %v3492_v47 }
 0x287   :  { %v2001_v46 = vpop.f32.mrf.mxu0 }
 0x289   :  { %v2003_v40 = vpop.f32.mrf.mxu0 }
 0x28b   :  { %v2005_v10 = vpop.f32.mrf.mxu0 }
 0x28d   :  { %v2007_v4 = vpop.f32.mrf.mxu0 }
 0x293   :  { %v1737_v28 = vpop.f32.mrf.mxu1 }
 0x294   :  { %v2002_v59 = vadd.f32 %v2001_v46, %v1737_v28 }
 0x295   :  { %v1739_v43 = vpop.f32.mrf.mxu1 }
 0x296   :  { %v2004_v62 = vadd.f32 %v2003_v40, %v1739_v43 }
 0x297   :  { %v1741_v35 = vpop.f32.mrf.mxu1 }
 0x298   :  { %v2006_v20 = vadd.f32 %v2005_v10, %v1741_v35 }
 0x299   :  { %v1743_v27 = vpop.f32.mrf.mxu1 }
 0x29a   :  { %v2008_v14 = vadd.f32 %v2007_v4, %v1743_v27 }
 0x2c5   :  { %v2593_v8 = vpop.f32.mrf.mxu0 }
 0x2c7   :  { %v2595_v18 = vpop.f32.mrf.mxu0 }
 0x2c9   :  { %v2597_v32 = vpop.f32.mrf.mxu0 }
 0x2cb   :  { %v2599_v34 = vpop.f32.mrf.mxu0 }
 0x2d1   :  { %v2295_v29 = vpop.f32.mrf.mxu1 }
 0x2d2   :  { %v2304_v0 = vadd.f32 %v2295_v29, %v2002_v59 }
 0x2d3   :  { %v2297_v3 = vpop.f32.mrf.mxu1 }
 0x2d4   :  { %v2305_v23 = vadd.f32 %v2297_v3, %v2004_v62  ;;  %v2602_v55 = vadd.f32 %v2593_v8, %v2304_v0 }
 0x2d5   :  { %v2299_v41 = vpop.f32.mrf.mxu1 }
 0x2d6   :  { %v2306_v45 = vadd.f32 %v2299_v41, %v2006_v20  ;;  %v2603_v25 = vadd.f32 %v2595_v18, %v2305_v23  ;;  %v6407_v41 = vld [vmem:[#allocation7_spill] sm:$0xff] }
 0x2d7   :  { %v2301_v60 = vpop.f32.mrf.mxu1 }
 0x2d8   :  { %v2307_v21 = vadd.f32 %v2301_v60, %v2008_v14  ;;  %v2604_v36 = vadd.f32 %v2597_v32, %v2306_v45 }
 0x2da   :  { %v2605_v51 = vadd.f32 %v2599_v34, %v2307_v21 }
 0x30d   :  { %v2891_v7 = vpop.f32.mrf.mxu1 }
 0x30e   :  { %v2900_v53 = vadd.f32 %v2891_v7, %v2602_v55 }
 0x30f   :  { %v2893_v5 = vpop.f32.mrf.mxu1 }
 0x310   :  { %v2901_v57 = vadd.f32 %v2893_v5, %v2603_v25  ;;  %v2916_v31 = vadd.f32 %v2909_v15, %v2900_v53 }
 0x311   :  { %v2895_v44 = vpop.f32.mrf.mxu1 }
 0x312   :  { %v2902_v2 = vadd.f32 %v2895_v44, %v2604_v36  ;;  %v2917_v13 = vadd.f32 %v2913_v19, %v2901_v57 }
 0x313   :  { %v2897_v37 = vpop.f32.mrf.mxu1 }
 0x314   :  { %v2918_v38 = vadd.f32 %v2909_v15, %v2902_v2  ;;  %v2903_v11 = vadd.f32 %v2897_v37, %v2605_v51 }
 0x316   :  { %v2919_v61 = vadd.f32 %v2913_v19, %v2903_v11  ;;  %2928 = vrot.lane.b32.xlu0 %v2918_v38, %s4644_s4 }
 0x318   :  { %2930 = vrot.lane.b32.xlu1 %v2919_v61, %s4644_s4 }
 0x31a   :  { %2924 = vrot.lane.b32.xlu0 %v2916_v31, %s4644_s4 }
 0x31c   :  { %2926 = vrot.lane.b32.xlu1 %v2917_v13, %s4644_s4 }
 0x388   :  { %v2929_v28 = vpop.permute.xlu0 %2928 }
 0x38a   :  { %v2931_v43 = vpop.permute.xlu1 %2930 }
 0x38b   :  { %v2934_v46 = vsel %vm2932_vm12, %v2929_v28, %v2931_v43  ;;  %v2942_v35 = vmax.f32 %v2919_v61, %v2931_v43 }
 0x38c   :  { %v2941_v40 = vmax.f32 %v2918_v38, %v2934_v46  ;;  %v2925_v29 = vpop.permute.xlu0 %2924 }
 0x38e   :  { %v2965_v27 = vcombine.low %v2941_v40, %v2942_v35  ;;  %v2966_v10 = vcombine.high %v2941_v40, %v2942_v35  ;;  %v2927_v4 = vpop.permute.xlu1 %2926 }
 0x38f   :  { %v2933_v3 = vsel %vm2932_vm12, %v2925_v29, %v2927_v4  ;;  %v2940_v8 = vmax.f32 %v2917_v13, %v2927_v4 }
 0x390   :  { %v2973_v18 = vrot.slane %v2965_v27, %v6407_v41  ;;  %v6203_v20 = vrot.slane %v2966_v10, %v6407_v41  ;;  %v2939_v60 = vmax.f32 %v2916_v31, %v2933_v3 }
 0x392   :  { %v2981_v59 = vcombine.high %v2973_v18, %v2973_v18  ;;  %v4184_v14 = vrot.slane %v2973_v18, 9  ;;  %v4186_v45 = vrot.slane %v6203_v20, 9  ;;  %v2947_v32 = vcombine.low %v2939_v60, %v2940_v8 }
 0x393   :  { %v2948_v7 = vcombine.high %v2939_v60, %v2940_v8 }
 0x394   :  { %v4185_v62 = vrot.slane %v2981_v59, 9  ;;  %v3021_v0 = vmax.f32 %v6203_v20, %v4186_v45  ;;  %v6207_v21 = vmax.f32 %v2973_v18, %v4184_v14  ;;  %v2955_v39 = vrot.slane %v2947_v32, %v6407_v41 }
 0x395   :  { %v6211_v5 = vrot.slane %v2948_v7, %v6407_v41 }
 0x396   :  { %v3020_v23 = vmax.f32 %v2981_v59, %v4185_v62  ;;  %v3029_v36 = vmax.f32 %v3021_v0, 0.0  ;;  %v2963_v34 = vcombine.high %v2955_v39, %v2955_v39  ;;  %v4180_v44 = vrot.slane %v2955_v39, 9 }
 0x397   :  { %v4182_v55 = vrot.slane %v6211_v5, 9  ;;  %v3027_v2 = vmax.f32 %v6207_v21, 0.0  ;;  %v4599_v21 = vld [vmem:[%s6359_s5 + $0x8] sm:$0xff]  }
 0x398   :  { %v3028_v15 = vmax.f32 %v3020_v23, 0.0  ;;  %v3090_v51 = vrot.slane %v3029_v36, %v6403_v26  ;;  %v3094_v17 = vrot.slane %v3029_v36, %v6400_v6  ;;  %v4181_v19 = vrot.slane %v2963_v34, 9 }
 0x399   :  { %v6217_v37 = vmax.f32 %v2955_v39, %v4180_v44  ;;  %v3017_v53 = vmax.f32 %v6211_v5, %v4182_v55  ;;  %v3078_v50 = vrot.slane %v3027_v2, %v6400_v6  ;;  %v4593_v39 = vld [vmem:[%s6359_s5 + $0x38] sm:$0xff]   ;;  %v4594_v44 = vld [vmem:[%s6359_s5 + $0x30] sm:$0xff]   ;;  %v2982_v55 = vcombine.high %v6203_v20, %v6203_v20 }
 0x39a   :  { %v3086_v25 = vrot.slane %v3028_v15, %v6400_v6  ;;  %v3082_v38 = vrot.slane %v3028_v15, %v6403_v26  ;;  %v3016_v11 = vmax.f32 %v2963_v34, %v4181_v19  ;;  %v3132_v57 = vpack.c.bf16 %v3094_v17, %v3094_v17 }
 0x39b   :  { %v3131_v61 = vpack.c.bf16 %v3090_v51, %v3090_v51  ;;  %v3023_v31 = vmax.f32 %v6217_v37, 0.0  ;;  %v3025_v58 = vmax.f32 %v3017_v53, 0.0  ;;  %v3128_v46 = vpack.c.bf16 %v3078_v50, %v3078_v50  ;;  %v4595_v51 = vld [vmem:[%s6359_s5 + $0x28] sm:$0xff]   ;;  %v4596_v53 = vld [vmem:[%s6359_s5 + $0x20] sm:$0xff]  }
 0x39c   :  { %v3130_v30 = vpack.c.bf16 %v3086_v25, %v3086_v25  ;;  %v3129_v13 = vpack.c.bf16 %v3082_v38, %v3082_v38  ;;  %v3024_v24 = vmax.f32 %v3016_v11, 0.0  ;;  %v3427_v52 = vunpack.c.l.b16 %v3132_v57 }
 0x39d   :  { %v3046_v54 = vrot.slane %v3023_v31, %v6400_v6  ;;  %v3058_v48 = vrot.slane %v3025_v58, %v6403_v26  ;;  %v3062_v22 = vrot.slane %v3025_v58, %v6400_v6  ;;  %v3426_v63 = vunpack.c.l.b16 %v3131_v61  ;;  %v4598_v61 = vld [vmem:[%s6359_s5 + $0x10] sm:$0xff]  }
 0x39e   :  { %v3054_v12 = vrot.slane %v3024_v24, %v6400_v6  ;;  %v3179_v1 = vunpack.c.l.b16 %v3130_v30  ;;  %v3050_v49 = vrot.slane %v3024_v24, %v6403_v26  ;;  %v3178_v47 = vunpack.c.l.b16 %v3129_v13 }
 0x39f   :  { %v3124_v9 = vpack.c.bf16 %v3062_v22, %v3062_v22  ;;  %v3123_v33 = vpack.c.bf16 %v3058_v48, %v3058_v48  ;;  %v3430_v56 = vrot.slane %v3427_v52, 7  ;;  %v3120_v43 = vpack.c.bf16 %v3046_v54, %v3046_v54  ;;  %v4600_v54 = vld [vmem:[%s6359_s5] sm:$0xff]  }
 0x3a0   :  { %v3122_v28 = vpack.c.bf16 %v3054_v12, %v3054_v12  ;;  %v3428_v27 = vrot.slane %v3426_v63, 7  ;;  %v3121_v10 = vpack.c.bf16 %v3050_v49, %v3050_v49  ;;  %v3182_v4 = vrot.slane %v3179_v1, 7  ;;  %v4602_v49 = vld [vmem:[%s6359_s5 + $0x110] sm:$0xff]  }
 0x3a1   :  { %v3425_v35 = vunpack.c.l.b16 %v3124_v9  ;;  %v3424_v40 = vunpack.c.l.b16 %v3123_v33  ;;  %v3292_v3 = vunpack.c.l.b16 %v3120_v43  ;;  %v3294_v8 = vunpack.c.l.b16 %v3128_v46  ;;  %v4604_v43 = vld [vmem:[%s6359_s5 + $0x100] sm:$0xff]   ;;  %v4605_v46 = vld [vmem:[%s6359_s5 + $0xf8] sm:$0xff]  }
 0x3a2   :  { %v3177_v29 = vunpack.c.l.b16 %v3122_v28  ;;  %v3176_v60 = vunpack.c.l.b16 %v3121_v10  ;;  %v3180_v59 = vrot.slane %v3178_v47, 7  ;;  %v2964_v15 = vcombine.high %v6211_v5, %v6211_v5  ;;  %v4597_v5 = vld [vmem:[%s6359_s5 + $0x18] sm:$0xff]   ;;  %v4603_v28 = vld [vmem:[%s6359_s5 + $0x108] sm:$0xff]  }
 0x3a3   :  { %v3431_v41 = vsel %vm1482_vm4, %v3430_v56, %v3425_v35  ;;  %v3429_v18 = vsel %vm1482_vm4, %v3428_v27, %v3424_v40  ;;  %v3297_v7 = vrot.slane %v3294_v8, 7  ;;  %v4187_v17 = vrot.slane %v2982_v55, 9  ;;  %v4606_v35 = vld [vmem:[%s6359_s5 + $0xf0] sm:$0xff]   ;;  %v4607_v40 = vld [vmem:[%s6359_s5 + $0xe8] sm:$0xff]   ;;  %v4609_v8 = vld [vmem:[%s6359_s5 + $0xd8] sm:$0xff]  }
 0x3a4   :  { %v3433_v14 = vpack.c.b16 %v3431_v41, %v3431_v41  ;;  %v3432_v45 = vpack.c.b16 %v3429_v18, %v3429_v18  ;;  %v3183_v32 = vsel %vm1482_vm4, %v3182_v4, %v3177_v29  ;;  %v3181_v0 = vsel %vm1482_vm4, %v3180_v59, %v3176_v60  ;;  %v4608_v29 = vld [vmem:[%s6359_s5 + $0xe0] sm:$0xff]  }
 0x3a5   :  { %v3185_v62 = vpack.c.b16 %v3183_v32, %v3183_v32  ;;  %v3184_v23 = vpack.c.b16 %v3181_v0, %v3181_v0  ;;  %v3298_v36 = vsel %vm1482_vm4, %v3297_v7, %v3292_v3  ;;  %v4183_v19 = vrot.slane %v2964_v15, 9  ;;  %v4611_v32 = vld [vmem:[%s6361_s7 + $0x18] ss:$0 sps:$4 sm:$0x11]   ;;  %v4613_v0 = vld [vmem:[%s6361_s7 + $0x8] sm:$0xff]  }
 0x3a6   :  { %4253 = vmatprep.mubr.msk.bf16.mxu1 %vm3240_vm13, %v3433_v14  ;;  %v3300_v34 = vpack.c.b16 %v3298_v36, %v3298_v36  ;;  %v3022_v20 = vmax.f32 %v2982_v55, %v4187_v17  ;;  %v3074_v57 = vrot.slane %v3027_v2, %v6403_v26  ;;  %v3042_v30 = vrot.slane %v3023_v31, %v6403_v26 }
 0x3a7   :  { %3527 = vmatmul.mubr.bf16.vlgmr.msra.gmra.mxu1 %v3432_v45  ;;  %4215 = vmatprep.mubr.msk.bf16.mxu0 %vm3240_vm13, %v3185_v62  ;;  %v3018_v25 = vmax.f32 %v2964_v15, %v4183_v19  ;;  %v4645_v7 = vmov 0.0   ;;  %v3720_v62 = vsel %vm3718_vm14, %v4611_v32, 0 }
 0x3a8   :  { %3280 = vmatmul.mubr.bf16.vlgmr.msra.gmra.mxu0 %v3184_v23  ;;  %v3030_v38 = vmax.f32 %v3022_v20, 0.0  ;;  %v3127_v2 = vpack.c.bf16 %v3074_v57, %v3074_v57  ;;  %v3119_v24 = vpack.c.bf16 %v3042_v30, %v3042_v30  ;;  %4299 = vmatprep.subr.bf16.mxu1 %v4645_v7  ;;  %v4282_v57 = vld [vmem:[%s6360_s6] ss:$0 sm:$0xff]  ;;  %s4648_s6 = smov [#allocation2]  }
 0x3a9   :  { %3362 = vmatpush1.bf16.msra.mxu0 %v4593_v39  ;;  %4225 = vmatprep.mubr.msk.bf16.mxu0 %vm3240_vm13, %v3300_v34  ;;  %v3026_v11 = vmax.f32 %v3018_v25, 0.0  ;;  %v4614_v39 = vld [vmem:[%s6361_s7] sm:$0xff]  }
 0x3aa   :  { %3363 = vmatprep.subr.bf16.mxu0 %v6404_v16  ;;  %v3102_v58 = vrot.slane %v3030_v38, %v6400_v6  ;;  %v3293_v37 = vunpack.c.l.b16 %v3127_v2  ;;  %v3291_v48 = vunpack.c.l.b16 %v3119_v24  ;;  %v3098_v27 = vrot.slane %v3030_v38, %v6403_v26  ;;  %4300 = vmatpush3.bf16.msra.mxu1 %v3720_v62  ;;  %v4283_v24 = vld [vmem:[%s6362_s8] ss:$0 sm:$0xff]  ;;  %s3808_s8 = sshll.u32 %s4648_s6, 4  ;;  %s3809_s8 = int_to_ptr.vmem [resolvable:$true] %s3808_s8 }
 0x3ab   :  { %v3070_v13 = vrot.slane %v3026_v11, %v6400_v6  ;;  %v4601_v6 = vld [vmem:[%s6359_s5 + $0x40] sm:$0x3f]   ;;  %v3066_v10 = vrot.slane %v3026_v11, %v6403_v26  ;;  %v4610_v26 = vld [vmem:[%s6359_s5 + $0x118] sm:$0x3f]   ;;  %4301 = vmatprep.subr.bf16.mxu1 %v4645_v7  ;;  %4307 = vmatprep.mubr.msk.bf16.mxu1 %vm4646_vm15, %v4645_v7  ;;  %s4619_s13 = scalar_lea.vmem %s3809_s8, 32  ;;  %p4624_p1 = scmp.lt.s32.totalorder %s3809_s8, %s3809_s8 }
 0x3ac   :  { %v3134_v50 = vpack.c.bf16 %v3102_v58, %v3102_v58  ;;  %v3295_v63 = vrot.slane %v3293_v37, 7  ;;  %v3359_v12 = vsel %vm114_vm0, %v4601_v6, 0  ;;  %v3133_v4 = vpack.c.bf16 %v3098_v27, %v3098_v27  ;;  %p4620_p0 = scmp.ne.s32.totalorder %s3809_s8, %s4619_s13  ;;  %p4625_p2 = scmp.lt.s32.totalorder %s4619_s13, %s4619_s13 }
 0x3ad   :  { %3364 = vmatpush1.bf16.msra.mxu0 %v4594_v44  ;;  %v3126_v52 = vpack.c.bf16 %v3070_v13, %v3070_v13  ;;  %v3125_v3 = vpack.c.bf16 %v3066_v10, %v3066_v10  ;;  %v3626_v59 = vsel %vm114_vm0, %v4610_v26, 0  ;;  %vm3714_vm0 = vcmask 408576  }
 0x3ae   :  { %3365 = vmatprep.subr.bf16.mxu0 %v6404_v16  ;;  %v3561_v31 = vunpack.c.l.b16 %v3134_v50  ;;  %v3296_v9 = vsel %vm1482_vm4, %v3295_v63, %v3291_v48  ;;  %v3560_v41 = vunpack.c.l.b16 %v3133_v4  ;;  %p4626_p3 = por %p4625_p2, %p4624_p1 }
 0x3af   :  { %v3559_v22 = vunpack.c.l.b16 %v3126_v52  ;;  %v3299_v47 = vpack.c.b16 %v3296_v9, %v3296_v9  ;;  %v3558_v18 = vunpack.c.l.b16 %v3125_v3 }
 0x3b0   :  { %v3564_v1 = vrot.slane %v3561_v31, 7  ;;  %v3562_v60 = vrot.slane %v3560_v41, 7  ;;  %p4627_p4 = pnand %p4626_p3, %p4620_p0 }
 0x3b1   :  { %3366 = vmatpush1.bf16.msra.mxu0 %v4595_v51 }
 0x3b2   :  { %3367 = vmatprep.subr.bf16.mxu0 %v6404_v16  ;;  %v3565_v33 = vsel %vm1482_vm4, %v3564_v1, %v3559_v22  ;;  %v3563_v14 = vsel %vm1482_vm4, %v3562_v60, %v3558_v18 }
 0x3b3   :  { %v3567_v56 = vpack.c.b16 %v3565_v33, %v3565_v33  ;;  %v3566_v45 = vpack.c.b16 %v3563_v14, %v3563_v14 }
 0x3b5   :  { %3368 = vmatpush1.bf16.msra.mxu0 %v4596_v53 }
 0x3b6   :  { %3369 = vmatprep.subr.bf16.mxu0 %v6404_v16 }
 0x3b9   :  { %3370 = vmatpush1.bf16.msra.mxu0 %v4597_v5 }
 0x3ba   :  { %3371 = vmatprep.subr.bf16.mxu0 %v6404_v16 }
 0x3bd   :  { %3372 = vmatpush1.bf16.msra.mxu0 %v4598_v61 }
 0x3be   :  { %3373 = vmatprep.subr.bf16.mxu0 %v6404_v16 }
 0x3c1   :  { %3374 = vmatpush1.bf16.msra.mxu0 %v4599_v21 }
 0x3c2   :  { %3375 = vmatprep.subr.bf16.mxu0 %v6404_v16 }
 0x3c5   :  { %3376 = vmatpush1.bf16.msra.mxu0 %v4600_v54 }
 0x3c6   :  { %3391 = vmatprep.subr.bf16.mxu0 %v6404_v16 }
 0x3c9   :  { %3392 = vmatpush2.bf16.msra.mxu0 %v3359_v12 }
 0x3ca   :  { %3628 = vmatprep.subr.bf16.mxu0 %v6404_v16 }
 0x3cc   :  { %3394 = vmatmul.mubr.bf16.vlgmr.msra.gmra.mxu0 %v3299_v47 }
 0x3cd   :  { %3629 = vmatpush1.bf16.msra.mxu0 %v4602_v49  ;;  %4281 = vmatprep.mubr.msk.bf16.mxu0 %vm3240_vm13, %v3567_v56  ;;  %v4647_v49 = vmov 1966171168  }
 0x3ce   :  { %3630 = vmatprep.subr.bf16.mxu0 %v6404_v16  ;;  %v3777_v47 = vunpack.c.l.s4 %v4647_v49 }
 0x3d0   :  { %v3778_v56 = vunpack.c.0.s8 %v3777_v47 }
 0x3d1   :  { %3631 = vmatpush1.bf16.msra.mxu0 %v4603_v28 }
 0x3d2   :  { %3632 = vmatprep.subr.bf16.mxu0 %v6404_v16 }
 0x3d5   :  { %3633 = vmatpush1.bf16.msra.mxu0 %v4604_v43  ;;  %v3781_v43 = vsub.s32 %v3778_v56, %v6405_v42 }
 0x3d6   :  { %3634 = vmatprep.subr.bf16.mxu0 %v6404_v16 }
 0x3d9   :  { %3635 = vmatpush1.bf16.msra.mxu0 %v4605_v46 }
 0x3da   :  { %3636 = vmatprep.subr.bf16.mxu0 %v6404_v16 }
 0x3dd   :  { %3637 = vmatpush1.bf16.msra.mxu0 %v4606_v35 }
 0x3de   :  { %3638 = vmatprep.subr.bf16.mxu0 %v6404_v16 }
 0x3e1   :  { %3639 = vmatpush1.bf16.msra.mxu0 %v4607_v40 }
 0x3e2   :  { %3640 = vmatprep.subr.bf16.mxu0 %v6404_v16 }
 0x3e5   :  { %3641 = vmatpush1.bf16.msra.mxu0 %v4608_v29 }
 0x3e6   :  { %3642 = vmatprep.subr.bf16.mxu0 %v6404_v16 }
 0x3e9   :  { %3643 = vmatpush1.bf16.msra.mxu0 %v4609_v8 }
 0x3ea   :  { %3658 = vmatprep.subr.bf16.mxu0 %v6404_v16  ;;  %v4612_v16 = vld [vmem:[%s6361_s7 + $0x10] sm:$0xff]  }
 0x3eb   :  { %4302 = vmatpush3.bf16.msra.mxu1 %v4612_v16 }
 0x3ec   :  { %4303 = vmatprep.subr.bf16.mxu1 %v4645_v7 }
 0x3ed   :  { %3659 = vmatpush2.bf16.msra.mxu0 %v3626_v59 }
 0x3ef   :  { %4304 = vmatpush3.bf16.msra.mxu1 %v4613_v0 }
 0x3f0   :  { %3661 = vmatmul.mubr.bf16.vlgmr.msra.gmra.mxu0 %v3566_v45  ;;  %4305 = vmatprep.subr.bf16.mxu1 %v4645_v7 }
 0x3f3   :  { %4306 = vmatpush3.bf16.msra.mxu1 %v4614_v39 }
 0x467   :  { %v3528_v23 = vpop.f32.mrf.mxu1 }
 0x468   :  { %v3281_v36 = vpop.f32.mrf.mxu0 }
 0x469   :  { %v3530_v34 = vpop.f32.mrf.mxu1 }
 0x46a   :  { %v3283_v44 = vpop.f32.mrf.mxu0 }
 0x46b   :  { %v3531_v55 = vpop.f32.mrf.mxu1 }
 0x46c   :  { %v3284_v15 = vpop.f32.mrf.mxu0 }
 0x46d   :  { %v3532_v51 = vpop.f32.mrf.mxu1 }
 0x46e   :  { %v3285_v17 = vpop.f32.mrf.mxu0 }
 0x48c   :  { %v3395_v19 = vpop.f32.mrf.mxu0 }
 0x48d   :  { %v3396_v53 = vadd.f32 %v3395_v19, %v3281_v36 }
 0x48e   :  { %v3397_v20 = vpop.f32.mrf.mxu0 }
 0x48f   :  { %v3534_v25 = vadd.f32 %v3528_v23, %v3396_v53 }
 0x490   :  { %v3398_v5 = vpop.f32.mrf.mxu0 }
 0x492   :  { %v3399_v38 = vpop.f32.mrf.mxu0 }
 0x4b0   :  { %v3662_v11 = vpop.f32.mrf.mxu0 }
 0x4b1   :  { %v3668_v61 = vadd.f32 %v3662_v11, %v3534_v25 }
 0x4b2   :  { %v3664_v58 = vpop.f32.mrf.mxu0 }
 0x4b3   :  { %v3676_v30 = vadd.f32 %v4282_v57, %v3668_v61 }
 0x4b4   :  { %v3665_v13 = vpop.f32.mrf.mxu0 }
 0x4b5   :  { %v3677_v21 = vmax.f32 %v3676_v30, 0.0 }
 0x4b6   :  { %v3666_v2 = vpop.f32.mrf.mxu0 }
 0x4b7   :  { %v3678_v50 = vpack.c.bf16 %v3677_v21, %v3677_v21 }
 0x4b9   :  { %4308 = vmatmul.mubr.msk.bf16.vlgmr.msra.gmra.mxu1 %vm3714_vm0, %v3678_v50 }
 0x579   :  { %v3756_v52 = vpop.f32.mrf.mxu1 }
 0x57a   :  { %v3757_v54 = vadd.f32 %v4283_v24, %v3756_v52 }
 0x57b   :  { %v4309_v37 = vpop.f32.mrf.mxu1 }
 0x57c   :  { %v3763_v6 = vsel %vm3762_vm1, %v3757_v54, -inf }
 0x57d   :  { %3764 = vmax.xlane.f32.xlu0 %v3763_v6  ;;  %v3759_v31 = vpop.f32.mrf.mxu1 }
 0x57f   :  { %v4310_v48 = vpop.f32.mrf.mxu1 }
 0x606   :  { %v3765_v22 = vpop.xlane.xlu0 %3764 }
 0x607   :  { %v3766_v63 = vsub.f32 %v3757_v54, %v3765_v22 }
 0x609   :  { %v3767_v12 = vmul.f32 1.442695, %v3766_v63 }
 0x60b   :  { %4615 = vpow2.f32 %v3767_v12 }
 0x618   :  { %v4616_v1 = vpop.eup %4615 }
 0x619   :  { %v3769_v9 = vsel %vm3762_vm1, %v4616_v1, 0.0 }
 0x61a   :  { %3770 = vadd.xlane.f32.xlu1 %v3769_v9 }
 0x6a3   :  { %v3771_v33 = vpop.xlane.xlu1 %3770 }
 0x6a4   :  { %4617 = vlog2.f32 %v3771_v33 }
 0x6b1   :  { %v4618_v28 = vpop.eup %4617 }
 0x6b2   :  { %v3773_v46 = vmul.f32 0.6931472, %v4618_v28 }
 0x6b4   :  { %v3774_v35 = vsub.f32 %v3766_v63, %v3773_v46 }
 0x6b6   :  { %v3782_v40 = vrot.slane %v3774_v35, %v3781_v43 }
 0x6b8   :  { %v3783_v27 = vcombine.high %v3782_v40, %v3782_v40  ;;  %v3790_v10 = vrot.slane %v3782_v40, %v3781_v43 }
 0x6ba   :  { %v3797_v29 = vrot.slane %v3783_v27, %v3781_v43  ;;  %3801 = vst.msk [vmem:[#allocation2] sm:$0x1] %vm3800_vm2, %v3790_v10 }
 0x6bc   :  { %3802 = vst.msk [vmem:[#allocation2 + $0x1] sm:$0x1] %vm3800_vm2, %v3797_v29 }
 0x6bd   :  { %4630 = shalt.err (!%p4627_p4)
}
 0x6be   :  { %s4649_s14 = smov 16   ;;  %s4650_s15 = smov 1  }
 0x6bf   :  { %3814 = dma.vmem_to_hbm [thread:$0]  %s3809_s8, 32, %s6363_s9, [#allocation3], %s4649_s14, %s4649_s14, %s4650_s15  }
 0x6c0   :  { %4639 = dma.done.wait [#allocation3], 32  }
 0x6c1   :  { %4640 = vsyncadd [#allocation3], 4294967264 }
 0x6c2   :  { %3818 = vsyncpa [#allocation3], 1 }

</bundles_post_ra>
